<compile_context>
chip_gen: v6e
topology: v6e:2x2x1
jax: 0.10.0
libtpu: 0.0.40
codegen_flags: <defaults>
</compile_context>

<pallas_src>
import jax
import jax.numpy as jnp
from jax.experimental import pallas as pl
from jax.experimental.pallas import tpu as pltpu

INPUT_DIM = 32   # "input_dim" of the VAE
HIDDEN = 400
LATENT = 20
OUT_WIDTH = 128  # recon(32) + mu(20) + logvar(20) = 72 lanes, padded to 128


def vae_kernel(x_ref, eps_ref,
               w1_ref, b1_ref,
               w2_ref, b2_ref,     # fused mu/logvar head: [400, 2*LATENT] bf16, [1, 2*LATENT] f32
               w3_ref, b3_ref,     # stacked decode weight: [2*LATENT, 400] bf16 (w3 on both halves)
               w4_ref, b4_ref,
               out_ref):           # single lane-dense slab: [TB, 128]
    x = x_ref[...]                                                     # [TB, D] f32

    # encode: h1 = relu(fc1(x)) -- bf16 MXU operands, f32 accumulation/elementwise
    h1 = jnp.dot(x.astype(jnp.bfloat16), w1_ref[...],
                 preferred_element_type=jnp.float32) + b1_ref[...]
    h1 = jnp.maximum(h1, 0.0)                                          # [TB, 400] f32

    # fused mu/logvar head: one MXU pass -> mulv = mu || logvar        # [TB, 40] f32
    mulv = jnp.dot(h1.astype(jnp.bfloat16), w2_ref[...],
                   preferred_element_type=jnp.float32) + b2_ref[...]

    # lane-aligned reparameterization:
    #   A[:, :20]  = mu
    #   A[:, 20:]  = eps * exp(0.5 * logvar)        (eps pre-shifted into lanes 20..39)
    # then A @ [[w3],[w3]] == (mu + eps*exp(0.5*logvar)) @ w3 == z @ w3
    lane = jax.lax.broadcasted_iota(jnp.int32, mulv.shape, dimension=1)
    a = jnp.where(lane < LATENT, mulv, 0.0) + eps_ref[...] * jnp.exp(0.5 * mulv)

    # decode: recon = tanh(fc4(relu(fc3(z))))
    h3 = jnp.dot(a.astype(jnp.bfloat16), w3_ref[...],
                 preferred_element_type=jnp.float32) + b3_ref[...]
    h3 = jnp.maximum(h3, 0.0)                                          # [TB, 400] f32
    recon = jnp.tanh(
        jnp.dot(h3.astype(jnp.bfloat16), w4_ref[...],
                preferred_element_type=jnp.float32) + b4_ref[...]
    )                                                                  # [TB, D] f32

    # one unmasked 128-lane store stream: recon || mu || logvar || zero-pad
    pad_w = out_ref.shape[1] - (recon.shape[1] + mulv.shape[1])
    pad = jnp.zeros((recon.shape[0], pad_w), jnp.float32)
    out_ref[...] = jnp.concatenate([recon, mulv, pad], axis=-1)


def pack_params(p):
    """One-time packing: fuse mu/logvar heads, stack w3, cast weights to bf16."""
    bf = jnp.bfloat16
    w2 = jnp.concatenate([p["w21"], p["w22"]], axis=1)        # [400, 40]
    b2 = jnp.concatenate([p["b21"], p["b22"]], axis=1)        # [1, 40]
    w3s = jnp.concatenate([p["w3"], p["w3"]], axis=0)         # [40, 400] (stacked)
    return dict(
        w1=p["w1"].astype(bf), b1=p["b1"],
        w2=w2.astype(bf),      b2=b2,
        w3=w3s.astype(bf),     b3=p["b3"],
        w4=p["w4"].astype(bf), b4=p["b4"],
    )


def vae_forward(x, eps, packed, *, tb=256):
    """Whole VAE forward; batch gridded, bf16 weights VMEM-resident."""
    B, D = x.shape
    tb = min(tb, B)
    # keep >=2 grid steps so the batch axis can shard across both v7x TensorCores
    if B > 8 and pl.cdiv(B, tb) < 2:
        tb = min(B, ((pl.cdiv(B, 2) + 7) // 8) * 8)
    grid = (pl.cdiv(B, tb),)

    # eps pre-shifted into lanes [LATENT, 2*LATENT): lane-aligned with logvar
    eps_sh = jnp.pad(eps, ((0, 0), (LATENT, 0)))               # [B, 2*LATENT]

    weights = (packed["w1"], packed["b1"], packed["w2"], packed["b2"],
               packed["w3"], packed["b3"], packed["w4"], packed["b4"])

    def batch_spec(feat):
        return pl.BlockSpec((tb, feat), lambda i: (i, 0))

    def resident(a):                   # full-array block, constant index -> fetched once
        return pl.BlockSpec(a.shape, lambda i: (0,) * a.ndim)

    in_specs = [batch_spec(D), batch_spec(2 * LATENT)] + [resident(w) for w in weights]
    out_specs = pl.BlockSpec((tb, OUT_WIDTH), lambda i: (i, 0))
    out_shape = jax.ShapeDtypeStruct((B, OUT_WIDTH), jnp.float32)

    out = pl.pallas_call(
        vae_kernel,
        grid=grid,
        in_specs=in_specs,
        out_specs=out_specs,
        out_shape=out_shape,
        compiler_params=pltpu.CompilerParams(dimension_semantics=("parallel",)),
    )(x, eps_sh, *weights)

    recon = out[:, :D]
    mu = out[:, D:D + LATENT]
    logvar = out[:, D + LATENT:D + 2 * LATENT]
    return recon, mu, logvar


def init_params(key, input_dim=INPUT_DIM):
    """Deterministic synthetic parameters matching the PyTorch module's shapes."""
    ks = jax.random.split(key, 10)

    def lin(kw, kb, fan_in, fan_out):
        # weight stored [in, out]; bias stored [1, out]
        scale = 1.0 / jnp.sqrt(fan_in)
        w = jax.random.uniform(kw, (fan_in, fan_out), jnp.float32, -scale, scale)
        b = jax.random.uniform(kb, (1, fan_out), jnp.float32, -scale, scale)
        return w, b

    w1, b1 = lin(ks[0], ks[1], input_dim, HIDDEN)
    w21, b21 = lin(ks[2], ks[3], HIDDEN, LATENT)
    w22, b22 = lin(ks[4], ks[5], HIDDEN, LATENT)
    w3, b3 = lin(ks[6], ks[7], LATENT, HIDDEN)
    w4, b4 = lin(ks[8], ks[9], HIDDEN, input_dim)
    return dict(w1=w1, b1=b1, w21=w21, b21=b21, w22=w22, b22=b22,
                w3=w3, b3=b3, w4=w4, b4=b4)


def vae_reference(x, eps, p):
    """Pure-JAX f32 reference of the PyTorch forward."""
    h1 = jnp.maximum(x @ p["w1"] + p["b1"], 0.0)
    mu = h1 @ p["w21"] + p["b21"]
    logvar = h1 @ p["w22"] + p["b22"]
    z = mu + eps * jnp.exp(0.5 * logvar)
    h3 = jnp.maximum(z @ p["w3"] + p["b3"], 0.0)
    recon = jnp.tanh(h3 @ p["w4"] + p["b4"])
    return recon, mu, logvar


if __name__ == "__main__":
    key = jax.random.PRNGKey(0)
    k_param, k_x, k_eps = jax.random.split(key, 3)

    B = 512   # two 256-row grid steps: exercises batch grid, resident weights, 2 TCs on v7x
    params = init_params(k_param, INPUT_DIM)
    packed = pack_params(params)          # one-time concat + bf16 cast (hoisted out of fwd)
    x = jax.random.normal(k_x, (B, INPUT_DIM), jnp.float32)
    # eps for the reparameterization trick is drawn outside the kernel
    # (deterministic stand-in for torch.randn_like).
    eps = jax.random.normal(k_eps, (B, LATENT), jnp.float32)

    fwd = jax.jit(vae_forward, static_argnames=("tb",))
    recon, mu, logvar = jax.block_until_ready(fwd(x, eps, packed, tb=256))

    r_ref, mu_ref, lv_ref = vae_reference(x, eps, params)
    assert recon.shape == (B, INPUT_DIM)
    assert mu.shape == (B, LATENT) and logvar.shape == (B, LATENT)
    # bf16 MXU operands with f32 accumulation -> loosened tolerance vs f32 reference
    assert jnp.allclose(recon, r_ref, atol=3e-2, rtol=3e-2)
    assert jnp.allclose(mu, mu_ref, atol=3e-2, rtol=3e-2)
    assert jnp.allclose(logvar, lv_ref, atol=3e-2, rtol=3e-2)

    print("KERNEL_OK")
</pallas_src>

<mosaic_0001>
module attributes {stable_mosaic.version = 11 : i64} {
  func.func @vae_kernel(%arg0: i32, %arg1: memref<256x32xf32, #tpu.memory_space<vmem>>, %arg2: memref<256x40xf32, #tpu.memory_space<vmem>>, %arg3: memref<32x400xbf16, #tpu.memory_space<vmem>>, %arg4: memref<1x400xf32, #tpu.memory_space<vmem>>, %arg5: memref<400x40xbf16, #tpu.memory_space<vmem>>, %arg6: memref<1x40xf32, #tpu.memory_space<vmem>>, %arg7: memref<40x400xbf16, #tpu.memory_space<vmem>>, %arg8: memref<1x400xf32, #tpu.memory_space<vmem>>, %arg9: memref<400x32xbf16, #tpu.memory_space<vmem>>, %arg10: memref<1x32xf32, #tpu.memory_space<vmem>>, %arg11: memref<256x128xf32, #tpu.memory_space<vmem>>) attributes {dimension_semantics = [#tpu.dimension_semantics<parallel>], iteration_bounds = array<i64: 2>, scalar_prefetch = 0 : i64, scratch_operands = 0 : i64, tpu.core_type = #tpu.core_type<tc>, window_params = [{transform_indices = @transform_0, window_bounds = array<i64: 256, 32>}, {transform_indices = @transform_1, window_bounds = array<i64: 256, 40>}, {pipeline_mode = #tpu.pipeline_mode<synchronous>, transform_indices = @transform_2, window_bounds = array<i64: 32, 400>}, {pipeline_mode = #tpu.pipeline_mode<synchronous>, transform_indices = @transform_3, window_bounds = array<i64: 1, 400>}, {pipeline_mode = #tpu.pipeline_mode<synchronous>, transform_indices = @transform_4, window_bounds = array<i64: 400, 40>}, {pipeline_mode = #tpu.pipeline_mode<synchronous>, transform_indices = @transform_5, window_bounds = array<i64: 1, 40>}, {pipeline_mode = #tpu.pipeline_mode<synchronous>, transform_indices = @transform_6, window_bounds = array<i64: 40, 400>}, {pipeline_mode = #tpu.pipeline_mode<synchronous>, transform_indices = @transform_7, window_bounds = array<i64: 1, 400>}, {pipeline_mode = #tpu.pipeline_mode<synchronous>, transform_indices = @transform_8, window_bounds = array<i64: 400, 32>}, {pipeline_mode = #tpu.pipeline_mode<synchronous>, transform_indices = @transform_9, window_bounds = array<i64: 1, 32>}, {transform_indices = @transform_10, window_bounds = array<i64: 256, 128>}]} {
    %c0 = arith.constant 0 : index
    %c0_0 = arith.constant 0 : index
    %0 = vector.load %arg1[%c0, %c0_0] : memref<256x32xf32, #tpu.memory_space<vmem>>, vector<256x32xf32>
    %1 = arith.truncf %0 : vector<256x32xf32> to vector<256x32xbf16>
    %c0_1 = arith.constant 0 : index
    %c0_2 = arith.constant 0 : index
    %2 = vector.load %arg3[%c0_1, %c0_2] : memref<32x400xbf16, #tpu.memory_space<vmem>>, vector<32x400xbf16>
    %cst = arith.constant dense<0.000000e+00> : vector<256x400xf32>
    %3 = tpu.matmul %1, %2, %cst {dimension_numbers = #tpu.dot_dimension_numbers<[1], [0], [0], [1], [0, 0, 1, 1], [], []>} : vector<256x32xbf16>, vector<32x400xbf16>, vector<256x400xf32> -> vector<256x400xf32>
    %c0_3 = arith.constant 0 : index
    %c0_4 = arith.constant 0 : index
    %4 = vector.load %arg4[%c0_3, %c0_4] : memref<1x400xf32, #tpu.memory_space<vmem>>, vector<1x400xf32>
    %5 = vector.broadcast %4 : vector<1x400xf32> to vector<256x400xf32>
    %6 = arith.addf %3, %5 : vector<256x400xf32>
    %cst_5 = arith.constant 0.000000e+00 : f32
    %7 = vector.broadcast %cst_5 : f32 to vector<256x400xf32>
    %8 = arith.maximumf %6, %7 : vector<256x400xf32>
    %9 = arith.truncf %8 : vector<256x400xf32> to vector<256x400xbf16>
    %c0_6 = arith.constant 0 : index
    %c0_7 = arith.constant 0 : index
    %10 = vector.load %arg5[%c0_6, %c0_7] : memref<400x40xbf16, #tpu.memory_space<vmem>>, vector<400x40xbf16>
    %cst_8 = arith.constant dense<0.000000e+00> : vector<256x40xf32>
    %11 = tpu.matmul %9, %10, %cst_8 {dimension_numbers = #tpu.dot_dimension_numbers<[1], [0], [0], [1], [0, 0, 1, 1], [], []>} : vector<256x400xbf16>, vector<400x40xbf16>, vector<256x40xf32> -> vector<256x40xf32>
    %c0_9 = arith.constant 0 : index
    %c0_10 = arith.constant 0 : index
    %12 = vector.load %arg6[%c0_9, %c0_10] : memref<1x40xf32, #tpu.memory_space<vmem>>, vector<1x40xf32>
    %13 = vector.broadcast %12 : vector<1x40xf32> to vector<256x40xf32>
    %14 = arith.addf %11, %13 : vector<256x40xf32>
    %15 = tpu.iota {dimensions = array<i32: 1>} : vector<256x40xi32>
    %c20_i32 = arith.constant 20 : i32
    %16 = vector.broadcast %c20_i32 : i32 to vector<256x40xi32>
    %17 = arith.cmpi slt, %15, %16 : vector<256x40xi32>
    %cst_11 = arith.constant 0.000000e+00 : f32
    %18 = vector.broadcast %cst_11 : f32 to vector<256x40xf32>
    %19 = arith.select %17, %14, %18 : vector<256x40xi1>, vector<256x40xf32>
    %c0_12 = arith.constant 0 : index
    %c0_13 = arith.constant 0 : index
    %20 = vector.load %arg2[%c0_12, %c0_13] : memref<256x40xf32, #tpu.memory_space<vmem>>, vector<256x40xf32>
    %cst_14 = arith.constant 5.000000e-01 : f32
    %21 = vector.broadcast %cst_14 : f32 to vector<256x40xf32>
    %22 = arith.mulf %21, %14 : vector<256x40xf32>
    %23 = math.exp %22 : vector<256x40xf32>
    %24 = arith.mulf %20, %23 : vector<256x40xf32>
    %25 = arith.addf %19, %24 : vector<256x40xf32>
    %26 = arith.truncf %25 : vector<256x40xf32> to vector<256x40xbf16>
    %c0_15 = arith.constant 0 : index
    %c0_16 = arith.constant 0 : index
    %27 = vector.load %arg7[%c0_15, %c0_16] : memref<40x400xbf16, #tpu.memory_space<vmem>>, vector<40x400xbf16>
    %cst_17 = arith.constant dense<0.000000e+00> : vector<256x400xf32>
    %28 = tpu.matmul %26, %27, %cst_17 {dimension_numbers = #tpu.dot_dimension_numbers<[1], [0], [0], [1], [0, 0, 1, 1], [], []>} : vector<256x40xbf16>, vector<40x400xbf16>, vector<256x400xf32> -> vector<256x400xf32>
    %c0_18 = arith.constant 0 : index
    %c0_19 = arith.constant 0 : index
    %29 = vector.load %arg8[%c0_18, %c0_19] : memref<1x400xf32, #tpu.memory_space<vmem>>, vector<1x400xf32>
    %30 = vector.broadcast %29 : vector<1x400xf32> to vector<256x400xf32>
    %31 = arith.addf %28, %30 : vector<256x400xf32>
    %cst_20 = arith.constant 0.000000e+00 : f32
    %32 = vector.broadcast %cst_20 : f32 to vector<256x400xf32>
    %33 = arith.maximumf %31, %32 : vector<256x400xf32>
    %34 = arith.truncf %33 : vector<256x400xf32> to vector<256x400xbf16>
    %c0_21 = arith.constant 0 : index
    %c0_22 = arith.constant 0 : index
    %35 = vector.load %arg9[%c0_21, %c0_22] : memref<400x32xbf16, #tpu.memory_space<vmem>>, vector<400x32xbf16>
    %cst_23 = arith.constant dense<0.000000e+00> : vector<256x32xf32>
    %36 = tpu.matmul %34, %35, %cst_23 {dimension_numbers = #tpu.dot_dimension_numbers<[1], [0], [0], [1], [0, 0, 1, 1], [], []>} : vector<256x400xbf16>, vector<400x32xbf16>, vector<256x32xf32> -> vector<256x32xf32>
    %c0_24 = arith.constant 0 : index
    %c0_25 = arith.constant 0 : index
    %37 = vector.load %arg10[%c0_24, %c0_25] : memref<1x32xf32, #tpu.memory_space<vmem>>, vector<1x32xf32>
    %38 = vector.broadcast %37 : vector<1x32xf32> to vector<256x32xf32>
    %39 = arith.addf %36, %38 : vector<256x32xf32>
    %40 = math.tanh %39 : vector<256x32xf32>
    %cst_26 = arith.constant 0.000000e+00 : f32
    %41 = vector.broadcast %cst_26 : f32 to vector<256x56xf32>
    %42 = tpu.concatenate %40, %14, %41 in 1 : vector<256x32xf32>, vector<256x40xf32>, vector<256x56xf32> -> vector<256x128xf32>
    %c0_27 = arith.constant 0 : index
    %c0_28 = arith.constant 0 : index
    %43 = vector.load %arg11[%c0_27, %c0_28] : memref<256x128xf32, #tpu.memory_space<vmem>>, vector<256x128xf32>
    tpu.vector_store %arg11[%c0_27, %c0_28], %42 {strides = array<i32>} : memref<256x128xf32, #tpu.memory_space<vmem>>, vector<256x128xf32>,
    return
  }
  func.func @transform_0(%arg0: i32) -> (i32, i32) {
    %c0_i32 = arith.constant 0 : i32
    %c0_i32_0 = arith.constant 0 : i32
    return %arg0, %c0_i32 : i32, i32
  }
  func.func @transform_1(%arg0: i32) -> (i32, i32) {
    %c0_i32 = arith.constant 0 : i32
    %c0_i32_0 = arith.constant 0 : i32
    return %arg0, %c0_i32 : i32, i32
  }
  func.func @transform_2(%arg0: i32) -> (i32, i32) {
    %c0_i32 = arith.constant 0 : i32
    %c0_i32_0 = arith.constant 0 : i32
    %c0_i32_1 = arith.constant 0 : i32
    return %c0_i32, %c0_i32_0 : i32, i32
  }
  func.func @transform_3(%arg0: i32) -> (i32, i32) {
    %c0_i32 = arith.constant 0 : i32
    %c0_i32_0 = arith.constant 0 : i32
    %c0_i32_1 = arith.constant 0 : i32
    return %c0_i32, %c0_i32_0 : i32, i32
  }
  func.func @transform_4(%arg0: i32) -> (i32, i32) {
    %c0_i32 = arith.constant 0 : i32
    %c0_i32_0 = arith.constant 0 : i32
    %c0_i32_1 = arith.constant 0 : i32
    return %c0_i32, %c0_i32_0 : i32, i32
  }
  func.func @transform_5(%arg0: i32) -> (i32, i32) {
    %c0_i32 = arith.constant 0 : i32
    %c0_i32_0 = arith.constant 0 : i32
    %c0_i32_1 = arith.constant 0 : i32
    return %c0_i32, %c0_i32_0 : i32, i32
  }
  func.func @transform_6(%arg0: i32) -> (i32, i32) {
    %c0_i32 = arith.constant 0 : i32
    %c0_i32_0 = arith.constant 0 : i32
    %c0_i32_1 = arith.constant 0 : i32
    return %c0_i32, %c0_i32_0 : i32, i32
  }
  func.func @transform_7(%arg0: i32) -> (i32, i32) {
    %c0_i32 = arith.constant 0 : i32
    %c0_i32_0 = arith.constant 0 : i32
    %c0_i32_1 = arith.constant 0 : i32
    return %c0_i32, %c0_i32_0 : i32, i32
  }
  func.func @transform_8(%arg0: i32) -> (i32, i32) {
    %c0_i32 = arith.constant 0 : i32
    %c0_i32_0 = arith.constant 0 : i32
    %c0_i32_1 = arith.constant 0 : i32
    return %c0_i32, %c0_i32_0 : i32, i32
  }
  func.func @transform_9(%arg0: i32) -> (i32, i32) {
    %c0_i32 = arith.constant 0 : i32
    %c0_i32_0 = arith.constant 0 : i32
    %c0_i32_1 = arith.constant 0 : i32
    return %c0_i32, %c0_i32_0 : i32, i32
  }
  func.func @transform_10(%arg0: i32) -> (i32, i32) {
    %c0_i32 = arith.constant 0 : i32
    %c0_i32_0 = arith.constant 0 : i32
    return %arg0, %c0_i32 : i32, i32
  }
}

</mosaic_0001>

<bundles_post_ra>
// kernel: vae_forward.1
= control target key start
LH: loop header
LB: loop body
LE: loop exit
PB: predicated region body
PF: predicated region fallthrough
CT: control target
= control target key end

     0   :  { %s4265_s13 = smov 0   ;;  %s5472_s0 = inlined_call_operand.vmem [shape: f32[512,32], index: 0, kind: input, shape index: {}]   ;;  %s5473_s1 = inlined_call_operand.vmem [shape: f32[512,40], index: 1, kind: input, shape index: {}]   ;;  %s5474_s2 = inlined_call_operand.vmem [shape: bf16[32,400], index: 2, kind: input, shape index: {}]   ;;  %s5475_s3 = inlined_call_operand.vmem [shape: f32[1,400], index: 3, kind: input, shape index: {}]   ;;  %s5476_s4 = inlined_call_operand.vmem [shape: bf16[400,40], index: 4, kind: input, shape index: {}]   ;;  %s5477_s5 = inlined_call_operand.vmem [shape: f32[1,40], index: 5, kind: input, shape index: {}]   ;;  %s5478_s6 = inlined_call_operand.vmem [shape: bf16[40,400], index: 6, kind: input, shape index: {}]   ;;  %s5479_s7 = inlined_call_operand.vmem [shape: f32[1,400], index: 7, kind: input, shape index: {}]   ;;  %s5480_s8 = inlined_call_operand.vmem [shape: bf16[400,32], index: 8, kind: input, shape index: {}]   ;;  %s5481_s9 = inlined_call_operand.vmem [shape: f32[1,32], index: 9, kind: input, shape index: {}]   ;;  %s5482_s10 = inlined_call_operand.vmem [shape: f32[512,128], index: 10, kind: output, shape index: {}]  }
   0x1 LB: > { %s3576_s14 = sadd.s32 4294967295, %s4206_s13   ;;  %p3580_p0 = scmp.ge.s32.totalorder %s4206_s13, 1  ;;  %s4206_s13 = sphi %s4265_s13, %s20_s13  }
   0x2   : > { %p324_p1 = scmp.lt.s32.totalorder %s4206_s13, 3 }
   0x4   : > { %p325_p2 = pnand %p3580_p0, %p324_p1 }
   0x5   : > { %s3581_s17 = sshll.u32 (!%p325_p2), %s3576_s14, 5  ;;  %s4209_s23 = smov (!%p325_p2), 32  }
   0x6   : > { %328 = sbr.rel (%p325_p2) target bundleno = 1005 (0x3ed), region = 60  ;;  %p368_p3 = scmp.lt.s32.totalorder (!%p325_p2), %s3581_s17, 63 }
   0xb   : > { %v3993_v0 = vld [vmem:[%s5474_s2 + $0x24] ss:$16 sps:$4 sm:$0xff]   ;;  %v3995_v1 = vld [vmem:[%s5474_s2 + $0x2c] ss:$16 sps:$4 sm:$0xff]   ;;  %v4208_v2 = vmov 0   ;;  %s5484_s17 = smov (!%p368_p3, %s3581_s17), 63 }
   0xc   : > { %585 = vmatprep.mubr.bf16.mxu0 %v4208_v2  ;;  %778 = vmatprep.mubr.bf16.mxu1 %v4208_v2  ;;  %v3997_v3 = vld [vmem:[%s5474_s2 + $0x20] ss:$16 sps:$4 sm:$0xff]   ;;  %v3998_v4 = vld [vmem:[%s5474_s2 + $0x28] ss:$16 sps:$4 sm:$0xff]   ;;  %v3999_v5 = vld [vmem:[%s5474_s2 + $0x4] ss:$16 sps:$4 sm:$0xff]  }
   0xd   : > { %565 = vmatprep.subr.bf16.mxu0 %v3993_v0  ;;  %758 = vmatprep.subr.bf16.mxu1 %v3995_v1  ;;  %v4001_v6 = vld [vmem:[%s5474_s2 + $0xc] ss:$16 sps:$4 sm:$0xff]   ;;  %v4003_v7 = vld [vmem:[%s5474_s2] ss:$16 sps:$4 sm:$0xff]   ;;  %v4004_v8 = vld [vmem:[%s5474_s2 + $0x8] ss:$16 sps:$4 sm:$0xff]  }
   0xe   : > { %566 = vmatpush1.bf16.msra.mxu0 %v3997_v3  ;;  %759 = vmatpush1.bf16.msra.mxu1 %v3998_v4  ;;  %s4299_s12 = sshll.u32 %s5484_s17, 3  ;;  %v4005_v9 = vld [vmem:[%s5476_s4 + $0x78] sm:$0xff]   ;;  %vm504_vm0 = vcmask 261120   ;;  %v4008_v18 = vld [vmem:[%s5476_s4 + $0x70] sm:$0xff]   ;;  %v4011_v23 = vld [vmem:[%s5476_s4 + $0x68] sm:$0xff]   ;;  %vm2083_vm1 = vcmask 1043456  }
   0xf   : > { %567 = vmatprep.subr.bf16.mxu0 %v3999_v5  ;;  %760 = vmatprep.subr.bf16.mxu1 %v4001_v6  ;;  %s4308_s19 = scalar_lea.vmem %s5472_s0, %s4299_s12  ;;  %v4006_v15 = vld [vmem:[%s5476_s4 + $0x38] sm:$0xff]   ;;  %v4009_v19 = vld [vmem:[%s5476_s4 + $0x30] sm:$0xff]   ;;  %v4012_v24 = vld [vmem:[%s5476_s4 + $0x28] sm:$0xff]   ;;  %vm1338_vm2 = vcmask 130048   ;;  %s4729_s26 = scalar_lea.vmem %s5473_s1, %s4299_s12  ;;  %vm2034_vm4 = vcmask 326656   ;;  %vm3443_vm5 = vcmask 588800  }
  0x10   : > { %v386_v10 = vld [vmem:[%s4308_s19] sm:$0xff]  ;;  %v387_v11 = vld [vmem:[%s4308_s19 + $0x8] sm:$0xff]  ;;  %v388_v13 = vld [vmem:[%s4308_s19 + $0x10] sm:$0xff]  ;;  %s5343_s15 = scalar_lea.vmem %s5482_s10, %s4299_s12 }
  0x11   : > { %v418_v12 = vpack.c.bf16 %v387_v11, %v386_v10  ;;  %v389_v14 = vld [vmem:[%s4308_s19 + $0x18] sm:$0xff]  ;;  %v4010_v20 = vld [vmem:[%s5476_s4 + $0xb0] sm:$0xff]   ;;  %v390_v21 = vld [vmem:[%s4308_s19 + $0x20] sm:$0xff] }
  0x12   : > { %568 = vmatpush1.bf16.msra.mxu0 %v4003_v7  ;;  %761 = vmatpush1.bf16.msra.mxu1 %v4004_v8  ;;  %v419_v16 = vpack.c.bf16 %v389_v14, %v388_v13  ;;  %v4007_v17 = vld [vmem:[%s5476_s4 + $0xb8] sm:$0xff]   ;;  %v391_v22 = vld [vmem:[%s4308_s19 + $0x28] sm:$0xff]  ;;  %v4014_v27 = vld [vmem:[%s5476_s4 + $0x60] sm:$0xff]  }
  0x13   : > { %3759 = vmatprep.subr.bf16.mxu0 %v4005_v9  ;;  %1548 = vmatprep.subr.bf16.mxu1 %v4208_v2  ;;  %v420_v25 = vpack.c.bf16 %v391_v22, %v390_v21  ;;  %v4013_v26 = vld [vmem:[%s5476_s4 + $0xa8] sm:$0xff]   ;;  %v392_v28 = vld [vmem:[%s4308_s19 + $0x30] sm:$0xff]  ;;  %v393_v29 = vld [vmem:[%s4308_s19 + $0x38] sm:$0xff] }
  0x14   : > { %v4015_v30 = vld [vmem:[%s5476_s4 + $0x20] sm:$0xff]   ;;  %v4017_v32 = vld [vmem:[%s5476_s4 + $0x58] sm:$0xff]   ;;  %v421_v35 = vpack.c.bf16 %v393_v29, %v392_v28  ;;  %v4020_v36 = vld [vmem:[%s5476_s4 + $0x90] sm:$0xff]  }
  0x15   : > { %3595 = vmatmul.mubr.msk.bf16.vlgmr.msra.gmra.mxu0 %vm504_vm0, %v418_v12  ;;  %3611 = vmatmul.mubr.msk.bf16.vlgmr.msra.gmra.mxu1 %vm504_vm0, %v418_v12  ;;  %v4016_v31 = vld [vmem:[%s5476_s4 + $0xa0] sm:$0xff]   ;;  %v4018_v33 = vld [vmem:[%s5476_s4 + $0x98] sm:$0xff]   ;;  %v4021_v37 = vld [vmem:[%s5476_s4 + $0x50] sm:$0xff]  }
  0x16   : > { %595 = vmatprep.mubr.bf16.mxu0 %v4208_v2  ;;  %788 = vmatprep.mubr.bf16.mxu1 %v4208_v2  ;;  %v4019_v34 = vld [vmem:[%s5476_s4 + $0x18] sm:$0xff]   ;;  %v394_v38 = vld [vmem:[%s4308_s19 + $0x40] sm:$0xff]  ;;  %v4022_v39 = vld [vmem:[%s5476_s4 + $0x10] sm:$0xff]  }
  0x17   : > { %3760 = vmatpush3.bf16.msra.mxu0 %v4006_v15  ;;  %1549 = vmatpush1.bf16.msra.mxu1 %v4007_v17  ;;  %v4024_v40 = vld [vmem:[%s5476_s4 + $0x48] sm:$0xff]   ;;  %v4027_v45 = vld [vmem:[%s5476_s4 + $0x40] sm:$0xff]   ;;  %v396_v48 = vld [vmem:[%s4308_s19 + $0x50] sm:$0xff] }
  0x18   : > { %1550 = vmatprep.subr.bf16.mxu1 %v4208_v2  ;;  %3761 = vmatprep.subr.bf16.mxu0 %v4008_v18  ;;  %v395_v41 = vld [vmem:[%s4308_s19 + $0x48] sm:$0xff]  ;;  %v4026_v46 = vld [vmem:[%s5476_s4 + $0x80] sm:$0xff]   ;;  %v397_v49 = vld [vmem:[%s4308_s19 + $0x58] sm:$0xff] }
  0x19   : > { %v4023_v42 = vld [vmem:[%s5476_s4 + $0x88] sm:$0xff]   ;;  %v422_v44 = vpack.c.bf16 %v395_v41, %v394_v38  ;;  %v4028_v47 = vld [vmem:[%s5476_s4] sm:$0xff]   ;;  %v423_v50 = vpack.c.bf16 %v397_v49, %v396_v48  ;;  %v400_v54 = vld [vmem:[%s4308_s19 + $0x70] sm:$0xff] }
  0x1a   : > { %v4025_v43 = vld [vmem:[%s5476_s4 + $0x8] sm:$0xff]   ;;  %v398_v51 = vld [vmem:[%s4308_s19 + $0x60] sm:$0xff]  ;;  %v401_v55 = vld [vmem:[%s4308_s19 + $0x78] sm:$0xff] }
  0x1b   : > { %1551 = vmatpush1.bf16.msra.mxu1 %v4010_v20  ;;  %3762 = vmatpush3.bf16.msra.mxu0 %v4009_v19  ;;  %v399_v52 = vld [vmem:[%s4308_s19 + $0x68] sm:$0xff]  ;;  %v425_v56 = vpack.c.bf16 %v401_v55, %v400_v54  ;;  %v402_v57 = vld [vmem:[%s4308_s19 + $0x80] sm:$0xff]  ;;  %v404_v60 = vld [vmem:[%s4308_s19 + $0x90] sm:$0xff]  ;;  %v444_v19 = vlaneseq }
  0x1c   : > { %1552 = vmatprep.subr.bf16.mxu1 %v4208_v2  ;;  %3763 = vmatprep.subr.bf16.mxu0 %v4011_v23  ;;  %v424_v53 = vpack.c.bf16 %v399_v52, %v398_v51  ;;  %v403_v58 = vld [vmem:[%s4308_s19 + $0x88] sm:$0xff]  ;;  %v405_v61 = vld [vmem:[%s4308_s19 + $0x98] sm:$0xff]  ;;  %v406_v63 = vld [vmem:[%s4308_s19 + $0xa0] sm:$0xff] }
  0x1d   : > { %3596 = vmatmul.mubr.msk.bf16.gmra.mxu0 %vm504_vm0, %v419_v16  ;;  %3612 = vmatmul.mubr.msk.bf16.gmra.mxu1 %vm504_vm0, %v419_v16  ;;  %v426_v59 = vpack.c.bf16 %v403_v58, %v402_v57  ;;  %v427_v62 = vpack.c.bf16 %v405_v61, %v404_v60  ;;  %v407_v0 = vld [vmem:[%s4308_s19 + $0xa8] sm:$0xff]  ;;  %v4029_v1 = vld [vmem:[%s5476_s4 + $0xc0] sm:$0xff]   ;;  %v408_v4 = vld [vmem:[%s4308_s19 + $0xb0] sm:$0xff]  ;;  %v4489_v22 = vshrl.u32 %v444_v19, 7 }
  0x1e   : > { %605 = vmatprep.mubr.bf16.mxu0 %v4208_v2  ;;  %798 = vmatprep.mubr.bf16.mxu1 %v4208_v2  ;;  %v428_v3 = vpack.c.bf16 %v407_v0, %v406_v63  ;;  %v409_v5 = vld [vmem:[%s4308_s19 + $0xb8] sm:$0xff]  ;;  %v410_v7 = vld [vmem:[%s4308_s19 + $0xc0] sm:$0xff]  ;;  %v411_v8 = vld [vmem:[%s4308_s19 + $0xc8] sm:$0xff] }
  0x1f   : > { %3764 = vmatpush3.bf16.msra.mxu0 %v4012_v24  ;;  %1553 = vmatpush1.bf16.msra.mxu1 %v4013_v26  ;;  %v429_v6 = vpack.c.bf16 %v409_v5, %v408_v4  ;;  %v430_v9 = vpack.c.bf16 %v411_v8, %v410_v7  ;;  %v412_v10 = vld [vmem:[%s4308_s19 + $0xd0] sm:$0xff]  ;;  %v413_v11 = vld [vmem:[%s4308_s19 + $0xd8] sm:$0xff]  ;;  %v414_v13 = vld [vmem:[%s4308_s19 + $0xe0] sm:$0xff]  ;;  %v454_v23 = vsub.s32 2, %v4489_v22  ;;  %v458_v24 = vsub.s32 3, %v4489_v22 }
  0x20   : > { %3765 = vmatprep.subr.bf16.mxu0 %v4014_v27  ;;  %1554 = vmatprep.subr.bf16.mxu1 %v4208_v2  ;;  %v431_v12 = vpack.c.bf16 %v413_v11, %v412_v10  ;;  %v415_v14 = vld [vmem:[%s4308_s19 + $0xe8] sm:$0xff]  ;;  %v416_v16 = vld [vmem:[%s4308_s19 + $0xf0] sm:$0xff]  ;;  %v417_v17 = vld [vmem:[%s4308_s19 + $0xf8] sm:$0xff]  ;;  %v450_v27 = vsub.s32 1, %v4489_v22  ;;  %v446_v29 = vsub.s32 0, %v4489_v22 }
  0x21   : > { %v432_v15 = vpack.c.bf16 %v415_v14, %v414_v13  ;;  %v433_v18 = vpack.c.bf16 %v417_v17, %v416_v16  ;;  %v1960_v20 = vld [vmem:[%s5478_s6 + $0x40] sm:$0xff] }
  0x22   : > { %v3678_v21 = vcombine.high %v1960_v20, %v1960_v20  ;;  %v442_v26 = vld [vmem:[%s5475_s3] sm:$0xf]  ;;  %v4036_v11 = vld [vmem:[%s5478_s6 + $0x24] ss:$16 sps:$4 sm:$0xff]  }
  0x23   : > { %3766 = vmatpush3.bf16.msra.mxu0 %v4015_v30  ;;  %1555 = vmatpush1.bf16.msra.mxu1 %v4016_v31  ;;  %v4504_v30 = vrot.slane %v442_v26, %v454_v23  ;;  %v4508_v31 = vrot.slane %v442_v26, %v458_v24 }
  0x24   : > { %1556 = vmatprep.subr.bf16.mxu1 %v4208_v2  ;;  %3767 = vmatprep.subr.bf16.mxu0 %v4017_v32 }
  0x25   : > { %3597 = vmatmul.mubr.msk.bf16.gmra.mxu0 %vm504_vm0, %v420_v25  ;;  %3613 = vmatmul.mubr.msk.bf16.gmra.mxu1 %vm504_vm0, %v420_v25  ;;  %v1961_v25 = vld [vmem:[%s5478_s6 + $0x48] sm:$0xff] }
  0x26   : > { %615 = vmatprep.mubr.bf16.mxu0 %v4208_v2  ;;  %808 = vmatprep.mubr.bf16.mxu1 %v4208_v2  ;;  %v3680_v28 = vcombine.high %v1961_v25, %v1961_v25  ;;  %v3679_v57 = vcombine.low %v1961_v25, %v1961_v25 }
  0x27   : > { %1557 = vmatpush1.bf16.msra.mxu1 %v4018_v33  ;;  %3768 = vmatpush3.bf16.msra.mxu0 %v4019_v34  ;;  %v4513_v34 = vrot.slane %v442_v26, %v450_v27 }
  0x28   : > { %1558 = vmatprep.subr.bf16.mxu1 %v4208_v2  ;;  %3769 = vmatprep.subr.bf16.mxu0 %v4021_v37  ;;  %v2091_v10 = vsel %vm2083_vm1, %v3679_v57, 0 }
  0x2b   : > { %1559 = vmatpush1.bf16.msra.mxu1 %v4020_v36  ;;  %3770 = vmatpush3.bf16.msra.mxu0 %v4022_v39 }
  0x2c   : > { %1560 = vmatprep.subr.bf16.mxu1 %v4208_v2  ;;  %3771 = vmatprep.subr.bf16.mxu0 %v4024_v40 }
  0x2d   : > { %3598 = vmatmul.mubr.msk.bf16.gmra.mxu0 %vm504_vm0, %v421_v35  ;;  %3614 = vmatmul.mubr.msk.bf16.gmra.mxu1 %vm504_vm0, %v421_v35  ;;  %v4517_v35 = vrot.slane %v442_v26, %v446_v29 }
  0x2e   : > { %625 = vmatprep.mubr.bf16.mxu0 %v4208_v2  ;;  %818 = vmatprep.mubr.bf16.mxu1 %v4208_v2 }
  0x2f   : > { %1561 = vmatpush1.bf16.msra.mxu1 %v4023_v42  ;;  %3772 = vmatpush3.bf16.msra.mxu0 %v4025_v43 }
  0x30   : > { %1562 = vmatprep.subr.bf16.mxu1 %v4208_v2  ;;  %3773 = vmatprep.subr.bf16.mxu0 %v4027_v45 }
  0x33   : > { %1563 = vmatpush1.bf16.msra.mxu1 %v4026_v46  ;;  %3774 = vmatpush3.bf16.msra.mxu0 %v4028_v47 }
  0x34   : > { %1578 = vmatprep.subr.bf16.mxu1 %v4208_v2  ;;  %3681 = vmatprep.subr.msk.bf16.mxu0 %vm2083_vm1, %v3678_v21 }
  0x35   : > { %3599 = vmatmul.mubr.msk.bf16.gmra.mxu0 %vm504_vm0, %v422_v44  ;;  %3615 = vmatmul.mubr.msk.bf16.gmra.mxu1 %vm504_vm0, %v422_v44 }
  0x36   : > { %635 = vmatprep.mubr.bf16.mxu0 %v4208_v2  ;;  %828 = vmatprep.mubr.bf16.mxu1 %v4208_v2 }
  0x37   : > { %1579 = vmatpush2.bf16.msra.mxu1 %v4029_v1 }
  0x38   : > { %3698 = vmatprep.subr.msk.bf16.mxu1 %vm2083_vm1, %v3680_v28 }
  0x3d   : > { %3600 = vmatmul.mubr.msk.bf16.gmra.mxu0 %vm504_vm0, %v423_v50  ;;  %3616 = vmatmul.mubr.msk.bf16.gmra.mxu1 %vm504_vm0, %v423_v50 }
  0x3e   : > { %645 = vmatprep.mubr.bf16.mxu0 %v4208_v2  ;;  %838 = vmatprep.mubr.bf16.mxu1 %v4208_v2 }
  0x45   : > { %3601 = vmatmul.mubr.msk.bf16.gmra.mxu0 %vm504_vm0, %v424_v53  ;;  %3617 = vmatmul.mubr.msk.bf16.gmra.mxu1 %vm504_vm0, %v424_v53 }
  0x46   : > { %655 = vmatprep.mubr.bf16.mxu0 %v4208_v2  ;;  %848 = vmatprep.mubr.bf16.mxu1 %v4208_v2 }
  0x4d   : > { %3602 = vmatmul.mubr.msk.bf16.gmra.mxu0 %vm504_vm0, %v425_v56  ;;  %3618 = vmatmul.mubr.msk.bf16.gmra.mxu1 %vm504_vm0, %v425_v56  ;;  %v3677_v56 = vcombine.low %v1960_v20, %v1960_v20 }
  0x4e   : > { %665 = vmatprep.mubr.bf16.mxu0 %v4208_v2  ;;  %858 = vmatprep.mubr.bf16.mxu1 %v4208_v2 }
  0x55   : > { %3603 = vmatmul.mubr.msk.bf16.gmra.mxu0 %vm504_vm0, %v426_v59  ;;  %3619 = vmatmul.mubr.msk.bf16.gmra.mxu1 %vm504_vm0, %v426_v59 }
  0x56   : > { %675 = vmatprep.mubr.bf16.mxu0 %v4208_v2  ;;  %868 = vmatprep.mubr.bf16.mxu1 %v4208_v2 }
  0x5d   : > { %3604 = vmatmul.mubr.msk.bf16.gmra.mxu0 %vm504_vm0, %v427_v62  ;;  %3620 = vmatmul.mubr.msk.bf16.gmra.mxu1 %vm504_vm0, %v427_v62 }
  0x5e   : > { %685 = vmatprep.mubr.bf16.mxu0 %v4208_v2  ;;  %878 = vmatprep.mubr.bf16.mxu1 %v4208_v2 }
  0x65   : > { %3605 = vmatmul.mubr.msk.bf16.gmra.mxu0 %vm504_vm0, %v428_v3  ;;  %3621 = vmatmul.mubr.msk.bf16.gmra.mxu1 %vm504_vm0, %v428_v3 }
  0x66   : > { %695 = vmatprep.mubr.bf16.mxu0 %v4208_v2  ;;  %888 = vmatprep.mubr.bf16.mxu1 %v4208_v2 }
  0x6d   : > { %3606 = vmatmul.mubr.msk.bf16.gmra.mxu0 %vm504_vm0, %v429_v6  ;;  %3622 = vmatmul.mubr.msk.bf16.gmra.mxu1 %vm504_vm0, %v429_v6 }
  0x6e   : > { %705 = vmatprep.mubr.bf16.mxu0 %v4208_v2  ;;  %898 = vmatprep.mubr.bf16.mxu1 %v4208_v2 }
  0x75   : > { %3607 = vmatmul.mubr.msk.bf16.gmra.mxu0 %vm504_vm0, %v430_v9  ;;  %3623 = vmatmul.mubr.msk.bf16.gmra.mxu1 %vm504_vm0, %v430_v9  ;;  %v2085_v9 = vsel %vm2083_vm1, %v3677_v56, 0 }
  0x76   : > { %715 = vmatprep.mubr.bf16.mxu0 %v4208_v2  ;;  %908 = vmatprep.mubr.bf16.mxu1 %v4208_v2 }
  0x7d   : > { %3608 = vmatmul.mubr.msk.bf16.gmra.mxu0 %vm504_vm0, %v431_v12  ;;  %3624 = vmatmul.mubr.msk.bf16.gmra.mxu1 %vm504_vm0, %v431_v12  ;;  %v4039_v12 = vld [vmem:[%s5478_s6 + $0x2c] ss:$16 sps:$4 sm:$0xff]  }
  0x7e   : > { %725 = vmatprep.mubr.bf16.mxu0 %v4208_v2  ;;  %918 = vmatprep.mubr.bf16.mxu1 %v4208_v2 }
  0x85   : > { %3609 = vmatmul.mubr.msk.bf16.gmra.mxu0 %vm504_vm0, %v432_v15  ;;  %3625 = vmatmul.mubr.msk.bf16.gmra.mxu1 %vm504_vm0, %v432_v15 }
  0x86   : > { %735 = vmatprep.mubr.bf16.mxu0 %v4208_v2  ;;  %928 = vmatprep.mubr.bf16.mxu1 %v4208_v2 }
  0x8d   : > { %3610 = vmatmul.mubr.msk.bf16.gmra.mxu0 %vm504_vm0, %v433_v18  ;;  %3626 = vmatmul.mubr.msk.bf16.gmra.mxu1 %vm504_vm0, %v433_v18 }
  0xd5   : > { %v587_v32 = vpop.f32.mrf.mxu0  ;;  %v780_v33 = vpop.f32.mrf.mxu1 }
  0xd6   : > { %v781_v36 = vadd.f32 %v780_v33, %v4504_v30  ;;  %v588_v45 = vadd.f32 %v587_v32, %v4517_v35  ;;  %v4034_v32 = vld [vmem:[%s5478_s6 + $0x20] ss:$16 sps:$4 sm:$0xff]  }
  0xd7   : > { %v589_v37 = vpop.f32.mrf.mxu0  ;;  %v782_v38 = vpop.f32.mrf.mxu1 }
  0xd8   : > { %v783_v39 = vadd.f32 %v782_v38, %v4508_v31  ;;  %v590_v42 = vadd.f32 %v589_v37, %v4513_v34  ;;  %v941_v46 = vmax.f32 %v781_v36, 0.0  ;;  %v939_v61 = vmax.f32 %v588_v45, 0.0  ;;  %v4037_v38 = vld [vmem:[%s5478_s6 + $0x28] ss:$16 sps:$4 sm:$0xff]  }
  0xd9   : > { %v591_v40 = vpop.f32.mrf.mxu0  ;;  %v784_v41 = vpop.f32.mrf.mxu1 }
  0xda   : > { %v592_v43 = vadd.f32 %v591_v40, %v4517_v35  ;;  %v785_v44 = vadd.f32 %v784_v41, %v4504_v30  ;;  %v942_v49 = vmax.f32 %v783_v39, 0.0  ;;  %v940_v58 = vmax.f32 %v590_v42, 0.0  ;;  %v4042_v39 = vld [vmem:[%s5478_s6 + $0x4] ss:$16 sps:$4 sm:$0xff]  }
  0xdb   : > { %v593_v47 = vpop.f32.mrf.mxu0  ;;  %v786_v48 = vpop.f32.mrf.mxu1 }
  0xdc   : > { %v945_v50 = vmax.f32 %v785_v44, 0.0  ;;  %v594_v51 = vadd.f32 %v593_v47, %v4513_v34  ;;  %v787_v52 = vadd.f32 %v786_v48, %v4508_v31  ;;  %v943_v53 = vmax.f32 %v592_v43, 0.0 }
  0xdd   : > { %v597_v54 = vpop.f32.mrf.mxu0  ;;  %v790_v55 = vpop.f32.mrf.mxu1 }
  0xde   : > { %v944_v59 = vmax.f32 %v594_v51, 0.0  ;;  %v946_v60 = vmax.f32 %v787_v52, 0.0  ;;  %v1069_v62 = vpack.c.bf16 %v945_v50, %v941_v46  ;;  %v791_v63 = vadd.f32 %v790_v55, %v4504_v30  ;;  %v4040_v51 = vld [vmem:[%s5478_s6] ss:$16 sps:$4 sm:$0xff]  }
  0xdf   : > { %v599_v0 = vpop.f32.mrf.mxu0  ;;  %v792_v1 = vpop.f32.mrf.mxu1  ;;  %v1067_v6 = vpack.c.bf16 %v943_v53, %v939_v61  ;;  %v598_v16 = vadd.f32 %v597_v54, %v4517_v35 }
  0xe0   : > { %v1070_v3 = vpack.c.bf16 %v946_v60, %v942_v49  ;;  %v793_v4 = vadd.f32 %v792_v1, %v4508_v31  ;;  %v1068_v5 = vpack.c.bf16 %v944_v59, %v940_v58  ;;  %v600_v13 = vadd.f32 %v599_v0, %v4513_v34 }
  0xe1   : > { %v601_v7 = vpop.f32.mrf.mxu0  ;;  %v794_v8 = vpop.f32.mrf.mxu1  ;;  %v949_v17 = vmax.f32 %v791_v63, 0.0  ;;  %v947_v43 = vmax.f32 %v598_v16, 0.0 }
  0xe2   : > { %v602_v14 = vadd.f32 %v601_v7, %v4517_v35  ;;  %v795_v15 = vadd.f32 %v794_v8, %v4504_v30  ;;  %1419 = vmatprep.mubr.bf16.mxu0 %v1068_v5  ;;  %3653 = vmatprep.mubr.msk.bf16.mxu1 %vm1338_vm2, %v1070_v3  ;;  %v950_v21 = vmax.f32 %v793_v4, 0.0  ;;  %v948_v40 = vmax.f32 %v600_v13, 0.0 }
  0xe3   : > { %v603_v18 = vpop.f32.mrf.mxu0  ;;  %v796_v20 = vpop.f32.mrf.mxu1  ;;  %1420 = vmatmul.mubr.bf16.vlgmr.msra.gmra.mxu0 %v1067_v6  ;;  %1581 = vmatmul.mubr.bf16.vlgmr.msra.gmra.mxu1 %v1069_v62 }
  0xe4   : > { %v953_v25 = vmax.f32 %v795_v15, 0.0  ;;  %v604_v26 = vadd.f32 %v603_v18, %v4513_v34  ;;  %v797_v28 = vadd.f32 %v796_v20, %v4508_v31  ;;  %2107 = vmatpush1.bf16.msra.mxu0 %v2085_v9  ;;  %2300 = vmatpush1.bf16.msra.mxu1 %v2091_v10  ;;  %v951_v33 = vmax.f32 %v602_v14, 0.0 }
  0xe5   : > { %v607_v36 = vpop.f32.mrf.mxu0  ;;  %v800_v37 = vpop.f32.mrf.mxu1  ;;  %2108 = vmatprep.subr.bf16.mxu0 %v4036_v11  ;;  %2301 = vmatprep.subr.bf16.mxu1 %v4039_v12 }
  0xe6   : > { %v952_v41 = vmax.f32 %v604_v26, 0.0  ;;  %v954_v42 = vmax.f32 %v797_v28, 0.0  ;;  %v1073_v44 = vpack.c.bf16 %v953_v25, %v949_v17  ;;  %v801_v45 = vadd.f32 %v800_v37, %v4504_v30 }
  0xe7   : > { %v609_v46 = vpop.f32.mrf.mxu0  ;;  %v802_v47 = vpop.f32.mrf.mxu1  ;;  %v1071_v52 = vpack.c.bf16 %v951_v33, %v947_v43  ;;  %v608_v58 = vadd.f32 %v607_v36, %v4517_v35 }
  0xe8   : > { %v1074_v48 = vpack.c.bf16 %v954_v42, %v950_v21  ;;  %v803_v49 = vadd.f32 %v802_v47, %v4508_v31  ;;  %v1072_v50 = vpack.c.bf16 %v952_v41, %v948_v40  ;;  %2109 = vmatpush1.bf16.msra.mxu0 %v4034_v32  ;;  %2302 = vmatpush1.bf16.msra.mxu1 %v4037_v38  ;;  %v957_v59 = vmax.f32 %v801_v45, 0.0 }
  0xe9   : > { %v611_v53 = vpop.f32.mrf.mxu0  ;;  %v804_v54 = vpop.f32.mrf.mxu1  ;;  %2110 = vmatprep.subr.bf16.mxu0 %v4042_v39  ;;  %v610_v55 = vadd.f32 %v609_v46, %v4513_v34  ;;  %v955_v9 = vmax.f32 %v608_v58, 0.0 }
  0xea   : > { %v612_v56 = vadd.f32 %v611_v53, %v4517_v35  ;;  %v805_v57 = vadd.f32 %v804_v54, %v4504_v30  ;;  %1427 = vmatprep.mubr.bf16.mxu0 %v1072_v50  ;;  %3654 = vmatprep.mubr.msk.bf16.mxu1 %vm1338_vm2, %v1074_v48  ;;  %v958_v62 = vmax.f32 %v803_v49, 0.0 }
  0xeb   : > { %v613_v60 = vpop.f32.mrf.mxu0  ;;  %v806_v61 = vpop.f32.mrf.mxu1  ;;  %1428 = vmatmul.mubr.bf16.gmra.mxu0 %v1071_v52  ;;  %1589 = vmatmul.mubr.bf16.gmra.mxu1 %v1073_v44  ;;  %v956_v6 = vmax.f32 %v610_v55, 0.0 }
  0xec   : > { %v961_v63 = vmax.f32 %v805_v57, 0.0  ;;  %v614_v0 = vadd.f32 %v613_v60, %v4513_v34  ;;  %v807_v1 = vadd.f32 %v806_v61, %v4508_v31  ;;  %2111 = vmatpush1.bf16.msra.mxu0 %v4040_v51  ;;  %v959_v3 = vmax.f32 %v612_v56, 0.0 }
  0xed   : > { %v617_v4 = vpop.f32.mrf.mxu0  ;;  %v810_v5 = vpop.f32.mrf.mxu1 }
  0xee   : > { %v960_v7 = vmax.f32 %v614_v0, 0.0  ;;  %v962_v8 = vmax.f32 %v807_v1, 0.0  ;;  %v1077_v10 = vpack.c.bf16 %v961_v63, %v957_v59  ;;  %v811_v11 = vadd.f32 %v810_v5, %v4504_v30 }
  0xef   : > { %v619_v12 = vpop.f32.mrf.mxu0  ;;  %v812_v13 = vpop.f32.mrf.mxu1  ;;  %v1075_v17 = vpack.c.bf16 %v959_v3, %v955_v9  ;;  %v618_v28 = vadd.f32 %v617_v4, %v4517_v35 }
  0xf0   : > { %v1078_v14 = vpack.c.bf16 %v962_v8, %v958_v62  ;;  %v813_v15 = vadd.f32 %v812_v13, %v4508_v31  ;;  %v1076_v16 = vpack.c.bf16 %v960_v7, %v956_v6  ;;  %v620_v21 = vadd.f32 %v619_v12, %v4513_v34 }
  0xf1   : > { %v621_v18 = vpop.f32.mrf.mxu0  ;;  %v814_v20 = vpop.f32.mrf.mxu1  ;;  %v965_v32 = vmax.f32 %v811_v11, 0.0  ;;  %v963_v47 = vmax.f32 %v618_v28, 0.0 }
  0xf2   : > { %v622_v25 = vadd.f32 %v621_v18, %v4517_v35  ;;  %v815_v26 = vadd.f32 %v814_v20, %v4504_v30  ;;  %1435 = vmatprep.mubr.bf16.mxu0 %v1076_v16  ;;  %3655 = vmatprep.mubr.msk.bf16.mxu1 %vm1338_vm2, %v1078_v14  ;;  %v966_v37 = vmax.f32 %v813_v15, 0.0  ;;  %v964_v44 = vmax.f32 %v620_v21, 0.0 }
  0xf3   : > { %v623_v33 = vpop.f32.mrf.mxu0  ;;  %v816_v36 = vpop.f32.mrf.mxu1  ;;  %1436 = vmatmul.mubr.bf16.gmra.mxu0 %v1075_v17  ;;  %1597 = vmatmul.mubr.bf16.gmra.mxu1 %v1077_v10 }
  0xf4   : > { %v969_v38 = vmax.f32 %v815_v26, 0.0  ;;  %v624_v39 = vadd.f32 %v623_v33, %v4513_v34  ;;  %v817_v40 = vadd.f32 %v816_v36, %v4508_v31  ;;  %v967_v41 = vmax.f32 %v622_v25, 0.0 }
  0xf5   : > { %v627_v42 = vpop.f32.mrf.mxu0  ;;  %v820_v43 = vpop.f32.mrf.mxu1 }
  0xf6   : > { %v968_v45 = vmax.f32 %v624_v39, 0.0  ;;  %v970_v46 = vmax.f32 %v817_v40, 0.0  ;;  %v1081_v48 = vpack.c.bf16 %v969_v38, %v965_v32  ;;  %v821_v49 = vadd.f32 %v820_v43, %v4504_v30 }
  0xf7   : > { %v629_v50 = vpop.f32.mrf.mxu0  ;;  %v822_v51 = vpop.f32.mrf.mxu1  ;;  %v1079_v55 = vpack.c.bf16 %v967_v41, %v963_v47  ;;  %v628_v61 = vadd.f32 %v627_v42, %v4517_v35 }
  0xf8   : > { %v1082_v52 = vpack.c.bf16 %v970_v46, %v966_v37  ;;  %v823_v53 = vadd.f32 %v822_v51, %v4508_v31  ;;  %v1080_v54 = vpack.c.bf16 %v968_v45, %v964_v44  ;;  %v630_v58 = vadd.f32 %v629_v50, %v4513_v34 }
  0xf9   : > { %v631_v56 = vpop.f32.mrf.mxu0  ;;  %v824_v57 = vpop.f32.mrf.mxu1  ;;  %v973_v62 = vmax.f32 %v821_v49, 0.0  ;;  %v971_v12 = vmax.f32 %v628_v61, 0.0 }
  0xfa   : > { %v632_v59 = vadd.f32 %v631_v56, %v4517_v35  ;;  %v825_v60 = vadd.f32 %v824_v57, %v4504_v30  ;;  %1443 = vmatprep.mubr.bf16.mxu0 %v1080_v54  ;;  %3656 = vmatprep.mubr.msk.bf16.mxu1 %vm1338_vm2, %v1082_v52  ;;  %v974_v1 = vmax.f32 %v823_v53, 0.0  ;;  %v972_v9 = vmax.f32 %v630_v58, 0.0 }
  0xfb   : > { %v633_v63 = vpop.f32.mrf.mxu0  ;;  %v826_v0 = vpop.f32.mrf.mxu1  ;;  %1444 = vmatmul.mubr.bf16.gmra.mxu0 %v1079_v55  ;;  %1605 = vmatmul.mubr.bf16.gmra.mxu1 %v1081_v48 }
  0xfc   : > { %v977_v3 = vmax.f32 %v825_v60, 0.0  ;;  %v634_v4 = vadd.f32 %v633_v63, %v4513_v34  ;;  %v827_v5 = vadd.f32 %v826_v0, %v4508_v31  ;;  %v975_v6 = vmax.f32 %v632_v59, 0.0 }
  0xfd   : > { %v637_v7 = vpop.f32.mrf.mxu0  ;;  %v830_v8 = vpop.f32.mrf.mxu1 }
  0xfe   : > { %v976_v10 = vmax.f32 %v634_v4, 0.0  ;;  %v978_v11 = vmax.f32 %v827_v5, 0.0  ;;  %v1085_v13 = vpack.c.bf16 %v977_v3, %v973_v62  ;;  %v831_v14 = vadd.f32 %v830_v8, %v4504_v30 }
  0xff   : > { %v639_v15 = vpop.f32.mrf.mxu0  ;;  %v832_v16 = vpop.f32.mrf.mxu1  ;;  %v1083_v21 = vpack.c.bf16 %v975_v6, %v971_v12  ;;  %v638_v36 = vadd.f32 %v637_v7, %v4517_v35 }
 0x100   : > { %v1086_v17 = vpack.c.bf16 %v978_v11, %v974_v1  ;;  %v833_v18 = vadd.f32 %v832_v16, %v4508_v31  ;;  %v1084_v20 = vpack.c.bf16 %v976_v10, %v972_v9  ;;  %v640_v28 = vadd.f32 %v639_v15, %v4513_v34 }
 0x101   : > { %v641_v25 = vpop.f32.mrf.mxu0  ;;  %v834_v26 = vpop.f32.mrf.mxu1  ;;  %v981_v37 = vmax.f32 %v831_v14, 0.0  ;;  %v979_v50 = vmax.f32 %v638_v36, 0.0 }
 0x102   : > { %v642_v32 = vadd.f32 %v641_v25, %v4517_v35  ;;  %v835_v33 = vadd.f32 %v834_v26, %v4504_v30  ;;  %1451 = vmatprep.mubr.bf16.mxu0 %v1084_v20  ;;  %3657 = vmatprep.mubr.msk.bf16.mxu1 %vm1338_vm2, %v1086_v17  ;;  %v982_v40 = vmax.f32 %v833_v18, 0.0  ;;  %v980_v47 = vmax.f32 %v640_v28, 0.0 }
 0x103   : > { %v643_v38 = vpop.f32.mrf.mxu0  ;;  %v836_v39 = vpop.f32.mrf.mxu1  ;;  %1452 = vmatmul.mubr.bf16.gmra.mxu0 %v1083_v21  ;;  %1613 = vmatmul.mubr.bf16.gmra.mxu1 %v1085_v13 }
 0x104   : > { %v985_v41 = vmax.f32 %v835_v33, 0.0  ;;  %v644_v42 = vadd.f32 %v643_v38, %v4513_v34  ;;  %v837_v43 = vadd.f32 %v836_v39, %v4508_v31  ;;  %v983_v44 = vmax.f32 %v642_v32, 0.0 }
 0x105   : > { %v647_v45 = vpop.f32.mrf.mxu0  ;;  %v840_v46 = vpop.f32.mrf.mxu1 }
 0x106   : > { %v984_v48 = vmax.f32 %v644_v42, 0.0  ;;  %v986_v49 = vmax.f32 %v837_v43, 0.0  ;;  %v1089_v51 = vpack.c.bf16 %v985_v41, %v981_v37  ;;  %v841_v52 = vadd.f32 %v840_v46, %v4504_v30 }
 0x107   : > { %v649_v53 = vpop.f32.mrf.mxu0  ;;  %v842_v54 = vpop.f32.mrf.mxu1  ;;  %v1087_v58 = vpack.c.bf16 %v983_v44, %v979_v50  ;;  %v648_v0 = vadd.f32 %v647_v45, %v4517_v35 }
 0x108   : > { %v1090_v55 = vpack.c.bf16 %v986_v49, %v982_v40  ;;  %v843_v56 = vadd.f32 %v842_v54, %v4508_v31  ;;  %v1088_v57 = vpack.c.bf16 %v984_v48, %v980_v47  ;;  %v650_v61 = vadd.f32 %v649_v53, %v4513_v34 }
 0x109   : > { %v651_v59 = vpop.f32.mrf.mxu0  ;;  %v844_v60 = vpop.f32.mrf.mxu1  ;;  %v989_v1 = vmax.f32 %v841_v52, 0.0  ;;  %v987_v15 = vmax.f32 %v648_v0, 0.0 }
 0x10a   : > { %v652_v62 = vadd.f32 %v651_v59, %v4517_v35  ;;  %v845_v63 = vadd.f32 %v844_v60, %v4504_v30  ;;  %1459 = vmatprep.mubr.bf16.mxu0 %v1088_v57  ;;  %3658 = vmatprep.mubr.msk.bf16.mxu1 %vm1338_vm2, %v1090_v55  ;;  %v990_v5 = vmax.f32 %v843_v56, 0.0  ;;  %v988_v12 = vmax.f32 %v650_v61, 0.0 }
 0x10b   : > { %v653_v3 = vpop.f32.mrf.mxu0  ;;  %v846_v4 = vpop.f32.mrf.mxu1  ;;  %1460 = vmatmul.mubr.bf16.gmra.mxu0 %v1087_v58  ;;  %1621 = vmatmul.mubr.bf16.gmra.mxu1 %v1089_v51 }
 0x10c   : > { %v993_v6 = vmax.f32 %v845_v63, 0.0  ;;  %v654_v7 = vadd.f32 %v653_v3, %v4513_v34  ;;  %v847_v8 = vadd.f32 %v846_v4, %v4508_v31  ;;  %v991_v9 = vmax.f32 %v652_v62, 0.0 }
 0x10d   : > { %v657_v10 = vpop.f32.mrf.mxu0  ;;  %v850_v11 = vpop.f32.mrf.mxu1 }
 0x10e   : > { %v992_v13 = vmax.f32 %v654_v7, 0.0  ;;  %v994_v14 = vmax.f32 %v847_v8, 0.0  ;;  %v1093_v16 = vpack.c.bf16 %v993_v6, %v989_v1  ;;  %v851_v17 = vadd.f32 %v850_v11, %v4504_v30 }
 0x10f   : > { %v659_v18 = vpop.f32.mrf.mxu0  ;;  %v852_v20 = vpop.f32.mrf.mxu1  ;;  %v1091_v28 = vpack.c.bf16 %v991_v9, %v987_v15  ;;  %v658_v39 = vadd.f32 %v657_v10, %v4517_v35 }
 0x110   : > { %v1094_v21 = vpack.c.bf16 %v994_v14, %v990_v5  ;;  %v853_v25 = vadd.f32 %v852_v20, %v4508_v31  ;;  %v1092_v26 = vpack.c.bf16 %v992_v13, %v988_v12  ;;  %v660_v36 = vadd.f32 %v659_v18, %v4513_v34 }
 0x111   : > { %v661_v32 = vpop.f32.mrf.mxu0  ;;  %v854_v33 = vpop.f32.mrf.mxu1  ;;  %v997_v40 = vmax.f32 %v851_v17, 0.0  ;;  %v995_v53 = vmax.f32 %v658_v39, 0.0 }
 0x112   : > { %v662_v37 = vadd.f32 %v661_v32, %v4517_v35  ;;  %v855_v38 = vadd.f32 %v854_v33, %v4504_v30  ;;  %1467 = vmatprep.mubr.bf16.mxu0 %v1092_v26  ;;  %3659 = vmatprep.mubr.msk.bf16.mxu1 %vm1338_vm2, %v1094_v21  ;;  %v998_v43 = vmax.f32 %v853_v25, 0.0  ;;  %v996_v50 = vmax.f32 %v660_v36, 0.0 }
 0x113   : > { %v663_v41 = vpop.f32.mrf.mxu0  ;;  %v856_v42 = vpop.f32.mrf.mxu1  ;;  %1468 = vmatmul.mubr.bf16.gmra.mxu0 %v1091_v28  ;;  %1629 = vmatmul.mubr.bf16.gmra.mxu1 %v1093_v16 }
 0x114   : > { %v1001_v44 = vmax.f32 %v855_v38, 0.0  ;;  %v664_v45 = vadd.f32 %v663_v41, %v4513_v34  ;;  %v857_v46 = vadd.f32 %v856_v42, %v4508_v31  ;;  %v999_v47 = vmax.f32 %v662_v37, 0.0 }
 0x115   : > { %v667_v48 = vpop.f32.mrf.mxu0  ;;  %v860_v49 = vpop.f32.mrf.mxu1 }
 0x116   : > { %v1000_v51 = vmax.f32 %v664_v45, 0.0  ;;  %v1002_v52 = vmax.f32 %v857_v46, 0.0  ;;  %v1097_v54 = vpack.c.bf16 %v1001_v44, %v997_v40  ;;  %v861_v55 = vadd.f32 %v860_v49, %v4504_v30  ;;  %v4043_v46 = vld [vmem:[%s5478_s6 + $0x8] ss:$16 sps:$4 sm:$0xff]  }
 0x117   : > { %v669_v56 = vpop.f32.mrf.mxu0  ;;  %v862_v57 = vpop.f32.mrf.mxu1  ;;  %v1095_v61 = vpack.c.bf16 %v999_v47, %v995_v53  ;;  %v668_v4 = vadd.f32 %v667_v48, %v4517_v35  ;;  %v4045_v47 = vld [vmem:[%s5478_s6 + $0xc] ss:$16 sps:$4 sm:$0xff]  }
 0x118   : > { %v1098_v58 = vpack.c.bf16 %v1002_v52, %v998_v43  ;;  %v863_v59 = vadd.f32 %v862_v57, %v4508_v31  ;;  %v1096_v60 = vpack.c.bf16 %v1000_v51, %v996_v50  ;;  %v670_v0 = vadd.f32 %v669_v56, %v4513_v34  ;;  %2303 = vmatprep.subr.bf16.mxu1 %v4045_v47 }
 0x119   : > { %v671_v62 = vpop.f32.mrf.mxu0  ;;  %v864_v63 = vpop.f32.mrf.mxu1  ;;  %v1005_v5 = vmax.f32 %v861_v55, 0.0  ;;  %v1003_v18 = vmax.f32 %v668_v4, 0.0  ;;  %2304 = vmatpush1.bf16.msra.mxu1 %v4043_v46 }
 0x11a   : > { %v672_v1 = vadd.f32 %v671_v62, %v4517_v35  ;;  %v865_v3 = vadd.f32 %v864_v63, %v4504_v30  ;;  %1475 = vmatprep.mubr.bf16.mxu0 %v1096_v60  ;;  %3660 = vmatprep.mubr.msk.bf16.mxu1 %vm1338_vm2, %v1098_v58  ;;  %v1006_v8 = vmax.f32 %v863_v59, 0.0  ;;  %v1004_v15 = vmax.f32 %v670_v0, 0.0 }
 0x11b   : > { %v673_v6 = vpop.f32.mrf.mxu0  ;;  %v866_v7 = vpop.f32.mrf.mxu1  ;;  %1476 = vmatmul.mubr.bf16.gmra.mxu0 %v1095_v61  ;;  %1637 = vmatmul.mubr.bf16.gmra.mxu1 %v1097_v54 }
 0x11c   : > { %v1009_v9 = vmax.f32 %v865_v3, 0.0  ;;  %v674_v10 = vadd.f32 %v673_v6, %v4513_v34  ;;  %v867_v11 = vadd.f32 %v866_v7, %v4508_v31  ;;  %v1007_v12 = vmax.f32 %v672_v1, 0.0  ;;  %3090 = vmatprep.subr.bf16.mxu1 %v4208_v2 }
 0x11d   : > { %v677_v13 = vpop.f32.mrf.mxu0  ;;  %v870_v14 = vpop.f32.mrf.mxu1 }
 0x11e   : > { %v1008_v16 = vmax.f32 %v674_v10, 0.0  ;;  %v1010_v17 = vmax.f32 %v867_v11, 0.0  ;;  %v1101_v20 = vpack.c.bf16 %v1009_v9, %v1005_v5  ;;  %v871_v21 = vadd.f32 %v870_v14, %v4504_v30 }
 0x11f   : > { %v679_v25 = vpop.f32.mrf.mxu0  ;;  %v872_v26 = vpop.f32.mrf.mxu1  ;;  %v1099_v36 = vpack.c.bf16 %v1007_v12, %v1003_v18  ;;  %v678_v42 = vadd.f32 %v677_v13, %v4517_v35 }
 0x120   : > { %v1102_v28 = vpack.c.bf16 %v1010_v17, %v1006_v8  ;;  %v873_v32 = vadd.f32 %v872_v26, %v4508_v31  ;;  %v1100_v33 = vpack.c.bf16 %v1008_v16, %v1004_v15  ;;  %v680_v39 = vadd.f32 %v679_v25, %v4513_v34 }
 0x121   : > { %v681_v37 = vpop.f32.mrf.mxu0  ;;  %v874_v38 = vpop.f32.mrf.mxu1  ;;  %v1013_v43 = vmax.f32 %v871_v21, 0.0  ;;  %v1011_v58 = vmax.f32 %v678_v42, 0.0 }
 0x122   : > { %v682_v40 = vadd.f32 %v681_v37, %v4517_v35  ;;  %v875_v41 = vadd.f32 %v874_v38, %v4504_v30  ;;  %1483 = vmatprep.mubr.bf16.mxu0 %v1100_v33  ;;  %3661 = vmatprep.mubr.msk.bf16.mxu1 %vm1338_vm2, %v1102_v28  ;;  %v1014_v48 = vmax.f32 %v873_v32, 0.0  ;;  %v1012_v55 = vmax.f32 %v680_v39, 0.0 }
 0x123   : > { %v683_v44 = vpop.f32.mrf.mxu0  ;;  %v876_v45 = vpop.f32.mrf.mxu1  ;;  %1484 = vmatmul.mubr.bf16.gmra.mxu0 %v1099_v36  ;;  %1645 = vmatmul.mubr.bf16.gmra.mxu1 %v1101_v20 }
 0x124   : > { %v1017_v49 = vmax.f32 %v875_v41, 0.0  ;;  %v684_v50 = vadd.f32 %v683_v44, %v4513_v34  ;;  %v877_v51 = vadd.f32 %v876_v45, %v4508_v31  ;;  %v1015_v52 = vmax.f32 %v682_v40, 0.0 }
 0x125   : > { %v687_v53 = vpop.f32.mrf.mxu0  ;;  %v880_v54 = vpop.f32.mrf.mxu1 }
 0x126   : > { %v1016_v56 = vmax.f32 %v684_v50, 0.0  ;;  %v1018_v57 = vmax.f32 %v877_v51, 0.0  ;;  %v1105_v59 = vpack.c.bf16 %v1017_v49, %v1013_v43  ;;  %v881_v60 = vadd.f32 %v880_v54, %v4504_v30 }
 0x127   : > { %v689_v61 = vpop.f32.mrf.mxu0  ;;  %v882_v62 = vpop.f32.mrf.mxu1  ;;  %v1103_v3 = vpack.c.bf16 %v1015_v52, %v1011_v58  ;;  %v688_v9 = vadd.f32 %v687_v53, %v4517_v35 }
 0x128   : > { %v1106_v63 = vpack.c.bf16 %v1018_v57, %v1014_v48  ;;  %v883_v0 = vadd.f32 %v882_v62, %v4508_v31  ;;  %v1104_v1 = vpack.c.bf16 %v1016_v56, %v1012_v55  ;;  %v690_v6 = vadd.f32 %v689_v61, %v4513_v34 }
 0x129   : > { %v691_v4 = vpop.f32.mrf.mxu0  ;;  %v884_v5 = vpop.f32.mrf.mxu1  ;;  %v1021_v10 = vmax.f32 %v881_v60, 0.0  ;;  %v1019_v28 = vmax.f32 %v688_v9, 0.0 }
 0x12a   : > { %v692_v7 = vadd.f32 %v691_v4, %v4517_v35  ;;  %v885_v8 = vadd.f32 %v884_v5, %v4504_v30  ;;  %1491 = vmatprep.mubr.bf16.mxu0 %v1104_v1  ;;  %3662 = vmatprep.mubr.msk.bf16.mxu1 %vm1338_vm2, %v1106_v63  ;;  %v1022_v13 = vmax.f32 %v883_v0, 0.0  ;;  %v1020_v21 = vmax.f32 %v690_v6, 0.0 }
 0x12b   : > { %v693_v11 = vpop.f32.mrf.mxu0  ;;  %v886_v12 = vpop.f32.mrf.mxu1  ;;  %1492 = vmatmul.mubr.bf16.gmra.mxu0 %v1103_v3  ;;  %1653 = vmatmul.mubr.bf16.gmra.mxu1 %v1105_v59 }
 0x12c   : > { %v1025_v14 = vmax.f32 %v885_v8, 0.0  ;;  %v694_v15 = vadd.f32 %v693_v11, %v4513_v34  ;;  %v887_v16 = vadd.f32 %v886_v12, %v4508_v31  ;;  %v1023_v17 = vmax.f32 %v692_v7, 0.0 }
 0x12d   : > { %v697_v18 = vpop.f32.mrf.mxu0  ;;  %v890_v20 = vpop.f32.mrf.mxu1 }
 0x12e   : > { %v1024_v25 = vmax.f32 %v694_v15, 0.0  ;;  %v1026_v26 = vmax.f32 %v887_v16, 0.0  ;;  %v1109_v32 = vpack.c.bf16 %v1025_v14, %v1021_v10  ;;  %v891_v33 = vadd.f32 %v890_v20, %v4504_v30 }
 0x12f   : > { %v699_v36 = vpop.f32.mrf.mxu0  ;;  %v892_v37 = vpop.f32.mrf.mxu1  ;;  %v1107_v41 = vpack.c.bf16 %v1023_v17, %v1019_v28  ;;  %v698_v47 = vadd.f32 %v697_v18, %v4517_v35 }
 0x130   : > { %v1110_v38 = vpack.c.bf16 %v1026_v26, %v1022_v13  ;;  %v893_v39 = vadd.f32 %v892_v37, %v4508_v31  ;;  %v1108_v40 = vpack.c.bf16 %v1024_v25, %v1020_v21  ;;  %v700_v44 = vadd.f32 %v699_v36, %v4513_v34 }
 0x131   : > { %v701_v42 = vpop.f32.mrf.mxu0  ;;  %v894_v43 = vpop.f32.mrf.mxu1  ;;  %v1029_v48 = vmax.f32 %v891_v33, 0.0  ;;  %v1027_v61 = vmax.f32 %v698_v47, 0.0 }
 0x132   : > { %v702_v45 = vadd.f32 %v701_v42, %v4517_v35  ;;  %v895_v46 = vadd.f32 %v894_v43, %v4504_v30  ;;  %1499 = vmatprep.mubr.bf16.mxu0 %v1108_v40  ;;  %3663 = vmatprep.mubr.msk.bf16.mxu1 %vm1338_vm2, %v1110_v38  ;;  %v1030_v51 = vmax.f32 %v893_v39, 0.0  ;;  %v1028_v58 = vmax.f32 %v700_v44, 0.0 }
 0x133   : > { %v703_v49 = vpop.f32.mrf.mxu0  ;;  %v896_v50 = vpop.f32.mrf.mxu1  ;;  %1500 = vmatmul.mubr.bf16.gmra.mxu0 %v1107_v41  ;;  %1661 = vmatmul.mubr.bf16.gmra.mxu1 %v1109_v32 }
 0x134   : > { %v1033_v52 = vmax.f32 %v895_v46, 0.0  ;;  %v704_v53 = vadd.f32 %v703_v49, %v4513_v34  ;;  %v897_v54 = vadd.f32 %v896_v50, %v4508_v31  ;;  %v1031_v55 = vmax.f32 %v702_v45, 0.0 }
 0x135   : > { %v707_v56 = vpop.f32.mrf.mxu0  ;;  %v900_v57 = vpop.f32.mrf.mxu1 }
 0x136   : > { %v1032_v59 = vmax.f32 %v704_v53, 0.0  ;;  %v1034_v60 = vmax.f32 %v897_v54, 0.0  ;;  %v1113_v62 = vpack.c.bf16 %v1033_v52, %v1029_v48  ;;  %v901_v63 = vadd.f32 %v900_v57, %v4504_v30 }
 0x137   : > { %v709_v0 = vpop.f32.mrf.mxu0  ;;  %v902_v1 = vpop.f32.mrf.mxu1  ;;  %v1111_v6 = vpack.c.bf16 %v1031_v55, %v1027_v61  ;;  %v708_v12 = vadd.f32 %v707_v56, %v4517_v35 }
 0x138   : > { %v1114_v3 = vpack.c.bf16 %v1034_v60, %v1030_v51  ;;  %v903_v4 = vadd.f32 %v902_v1, %v4508_v31  ;;  %v1112_v5 = vpack.c.bf16 %v1032_v59, %v1028_v58  ;;  %v710_v9 = vadd.f32 %v709_v0, %v4513_v34 }
 0x139   : > { %v711_v7 = vpop.f32.mrf.mxu0  ;;  %v904_v8 = vpop.f32.mrf.mxu1  ;;  %v1037_v13 = vmax.f32 %v901_v63, 0.0  ;;  %v1035_v36 = vmax.f32 %v708_v12, 0.0 }
 0x13a   : > { %v712_v10 = vadd.f32 %v711_v7, %v4517_v35  ;;  %v905_v11 = vadd.f32 %v904_v8, %v4504_v30  ;;  %1507 = vmatprep.mubr.bf16.mxu0 %v1112_v5  ;;  %3664 = vmatprep.mubr.msk.bf16.mxu1 %vm1338_vm2, %v1114_v3  ;;  %v1038_v16 = vmax.f32 %v903_v4, 0.0  ;;  %v1036_v28 = vmax.f32 %v710_v9, 0.0 }
 0x13b   : > { %v713_v14 = vpop.f32.mrf.mxu0  ;;  %v906_v15 = vpop.f32.mrf.mxu1  ;;  %1508 = vmatmul.mubr.bf16.gmra.mxu0 %v1111_v6  ;;  %1669 = vmatmul.mubr.bf16.gmra.mxu1 %v1113_v62 }
 0x13c   : > { %v1041_v17 = vmax.f32 %v905_v11, 0.0  ;;  %v714_v18 = vadd.f32 %v713_v14, %v4513_v34  ;;  %v907_v20 = vadd.f32 %v906_v15, %v4508_v31  ;;  %v1039_v21 = vmax.f32 %v712_v10, 0.0 }
 0x13d   : > { %v717_v25 = vpop.f32.mrf.mxu0  ;;  %v910_v26 = vpop.f32.mrf.mxu1 }
 0x13e   : > { %v1040_v32 = vmax.f32 %v714_v18, 0.0  ;;  %v1042_v33 = vmax.f32 %v907_v20, 0.0  ;;  %v1117_v37 = vpack.c.bf16 %v1041_v17, %v1037_v13  ;;  %v911_v38 = vadd.f32 %v910_v26, %v4504_v30 }
 0x13f   : > { %v719_v39 = vpop.f32.mrf.mxu0  ;;  %v912_v40 = vpop.f32.mrf.mxu1  ;;  %v1115_v44 = vpack.c.bf16 %v1039_v21, %v1035_v36  ;;  %v718_v50 = vadd.f32 %v717_v25, %v4517_v35 }
 0x140   : > { %v1118_v41 = vpack.c.bf16 %v1042_v33, %v1038_v16  ;;  %v913_v42 = vadd.f32 %v912_v40, %v4508_v31  ;;  %v1116_v43 = vpack.c.bf16 %v1040_v32, %v1036_v28  ;;  %v720_v47 = vadd.f32 %v719_v39, %v4513_v34 }
 0x141   : > { %v721_v45 = vpop.f32.mrf.mxu0  ;;  %v914_v46 = vpop.f32.mrf.mxu1  ;;  %v1045_v51 = vmax.f32 %v911_v38, 0.0  ;;  %v1043_v0 = vmax.f32 %v718_v50, 0.0 }
 0x142   : > { %v722_v48 = vadd.f32 %v721_v45, %v4517_v35  ;;  %v915_v49 = vadd.f32 %v914_v46, %v4504_v30  ;;  %1515 = vmatprep.mubr.bf16.mxu0 %v1116_v43  ;;  %3665 = vmatprep.mubr.msk.bf16.mxu1 %vm1338_vm2, %v1118_v41  ;;  %v1046_v54 = vmax.f32 %v913_v42, 0.0  ;;  %v1044_v61 = vmax.f32 %v720_v47, 0.0 }
 0x143   : > { %v723_v52 = vpop.f32.mrf.mxu0  ;;  %v916_v53 = vpop.f32.mrf.mxu1  ;;  %1516 = vmatmul.mubr.bf16.gmra.mxu0 %v1115_v44  ;;  %1677 = vmatmul.mubr.bf16.gmra.mxu1 %v1117_v37 }
 0x144   : > { %v1049_v55 = vmax.f32 %v915_v49, 0.0  ;;  %v724_v56 = vadd.f32 %v723_v52, %v4513_v34  ;;  %v917_v57 = vadd.f32 %v916_v53, %v4508_v31  ;;  %v1047_v58 = vmax.f32 %v722_v48, 0.0 }
 0x145   : > { %v727_v59 = vpop.f32.mrf.mxu0  ;;  %v920_v60 = vpop.f32.mrf.mxu1 }
 0x146   : > { %v1048_v62 = vmax.f32 %v724_v56, 0.0  ;;  %v1050_v63 = vmax.f32 %v917_v57, 0.0  ;;  %v1121_v1 = vpack.c.bf16 %v1049_v55, %v1045_v51  ;;  %v921_v3 = vadd.f32 %v920_v60, %v4504_v30 }
 0x147   : > { %v729_v4 = vpop.f32.mrf.mxu0  ;;  %v922_v5 = vpop.f32.mrf.mxu1  ;;  %v1119_v9 = vpack.c.bf16 %v1047_v58, %v1043_v0  ;;  %v728_v15 = vadd.f32 %v727_v59, %v4517_v35 }
 0x148   : > { %v1122_v6 = vpack.c.bf16 %v1050_v63, %v1046_v54  ;;  %v923_v7 = vadd.f32 %v922_v5, %v4508_v31  ;;  %v1120_v8 = vpack.c.bf16 %v1048_v62, %v1044_v61  ;;  %v730_v12 = vadd.f32 %v729_v4, %v4513_v34  ;;  %v4695_v5 = vld [vmem:[%s5477_s5] ss:$0 sm:$0xff] }
 0x149   : > { %v731_v10 = vpop.f32.mrf.mxu0  ;;  %v924_v11 = vpop.f32.mrf.mxu1  ;;  %v1053_v16 = vmax.f32 %v921_v3, 0.0  ;;  %v1051_v39 = vmax.f32 %v728_v15, 0.0 }
 0x14a   : > { %v732_v13 = vadd.f32 %v731_v10, %v4517_v35  ;;  %v925_v14 = vadd.f32 %v924_v11, %v4504_v30  ;;  %1523 = vmatprep.mubr.bf16.mxu0 %v1120_v8  ;;  %3666 = vmatprep.mubr.msk.bf16.mxu1 %vm1338_vm2, %v1122_v6  ;;  %v1054_v20 = vmax.f32 %v923_v7, 0.0  ;;  %v1052_v36 = vmax.f32 %v730_v12, 0.0  ;;  %v4046_v12 = vld [vmem:[%s5480_s8 + $0x78] sm:$0xff]  }
 0x14b   : > { %v733_v17 = vpop.f32.mrf.mxu0  ;;  %v926_v18 = vpop.f32.mrf.mxu1  ;;  %1524 = vmatmul.mubr.bf16.gmra.mxu0 %v1119_v9  ;;  %1685 = vmatmul.mubr.bf16.gmra.mxu1 %v1121_v1 }
 0x14c   : > { %v1057_v21 = vmax.f32 %v925_v14, 0.0  ;;  %v734_v25 = vadd.f32 %v733_v17, %v4513_v34  ;;  %v927_v26 = vadd.f32 %v926_v18, %v4508_v31  ;;  %v1055_v28 = vmax.f32 %v732_v13, 0.0  ;;  %3871 = vmatprep.subr.bf16.mxu0 %v4046_v12 }
 0x14d   : > { %v737_v32 = vpop.f32.mrf.mxu0  ;;  %v930_v33 = vpop.f32.mrf.mxu1 }
 0x14e   : > { %v1056_v37 = vmax.f32 %v734_v25, 0.0  ;;  %v1058_v38 = vmax.f32 %v927_v26, 0.0  ;;  %v1125_v40 = vpack.c.bf16 %v1057_v21, %v1053_v16  ;;  %v931_v41 = vadd.f32 %v930_v33, %v4504_v30 }
 0x14f   : > { %v739_v42 = vpop.f32.mrf.mxu0  ;;  %v932_v43 = vpop.f32.mrf.mxu1  ;;  %v1123_v47 = vpack.c.bf16 %v1055_v28, %v1051_v39  ;;  %v738_v53 = vadd.f32 %v737_v32, %v4517_v35 }
 0x150   : > { %v1126_v44 = vpack.c.bf16 %v1058_v38, %v1054_v20  ;;  %v933_v45 = vadd.f32 %v932_v43, %v4508_v31  ;;  %v1124_v46 = vpack.c.bf16 %v1056_v37, %v1052_v36  ;;  %v740_v50 = vadd.f32 %v739_v42, %v4513_v34 }
 0x151   : > { %v741_v48 = vpop.f32.mrf.mxu0  ;;  %v934_v49 = vpop.f32.mrf.mxu1  ;;  %v1061_v54 = vmax.f32 %v931_v41, 0.0  ;;  %v1059_v0 = vmax.f32 %v738_v53, 0.0 }
 0x152   : > { %v742_v51 = vadd.f32 %v741_v48, %v4517_v35  ;;  %v935_v52 = vadd.f32 %v934_v49, %v4504_v30  ;;  %1531 = vmatprep.mubr.bf16.mxu0 %v1124_v46  ;;  %3667 = vmatprep.mubr.msk.bf16.mxu1 %vm1338_vm2, %v1126_v44  ;;  %v1062_v57 = vmax.f32 %v933_v45, 0.0  ;;  %v1060_v62 = vmax.f32 %v740_v50, 0.0 }
 0x153   : > { %v743_v55 = vpop.f32.mrf.mxu0  ;;  %v936_v56 = vpop.f32.mrf.mxu1  ;;  %1532 = vmatmul.mubr.bf16.gmra.mxu0 %v1123_v47  ;;  %1693 = vmatmul.mubr.bf16.gmra.mxu1 %v1125_v40 }
 0x154   : > { %v1065_v58 = vmax.f32 %v935_v52, 0.0  ;;  %v744_v59 = vadd.f32 %v743_v55, %v4513_v34  ;;  %v937_v60 = vadd.f32 %v936_v56, %v4508_v31  ;;  %v1063_v61 = vmax.f32 %v742_v51, 0.0 }
 0x156   : > { %v1064_v63 = vmax.f32 %v744_v59, 0.0  ;;  %v1066_v30 = vmax.f32 %v937_v60, 0.0  ;;  %v1129_v1 = vpack.c.bf16 %v1065_v58, %v1061_v54  ;;  %v1127_v35 = vpack.c.bf16 %v1063_v61, %v1059_v0 }
 0x157   : > { %v4734_v0 = vand.u32 127, %v444_v19 }
 0x158   : > { %v1130_v3 = vpack.c.bf16 %v1066_v30, %v1062_v57  ;;  %v1128_v4 = vpack.c.bf16 %v1064_v63, %v1060_v62 }
 0x159   : > { %vm1711_vm3 = vcmp.lt.s32.totalorder %v4734_v0, 20 }
 0x15a   : > { %1539 = vmatprep.mubr.bf16.mxu0 %v1128_v4  ;;  %3668 = vmatprep.mubr.msk.bf16.mxu1 %vm1338_vm2, %v1130_v3 }
 0x15b   : > { %1540 = vmatmul.mubr.bf16.gmra.mxu0 %v1127_v35  ;;  %1701 = vmatmul.mubr.bf16.gmra.mxu1 %v1129_v1  ;;  %v1744_v35 = vld [vmem:[%s4729_s26] sm:$0xff] }
 0x15c   : > { %2128 = vmatprep.mubr.bf16.mxu0 %v4208_v2  ;;  %2321 = vmatprep.mubr.bf16.mxu1 %v4208_v2 }
 0x1a3   : > { %v3775_v34 = vpop.f32.mrf.mxu0  ;;  %v1582_v31 = vpop.f32.mrf.mxu1 }
 0x1a5   : > { %v3776_v6 = vpop.f32.mrf.mxu0  ;;  %v1584_v7 = vpop.f32.mrf.mxu1 }
 0x1a6   : > { %v3777_v8 = vadd.f32 %v3776_v6, %v3775_v34 }
 0x1a7   : > { %v3778_v9 = vpop.f32.mrf.mxu0  ;;  %v1585_v10 = vpop.f32.mrf.mxu1 }
 0x1a8   : > { %v1422_v11 = vadd.f32 %v3777_v8, %v4695_v5 }
 0x1a9   : > { %v3779_v13 = vpop.f32.mrf.mxu0  ;;  %v1587_v14 = vpop.f32.mrf.mxu1 }
 0x1aa   : > { %v3780_v15 = vadd.f32 %v3779_v13, %v3778_v9  ;;  %v4701_v16 = vadd.f32 %v1582_v31, %v1422_v11  ;;  %v1745_v9 = vld [vmem:[%s4729_s26 + $0x8] sm:$0xff] }
 0x1ab   : > { %v3781_v17 = vpop.f32.mrf.mxu0  ;;  %v1590_v18 = vpop.f32.mrf.mxu1 }
 0x1ac   : > { %v1425_v20 = vadd.f32 %v3780_v15, %v4695_v5  ;;  %3315 = vrot.lane.b32.xlu0 %v4701_v16, %s4209_s23  ;;  %v1776_v21 = vmul.f32 0.5, %v4701_v16 }
 0x1ad   : > { %v3782_v25 = vpop.f32.mrf.mxu0  ;;  %v1592_v26 = vpop.f32.mrf.mxu1 }
 0x1ae   : > { %v1808_v28 = vmul.f32 1.442695, %v1776_v21  ;;  %v3783_v32 = vadd.f32 %v3782_v25, %v3781_v17  ;;  %v4707_v33 = vadd.f32 %v1585_v10, %v1425_v20  ;;  %v1712_v25 = vsel %vm1711_vm3, %v4701_v16, 0.0 }
 0x1af   : > { %v3784_v36 = vpop.f32.mrf.mxu0  ;;  %v1593_v37 = vpop.f32.mrf.mxu1 }
 0x1b0   : > { %4071 = vpow2.f32 %v1808_v28  ;;  %v1430_v38 = vadd.f32 %v3783_v32, %v4695_v5  ;;  %v1777_v39 = vmul.f32 0.5, %v4707_v33  ;;  %3317 = vrot.lane.b32.xlu0 %v4707_v33, %s4209_s23  ;;  %v1713_v26 = vsel %vm1711_vm3, %v4707_v33, 0.0 }
 0x1b1   : > { %v3785_v40 = vpop.f32.mrf.mxu0  ;;  %v1595_v41 = vpop.f32.mrf.mxu1 }
 0x1b2   : > { %v1810_v42 = vmul.f32 1.442695, %v1777_v39  ;;  %v3786_v43 = vadd.f32 %v3785_v40, %v3784_v36  ;;  %v4713_v44 = vadd.f32 %v1590_v18, %v1430_v38 }
 0x1b3   : > { %v3787_v45 = vpop.f32.mrf.mxu0  ;;  %v1598_v46 = vpop.f32.mrf.mxu1 }
 0x1b4   : > { %4073 = vpow2.f32 %v1810_v42  ;;  %v1433_v47 = vadd.f32 %v3786_v43, %v4695_v5  ;;  %3319 = vrot.lane.b32.xlu1 %v4713_v44, %s4209_s23  ;;  %v1778_v48 = vmul.f32 0.5, %v4713_v44  ;;  %v1746_v42 = vld [vmem:[%s4729_s26 + $0x10] sm:$0xff] }
 0x1b5   : > { %v3788_v49 = vpop.f32.mrf.mxu0  ;;  %v1600_v50 = vpop.f32.mrf.mxu1 }
 0x1b6   : > { %v1812_v51 = vmul.f32 1.442695, %v1778_v48  ;;  %v3789_v52 = vadd.f32 %v3788_v49, %v3787_v45  ;;  %v4719_v53 = vadd.f32 %v1593_v37, %v1433_v47  ;;  %v4047_v47 = vld [vmem:[%s5480_s8 + $0x38] sm:$0xff]  }
 0x1b7   : > { %v3790_v54 = vpop.f32.mrf.mxu0  ;;  %v1601_v55 = vpop.f32.mrf.mxu1  ;;  %v1747_v48 = vld [vmem:[%s4729_s26 + $0x18] sm:$0xff] }
 0x1b8   : > { %4075 = vpow2.f32 %v1812_v51  ;;  %v1438_v56 = vadd.f32 %v3789_v52, %v4695_v5  ;;  %v1779_v57 = vmul.f32 0.5, %v4719_v53  ;;  %3321 = vrot.lane.b32.xlu1 %v4719_v53, %s4209_s23  ;;  %v4048_v52 = vld [vmem:[%s5480_s8 + $0xb8] sm:$0xff]  }
 0x1b9   : > { %v3791_v58 = vpop.f32.mrf.mxu0  ;;  %v1603_v59 = vpop.f32.mrf.mxu1 }
 0x1ba   : > { %v1814_v60 = vmul.f32 1.442695, %v1779_v57  ;;  %v3792_v61 = vadd.f32 %v3791_v58, %v3790_v54  ;;  %v4731_v62 = vadd.f32 %v1598_v46, %v1438_v56  ;;  %v4049_v54 = vld [vmem:[%s5480_s8 + $0x70] sm:$0xff]  }
 0x1bb   : > { %v3793_v63 = vpop.f32.mrf.mxu0  ;;  %v1606_v30 = vpop.f32.mrf.mxu1 }
 0x1bc   : > { %4077 = vpow2.f32 %v1814_v60  ;;  %v1441_v1 = vadd.f32 %v3792_v61, %v4695_v5  ;;  %v1780_v3 = vmul.f32 0.5, %v4731_v62  ;;  %3323 = vrot.lane.b32.xlu0 %v4731_v62, %s4209_s23 }
 0x1bd   : > { %v4072_v4 = vpop.eup %4071  ;;  %v3794_v34 = vpop.f32.mrf.mxu0 }
 0x1be   : > { %v1608_v31 = vpop.f32.mrf.mxu1  ;;  %v1816_v6 = vmul.f32 1.442695, %v1780_v3  ;;  %v3795_v7 = vadd.f32 %v3794_v34, %v3793_v63  ;;  %v4741_v8 = vadd.f32 %v1601_v55, %v1441_v1  ;;  %v1872_v11 = vmul.f32 %v4072_v4, %v1744_v35  ;;  %v4050_v1 = vld [vmem:[%s5480_s8 + $0x30] sm:$0xff]  }
 0x1bf   : > { %v3796_v10 = vpop.f32.mrf.mxu0  ;;  %v1714_v3 = vsel %vm1711_vm3, %v4713_v44, 0.0  ;;  %v1715_v4 = vsel %vm1711_vm3, %v4719_v53, 0.0 }
 0x1c0   : > { %v1609_v19 = vpop.f32.mrf.mxu1  ;;  %v1446_v12 = vadd.f32 %v3795_v7, %v4695_v5  ;;  %3325 = vrot.lane.b32.xlu1 %v4741_v8, %s4209_s23  ;;  %4079 = vpow2.f32 %v1816_v6  ;;  %v1781_v14 = vmul.f32 0.5, %v4741_v8  ;;  %v1904_v37 = vadd.f32 %v1872_v11, %v1712_v25  ;;  %v4051_v6 = vld [vmem:[%s5480_s8 + $0xb0] sm:$0xff]   ;;  %v4052_v7 = vld [vmem:[%s5480_s8 + $0x68] sm:$0xff]  }
 0x1c1   : > { %v4074_v13 = vpop.eup %4073  ;;  %v3797_v15 = vpop.f32.mrf.mxu0 }
 0x1c2   : > { %v1611_v17 = vpop.f32.mrf.mxu1  ;;  %v1873_v18 = vmul.f32 %v4074_v13, %v1745_v9  ;;  %v3798_v20 = vadd.f32 %v3797_v15, %v3796_v10  ;;  %v4749_v21 = vadd.f32 %v1606_v30, %v1446_v12  ;;  %v1818_v28 = vmul.f32 1.442695, %v1781_v14  ;;  %v1748_v14 = vld [vmem:[%s4729_s26 + $0x20] sm:$0xff] }
 0x1c3   : > { %v3799_v32 = vpop.f32.mrf.mxu0 }
 0x1c4   : > { %v1614_v36 = vpop.f32.mrf.mxu1  ;;  %v1905_v38 = vadd.f32 %v1873_v18, %v1713_v26  ;;  %v1449_v39 = vadd.f32 %v3798_v20, %v4695_v5  ;;  %v1782_v40 = vmul.f32 0.5, %v4749_v21  ;;  %3327 = vrot.lane.b32.xlu0 %v4749_v21, %s4209_s23  ;;  %4081 = vpow2.f32 %v1818_v28  ;;  %v4053_v18 = vld [vmem:[%s5480_s8 + $0x28] sm:$0xff]   ;;  %v4055_v28 = vld [vmem:[%s5480_s8 + $0x60] sm:$0xff]  }
 0x1c5   : > { %v4076_v41 = vpop.eup %4075  ;;  %v3800_v16 = vpop.f32.mrf.mxu0 }
 0x1c6   : > { %v1616_v43 = vpop.f32.mrf.mxu1  ;;  %v1936_v33 = vpack.c.bf16 %v1905_v38, %v1904_v37  ;;  %v1820_v45 = vmul.f32 1.442695, %v1782_v40  ;;  %v3801_v46 = vadd.f32 %v3800_v16, %v3799_v32  ;;  %v4766_v51 = vadd.f32 %v1609_v19, %v1449_v39  ;;  %v1749_v32 = vld [vmem:[%s4729_s26 + $0x28] sm:$0xff] }
 0x1c7   : > { %v3802_v49 = vpop.f32.mrf.mxu0  ;;  %v1874_v55 = vmul.f32 %v4076_v41, %v1746_v42  ;;  %v4054_v37 = vld [vmem:[%s5480_s8 + $0xa8] sm:$0xff]  }
 0x1c8   : > { %v1617_v50 = vpop.f32.mrf.mxu1  ;;  %v1454_v56 = vadd.f32 %v3801_v46, %v4695_v5  ;;  %3682 = vmatmul.mubr.msk.bf16.vlgmr.msra.gmra.mxu0 %vm2034_vm4, %v1936_v33  ;;  %3699 = vmatmul.mubr.msk.bf16.vlgmr.msra.gmra.mxu1 %vm2034_vm4, %v1936_v33  ;;  %4083 = vpow2.f32 %v1820_v45  ;;  %v1783_v58 = vmul.f32 0.5, %v4766_v51  ;;  %v4056_v33 = vld [vmem:[%s5480_s8 + $0x20] sm:$0xff]  }
 0x1c9   : > { %v4078_v57 = vpop.eup %4077  ;;  %3329 = vrot.lane.b32.xlu1 %v4766_v51, %s4209_s23  ;;  %v3803_v59 = vpop.f32.mrf.mxu0  ;;  %2138 = vmatprep.mubr.bf16.mxu0 %v4208_v2  ;;  %v1906_v9 = vadd.f32 %v1874_v55, %v1714_v3 }
 0x1ca   : > { %v1619_v60 = vpop.f32.mrf.mxu1  ;;  %v1875_v61 = vmul.f32 %v4078_v57, %v1747_v48  ;;  %v3804_v63 = vadd.f32 %v3803_v59, %v3802_v49  ;;  %v4781_v30 = vadd.f32 %v1614_v36, %v1454_v56  ;;  %2331 = vmatprep.mubr.bf16.mxu1 %v4208_v2  ;;  %3872 = vmatpush3.bf16.msra.mxu0 %v4047_v47  ;;  %v1822_v35 = vmul.f32 1.442695, %v1783_v58  ;;  %v4058_v49 = vld [vmem:[%s5480_s8 + $0x58] sm:$0xff]   ;;  %v4057_v56 = vld [vmem:[%s5480_s8 + $0xa0] sm:$0xff]  }
 0x1cb   : > { %v3805_v34 = vpop.f32.mrf.mxu0  ;;  %3091 = vmatpush1.bf16.msra.mxu1 %v4048_v52  ;;  %3873 = vmatprep.subr.bf16.mxu0 %v4049_v54  ;;  %v1717_v52 = vsel %vm1711_vm3, %v4741_v8, 0.0  ;;  %v1750_v60 = vld [vmem:[%s4729_s26 + $0x30] sm:$0xff] }
 0x1cc   : > { %v1622_v31 = vpop.f32.mrf.mxu1  ;;  %v1907_v44 = vadd.f32 %v1875_v61, %v1715_v4  ;;  %v1457_v10 = vadd.f32 %v3804_v63, %v4695_v5  ;;  %v1784_v53 = vmul.f32 0.5, %v4781_v30  ;;  %3331 = vrot.lane.b32.xlu0 %v4781_v30, %s4209_s23  ;;  %3092 = vmatprep.subr.bf16.mxu1 %v4208_v2  ;;  %4085 = vpow2.f32 %v1822_v35 }
 0x1cd   : > { %v3806_v19 = vpop.f32.mrf.mxu0  ;;  %v4080_v12 = vpop.eup %4079 }
 0x1ce   : > { %v1624_v11 = vpop.f32.mrf.mxu1  ;;  %v1937_v13 = vpack.c.bf16 %v1907_v44, %v1906_v9  ;;  %v1824_v15 = vmul.f32 1.442695, %v1784_v53  ;;  %v3807_v17 = vadd.f32 %v3806_v19, %v3805_v34  ;;  %3874 = vmatpush3.bf16.msra.mxu0 %v4050_v1  ;;  %v4808_v26 = vadd.f32 %v1617_v50, %v1457_v10  ;;  %v4060_v34 = vld [vmem:[%s5480_s8 + $0x18] sm:$0xff]  }
 0x1cf   : > { %v3808_v20 = vpop.f32.mrf.mxu0  ;;  %3093 = vmatpush1.bf16.msra.mxu1 %v4051_v6  ;;  %3875 = vmatprep.subr.bf16.mxu0 %v4052_v7  ;;  %v1876_v38 = vmul.f32 %v4080_v12, %v1748_v14  ;;  %v1716_v50 = vsel %vm1711_vm3, %v4731_v62, 0.0  ;;  %v4059_v7 = vld [vmem:[%s5480_s8 + $0x98] sm:$0xff]  }
 0x1d0   : > { %v1625_v25 = vpop.f32.mrf.mxu1  ;;  %v1462_v36 = vadd.f32 %v3807_v17, %v4695_v5  ;;  %3683 = vmatmul.mubr.msk.bf16.gmra.mxu0 %vm2034_vm4, %v1937_v13  ;;  %3700 = vmatmul.mubr.msk.bf16.gmra.mxu1 %vm2034_vm4, %v1937_v13  ;;  %4087 = vpow2.f32 %v1824_v15  ;;  %v1785_v39 = vmul.f32 0.5, %v4808_v26 }
 0x1d1   : > { %3333 = vrot.lane.b32.xlu1 %v4808_v26, %s4209_s23  ;;  %v3809_v40 = vpop.f32.mrf.mxu0  ;;  %2148 = vmatprep.mubr.bf16.mxu0 %v4208_v2  ;;  %v4082_v42 = vpop.eup %4081  ;;  %v1908_v57 = vadd.f32 %v1876_v38, %v1716_v50 }
 0x1d2   : > { %v1627_v41 = vpop.f32.mrf.mxu1  ;;  %v3810_v16 = vadd.f32 %v3809_v40, %v3808_v20  ;;  %v4824_v43 = vadd.f32 %v1622_v31, %v1462_v36  ;;  %2341 = vmatprep.mubr.bf16.mxu1 %v4208_v2  ;;  %3876 = vmatpush3.bf16.msra.mxu0 %v4053_v18  ;;  %v1877_v45 = vmul.f32 %v4082_v42, %v1749_v32  ;;  %v1826_v46 = vmul.f32 1.442695, %v1785_v39  ;;  %v1751_v31 = vld [vmem:[%s4729_s26 + $0x38] sm:$0xff]  ;;  %v1752_v39 = vld [vmem:[%s4729_s26 + $0x40] sm:$0xff] }
 0x1d3   : > { %v3811_v47 = vpop.f32.mrf.mxu0  ;;  %3094 = vmatprep.subr.bf16.mxu1 %v4208_v2  ;;  %3877 = vmatprep.subr.bf16.mxu0 %v4055_v28  ;;  %v1718_v18 = vsel %vm1711_vm3, %v4749_v21, 0.0  ;;  %v1719_v20 = vsel %vm1711_vm3, %v4766_v51, 0.0 }
 0x1d4   : > { %v1630_v48 = vpop.f32.mrf.mxu1  ;;  %v1465_v54 = vadd.f32 %v3810_v16, %v4695_v5  ;;  %v1786_v55 = vmul.f32 0.5, %v4824_v43  ;;  %3335 = vrot.lane.b32.xlu0 %v4824_v43, %s4209_s23  ;;  %3095 = vmatpush1.bf16.msra.mxu1 %v4054_v37  ;;  %v1909_v58 = vadd.f32 %v1877_v45, %v1717_v52  ;;  %4089 = vpow2.f32 %v1826_v46  ;;  %v1753_v45 = vld [vmem:[%s4729_s26 + $0x48] sm:$0xff] }
 0x1d5   : > { %v3812_v62 = vpop.f32.mrf.mxu0  ;;  %3096 = vmatprep.subr.bf16.mxu1 %v4208_v2  ;;  %v4084_v8 = vpop.eup %4083 }
 0x1d6   : > { %v1632_v59 = vpop.f32.mrf.mxu1  ;;  %v1828_v61 = vmul.f32 1.442695, %v1786_v55  ;;  %v3813_v63 = vadd.f32 %v3812_v62, %v3811_v47  ;;  %v4849_v1 = vadd.f32 %v1625_v25, %v1465_v54  ;;  %3878 = vmatpush3.bf16.msra.mxu0 %v4056_v33  ;;  %v1938_v3 = vpack.c.bf16 %v1909_v58, %v1908_v57  ;;  %v4062_v57 = vld [vmem:[%s5480_s8 + $0x50] sm:$0xff]  }
 0x1d7   : > { %v3814_v4 = vpop.f32.mrf.mxu0  ;;  %3879 = vmatprep.subr.bf16.mxu0 %v4058_v49  ;;  %v1878_v9 = vmul.f32 %v4084_v8, %v1750_v60  ;;  %v1720_v60 = vsel %vm1711_vm3, %v4781_v30, 0.0 }
 0x1d8   : > { %v1633_v35 = vpop.f32.mrf.mxu1  ;;  %v1470_v6 = vadd.f32 %v3813_v63, %v4695_v5  ;;  %3337 = vrot.lane.b32.xlu1 %v4849_v1, %s4209_s23  ;;  %3097 = vmatpush1.bf16.msra.mxu1 %v4057_v56  ;;  %4091 = vpow2.f32 %v1828_v61  ;;  %v1787_v44 = vmul.f32 0.5, %v4849_v1  ;;  %v4061_v56 = vld [vmem:[%s5480_s8 + $0x90] sm:$0xff]   ;;  %v1721_v61 = vsel %vm1711_vm3, %v4808_v26, 0.0 }
 0x1d9   : > { %3684 = vmatmul.mubr.msk.bf16.gmra.mxu0 %vm2034_vm4, %v1938_v3  ;;  %3701 = vmatmul.mubr.msk.bf16.gmra.mxu1 %vm2034_vm4, %v1938_v3  ;;  %v3815_v10 = vpop.f32.mrf.mxu0  ;;  %v4086_v19 = vpop.eup %4085  ;;  %v1910_v32 = vadd.f32 %v1878_v9, %v1718_v18 }
 0x1da   : > { %v1635_v53 = vpop.f32.mrf.mxu1  ;;  %v3816_v11 = vadd.f32 %v3815_v10, %v3814_v4  ;;  %v4864_v12 = vadd.f32 %v1630_v48, %v1470_v6  ;;  %2158 = vmatprep.mubr.bf16.mxu0 %v4208_v2  ;;  %2351 = vmatprep.mubr.bf16.mxu1 %v4208_v2  ;;  %v1879_v13 = vmul.f32 %v4086_v19, %v1751_v31  ;;  %v1830_v14 = vmul.f32 1.442695, %v1787_v44  ;;  %v1754_v6 = vld [vmem:[%s4729_s26 + $0x50] sm:$0xff] }
 0x1db   : > { %v3817_v15 = vpop.f32.mrf.mxu0  ;;  %3098 = vmatprep.subr.bf16.mxu1 %v4208_v2  ;;  %3880 = vmatpush3.bf16.msra.mxu0 %v4060_v34  ;;  %v4063_v44 = vld [vmem:[%s5480_s8 + $0x10] sm:$0xff]  }
 0x1dc   : > { %v1638_v17 = vpop.f32.mrf.mxu1  ;;  %v1473_v25 = vadd.f32 %v3816_v11, %v4695_v5  ;;  %v1788_v28 = vmul.f32 0.5, %v4864_v12  ;;  %3339 = vrot.lane.b32.xlu0 %v4864_v12, %s4209_s23  ;;  %3099 = vmatpush1.bf16.msra.mxu1 %v4059_v7  ;;  %v1911_v36 = vadd.f32 %v1879_v13, %v1719_v20  ;;  %4093 = vpow2.f32 %v1830_v14  ;;  %v1755_v11 = vld [vmem:[%s4729_s26 + $0x58] sm:$0xff] }
 0x1dd   : > { %v3818_v37 = vpop.f32.mrf.mxu0  ;;  %3100 = vmatprep.subr.bf16.mxu1 %v4208_v2  ;;  %v4088_v21 = vpop.eup %4087  ;;  %3881 = vmatprep.subr.bf16.mxu0 %v4062_v57 }
 0x1de   : > { %v1640_v38 = vpop.f32.mrf.mxu1  ;;  %v1832_v40 = vmul.f32 1.442695, %v1788_v28  ;;  %v3819_v51 = vadd.f32 %v3818_v37, %v3817_v15  ;;  %v4881_v41 = vadd.f32 %v1633_v35, %v1473_v25  ;;  %v1939_v42 = vpack.c.bf16 %v1911_v36, %v1910_v32 }
 0x1df   : > { %v3820_v16 = vpop.f32.mrf.mxu0  ;;  %v1880_v47 = vmul.f32 %v4088_v21, %v1752_v39  ;;  %3882 = vmatpush3.bf16.msra.mxu0 %v4063_v44  ;;  %v1722_v21 = vsel %vm1711_vm3, %v4824_v43, 0.0  ;;  %v1723_v39 = vsel %vm1711_vm3, %v4849_v1, 0.0 }
 0x1e0   : > { %v1641_v33 = vpop.f32.mrf.mxu1  ;;  %v1478_v46 = vadd.f32 %v3819_v51, %v4695_v5  ;;  %3341 = vrot.lane.b32.xlu1 %v4881_v41, %s4209_s23  ;;  %4095 = vpow2.f32 %v1832_v40  ;;  %v1789_v48 = vmul.f32 0.5, %v4881_v41  ;;  %3101 = vmatpush1.bf16.msra.mxu1 %v4061_v56 }
 0x1e1   : > { %3685 = vmatmul.mubr.msk.bf16.gmra.mxu0 %vm2034_vm4, %v1939_v42  ;;  %3702 = vmatmul.mubr.msk.bf16.gmra.mxu1 %vm2034_vm4, %v1939_v42  ;;  %v3821_v49 = vpop.f32.mrf.mxu0  ;;  %v4090_v52 = vpop.eup %4089  ;;  %v1912_v4 = vadd.f32 %v1880_v47, %v1720_v60  ;;  %v1756_v47 = vld [vmem:[%s4729_s26 + $0x60] sm:$0xff] }
 0x1e2   : > { %v1643_v50 = vpop.f32.mrf.mxu1  ;;  %v3822_v54 = vadd.f32 %v3821_v49, %v3820_v16  ;;  %v4890_v55 = vadd.f32 %v1638_v17, %v1478_v46  ;;  %2168 = vmatprep.mubr.bf16.mxu0 %v4208_v2  ;;  %2361 = vmatprep.mubr.bf16.mxu1 %v4208_v2  ;;  %v1881_v58 = vmul.f32 %v4090_v52, %v1753_v45  ;;  %v1834_v62 = vmul.f32 1.442695, %v1789_v48 }
 0x1e3   : > { %v3823_v59 = vpop.f32.mrf.mxu0  ;;  %3102 = vmatprep.subr.bf16.mxu1 %v4208_v2 }
 0x1e4   : > { %v1646_v8 = vpop.f32.mrf.mxu1  ;;  %v1481_v63 = vadd.f32 %v3822_v54, %v4695_v5  ;;  %v1790_v3 = vmul.f32 0.5, %v4890_v55  ;;  %3343 = vrot.lane.b32.xlu0 %v4890_v55, %s4209_s23  ;;  %v1913_v35 = vadd.f32 %v1881_v58, %v1721_v61  ;;  %4097 = vpow2.f32 %v1834_v62  ;;  %v1757_v54 = vld [vmem:[%s4729_s26 + $0x68] sm:$0xff] }
 0x1e5   : > { %v3824_v34 = vpop.f32.mrf.mxu0  ;;  %v4092_v30 = vpop.eup %4091 }
 0x1e6   : > { %v1648_v31 = vpop.f32.mrf.mxu1  ;;  %v1836_v26 = vmul.f32 1.442695, %v1790_v3  ;;  %v3825_v7 = vadd.f32 %v3824_v34, %v3823_v59  ;;  %v4912_v9 = vadd.f32 %v1641_v33, %v1481_v63  ;;  %v1940_v10 = vpack.c.bf16 %v1913_v35, %v1912_v4  ;;  %v4064_v63 = vld [vmem:[%s5480_s8 + $0x88] sm:$0xff]  }
 0x1e7   : > { %v3826_v53 = vpop.f32.mrf.mxu0  ;;  %v1882_v14 = vmul.f32 %v4092_v30, %v1754_v6  ;;  %v4065_v3 = vld [vmem:[%s5480_s8 + $0x48] sm:$0xff]   ;;  %v1724_v30 = vsel %vm1711_vm3, %v4864_v12, 0.0  ;;  %v1725_v6 = vsel %vm1711_vm3, %v4881_v41, 0.0  ;;  %3103 = vmatpush1.bf16.msra.mxu1 %v4064_v63 }
 0x1e8   : > { %v1649_v19 = vpop.f32.mrf.mxu1  ;;  %v1486_v13 = vadd.f32 %v3825_v7, %v4695_v5  ;;  %3345 = vrot.lane.b32.xlu1 %v4912_v9, %s4209_s23  ;;  %4099 = vpow2.f32 %v1836_v26  ;;  %v1791_v15 = vmul.f32 0.5, %v4912_v9  ;;  %3883 = vmatprep.subr.bf16.mxu0 %v4065_v3  ;;  %v1761_v63 = vld [vmem:[%s4729_s26 + $0x88] sm:$0xff] }
 0x1e9   : > { %3686 = vmatmul.mubr.msk.bf16.gmra.mxu0 %vm2034_vm4, %v1940_v10  ;;  %3703 = vmatmul.mubr.msk.bf16.gmra.mxu1 %vm2034_vm4, %v1940_v10  ;;  %v3827_v17 = vpop.f32.mrf.mxu0  ;;  %v4094_v20 = vpop.eup %4093  ;;  %v1914_v42 = vadd.f32 %v1882_v14, %v1722_v21 }
 0x1ea   : > { %v1651_v18 = vpop.f32.mrf.mxu1  ;;  %v3828_v25 = vadd.f32 %v3827_v17, %v3826_v53  ;;  %v4924_v28 = vadd.f32 %v1646_v8, %v1486_v13  ;;  %2178 = vmatprep.mubr.bf16.mxu0 %v4208_v2  ;;  %2371 = vmatprep.mubr.bf16.mxu1 %v4208_v2  ;;  %v1883_v32 = vmul.f32 %v4094_v20, %v1755_v11  ;;  %v1838_v36 = vmul.f32 1.442695, %v1791_v15  ;;  %v1758_v11 = vld [vmem:[%s4729_s26 + $0x70] sm:$0xff]  ;;  %v4066_v15 = vld [vmem:[%s5480_s8 + $0x8] sm:$0xff]  }
 0x1eb   : > { %v3829_v37 = vpop.f32.mrf.mxu0  ;;  %3104 = vmatprep.subr.bf16.mxu1 %v4208_v2  ;;  %3884 = vmatpush3.bf16.msra.mxu0 %v4066_v15 }
 0x1ec   : > { %v1654_v38 = vpop.f32.mrf.mxu1  ;;  %v1489_v40 = vadd.f32 %v3828_v25, %v4695_v5  ;;  %v1792_v51 = vmul.f32 0.5, %v4924_v28  ;;  %3347 = vrot.lane.b32.xlu0 %v4924_v28, %s4209_s23  ;;  %v1915_v16 = vadd.f32 %v1883_v32, %v1723_v39  ;;  %4101 = vpow2.f32 %v1838_v36  ;;  %v1759_v25 = vld [vmem:[%s4729_s26 + $0x78] sm:$0xff] }
 0x1ed   : > { %v3830_v33 = vpop.f32.mrf.mxu0  ;;  %v4096_v46 = vpop.eup %4095 }
 0x1ee   : > { %v1656_v45 = vpop.f32.mrf.mxu1  ;;  %v1840_v43 = vmul.f32 1.442695, %v1792_v51  ;;  %v3831_v48 = vadd.f32 %v3830_v33, %v3829_v37  ;;  %v4939_v49 = vadd.f32 %v1649_v19, %v1489_v40  ;;  %v1941_v1 = vpack.c.bf16 %v1915_v16, %v1914_v42 }
 0x1ef   : > { %v3832_v50 = vpop.f32.mrf.mxu0  ;;  %v1884_v57 = vmul.f32 %v4096_v46, %v1756_v47  ;;  %v1726_v46 = vsel %vm1711_vm3, %v4890_v55, 0.0  ;;  %v1727_v47 = vsel %vm1711_vm3, %v4912_v9, 0.0  ;;  %v4067_v9 = vld [vmem:[%s5480_s8 + $0x80] sm:$0xff]  }
 0x1f0   : > { %v1657_v52 = vpop.f32.mrf.mxu1  ;;  %v1494_v56 = vadd.f32 %v3831_v48, %v4695_v5  ;;  %3349 = vrot.lane.b32.xlu1 %v4939_v49, %s4209_s23  ;;  %4103 = vpow2.f32 %v1840_v43  ;;  %v1793_v58 = vmul.f32 0.5, %v4939_v49  ;;  %3105 = vmatpush1.bf16.msra.mxu1 %v4067_v9 }
 0x1f1   : > { %3687 = vmatmul.mubr.msk.bf16.gmra.mxu0 %vm2034_vm4, %v1941_v1  ;;  %3704 = vmatmul.mubr.msk.bf16.gmra.mxu1 %vm2034_vm4, %v1941_v1  ;;  %v3833_v62 = vpop.f32.mrf.mxu0  ;;  %v4098_v8 = vpop.eup %4097  ;;  %v1916_v44 = vadd.f32 %v1884_v57, %v1724_v30  ;;  %v1760_v57 = vld [vmem:[%s4729_s26 + $0x80] sm:$0xff] }
 0x1f2   : > { %v1659_v59 = vpop.f32.mrf.mxu1  ;;  %v3834_v60 = vadd.f32 %v3833_v62, %v3832_v50  ;;  %v4948_v61 = vadd.f32 %v1654_v38, %v1494_v56  ;;  %2188 = vmatprep.mubr.bf16.mxu0 %v4208_v2  ;;  %2381 = vmatprep.mubr.bf16.mxu1 %v4208_v2  ;;  %v1885_v4 = vmul.f32 %v4098_v8, %v1757_v54  ;;  %v1842_v35 = vmul.f32 1.442695, %v1793_v58 }
 0x1f3   : > { %v3835_v34 = vpop.f32.mrf.mxu0  ;;  %3120 = vmatprep.subr.bf16.mxu1 %v4208_v2 }
 0x1f4   : > { %v1662_v31 = vpop.f32.mrf.mxu1  ;;  %v1497_v26 = vadd.f32 %v3834_v60, %v4695_v5  ;;  %v1794_v7 = vmul.f32 0.5, %v4948_v61  ;;  %3351 = vrot.lane.b32.xlu0 %v4948_v61, %s4209_s23  ;;  %v1917_v10 = vadd.f32 %v1885_v4, %v1725_v6  ;;  %4105 = vpow2.f32 %v1842_v35 }
 0x1f5   : > { %v3836_v53 = vpop.f32.mrf.mxu0  ;;  %v4100_v12 = vpop.eup %4099 }
 0x1f6   : > { %v1664_v19 = vpop.f32.mrf.mxu1  ;;  %v1844_v41 = vmul.f32 1.442695, %v1794_v7  ;;  %v3837_v13 = vadd.f32 %v3836_v53, %v3835_v34  ;;  %v4970_v14 = vadd.f32 %v1657_v52, %v1497_v26  ;;  %v1942_v17 = vpack.c.bf16 %v1917_v10, %v1916_v44  ;;  %v4068_v7 = vld [vmem:[%s5480_s8 + $0x40] sm:$0xff]  }
 0x1f7   : > { %v3838_v18 = vpop.f32.mrf.mxu0  ;;  %v1886_v36 = vmul.f32 %v4100_v12, %v1758_v11  ;;  %v1728_v12 = vsel %vm1711_vm3, %v4924_v28, 0.0  ;;  %v1729_v11 = vsel %vm1711_vm3, %v4939_v49, 0.0  ;;  %3885 = vmatprep.subr.bf16.mxu0 %v4068_v7  ;;  %v1762_v28 = vld [vmem:[%s4729_s26 + $0x90] sm:$0xff]  ;;  %v4069_v49 = vld [vmem:[%s5480_s8] sm:$0xff]  }
 0x1f8   : > { %v1665_v20 = vpop.f32.mrf.mxu1  ;;  %v1502_v32 = vadd.f32 %v3837_v13, %v4695_v5  ;;  %3353 = vrot.lane.b32.xlu1 %v4970_v14, %s4209_s23  ;;  %4107 = vpow2.f32 %v1844_v41  ;;  %v1795_v37 = vmul.f32 0.5, %v4970_v14  ;;  %3886 = vmatpush3.bf16.msra.mxu0 %v4069_v49 }
 0x1f9   : > { %3688 = vmatmul.mubr.msk.bf16.gmra.mxu0 %vm2034_vm4, %v1942_v17  ;;  %3705 = vmatmul.mubr.msk.bf16.gmra.mxu1 %vm2034_vm4, %v1942_v17  ;;  %v3839_v38 = vpop.f32.mrf.mxu0  ;;  %v4102_v39 = vpop.eup %4101  ;;  %v1918_v1 = vadd.f32 %v1886_v36, %v1726_v46 }
 0x1fa   : > { %v1667_v21 = vpop.f32.mrf.mxu1  ;;  %v3840_v40 = vadd.f32 %v3839_v38, %v3838_v18  ;;  %v4982_v51 = vadd.f32 %v1662_v31, %v1502_v32  ;;  %2198 = vmatprep.mubr.bf16.mxu0 %v4208_v2  ;;  %2391 = vmatprep.mubr.bf16.mxu1 %v4208_v2  ;;  %v1887_v42 = vmul.f32 %v4102_v39, %v1759_v25  ;;  %v1846_v16 = vmul.f32 1.442695, %v1795_v37 }
 0x1fb   : > { %v3841_v33 = vpop.f32.mrf.mxu0 }
 0x1fc   : > { %v1670_v45 = vpop.f32.mrf.mxu1  ;;  %v1505_v43 = vadd.f32 %v3840_v40, %v4695_v5  ;;  %v1796_v48 = vmul.f32 0.5, %v4982_v51  ;;  %3355 = vrot.lane.b32.xlu0 %v4982_v51, %s4209_s23  ;;  %v1919_v50 = vadd.f32 %v1887_v42, %v1727_v47  ;;  %4109 = vpow2.f32 %v1846_v16  ;;  %v1763_v40 = vld [vmem:[%s4729_s26 + $0x98] sm:$0xff] }
 0x1fd   : > { %v3842_v52 = vpop.f32.mrf.mxu0  ;;  %v4104_v56 = vpop.eup %4103 }
 0x1fe   : > { %v1672_v54 = vpop.f32.mrf.mxu1  ;;  %v1848_v55 = vmul.f32 1.442695, %v1796_v48  ;;  %v3843_v58 = vadd.f32 %v3842_v52, %v3841_v33  ;;  %v4997_v62 = vadd.f32 %v1665_v20, %v1505_v43  ;;  %v1943_v59 = vpack.c.bf16 %v1919_v50, %v1918_v1 }
 0x1ff   : > { %v3844_v8 = vpop.f32.mrf.mxu0  ;;  %v1888_v4 = vmul.f32 %v4104_v56, %v1760_v57  ;;  %v1730_v56 = vsel %vm1711_vm3, %v4948_v61, 0.0  ;;  %v1731_v57 = vsel %vm1711_vm3, %v4970_v14, 0.0 }
 0x200   : > { %v1673_v60 = vpop.f32.mrf.mxu1  ;;  %v1510_v3 = vadd.f32 %v3843_v58, %v4695_v5  ;;  %3357 = vrot.lane.b32.xlu1 %v4997_v62, %s4209_s23  ;;  %4111 = vpow2.f32 %v1848_v55  ;;  %v1797_v35 = vmul.f32 0.5, %v4997_v62 }
 0x201   : > { %3689 = vmatmul.mubr.msk.bf16.gmra.mxu0 %vm2034_vm4, %v1943_v59  ;;  %3706 = vmatmul.mubr.msk.bf16.gmra.mxu1 %vm2034_vm4, %v1943_v59  ;;  %v3845_v34 = vpop.f32.mrf.mxu0  ;;  %v4106_v30 = vpop.eup %4105  ;;  %v1920_v15 = vadd.f32 %v1888_v4, %v1728_v12 }
 0x202   : > { %v1675_v31 = vpop.f32.mrf.mxu1  ;;  %v3846_v6 = vadd.f32 %v3845_v34, %v3844_v8  ;;  %v5009_v26 = vadd.f32 %v1670_v45, %v1510_v3  ;;  %2208 = vmatprep.mubr.bf16.mxu0 %v4208_v2  ;;  %2401 = vmatprep.mubr.bf16.mxu1 %v4208_v2  ;;  %v1889_v44 = vmul.f32 %v4106_v30, %v1761_v63  ;;  %v1850_v10 = vmul.f32 1.442695, %v1797_v35  ;;  %v1764_v3 = vld [vmem:[%s4729_s26 + $0xa0] sm:$0xff]  ;;  %v1765_v30 = vld [vmem:[%s4729_s26 + $0xa8] sm:$0xff] }
 0x203   : > { %v3847_v53 = vpop.f32.mrf.mxu0 }
 0x204   : > { %v1678_v19 = vpop.f32.mrf.mxu1  ;;  %v1513_v41 = vadd.f32 %v3846_v6, %v4695_v5  ;;  %v1798_v13 = vmul.f32 0.5, %v5009_v26  ;;  %3359 = vrot.lane.b32.xlu0 %v5009_v26, %s4209_s23  ;;  %v1921_v17 = vadd.f32 %v1889_v44, %v1729_v11  ;;  %4113 = vpow2.f32 %v1850_v10 }
 0x205   : > { %v3848_v18 = vpop.f32.mrf.mxu0  ;;  %v4108_v25 = vpop.eup %4107 }
 0x206   : > { %v1680_v20 = vpop.f32.mrf.mxu1  ;;  %v1852_v32 = vmul.f32 1.442695, %v1798_v13  ;;  %v3849_v36 = vadd.f32 %v3848_v18, %v3847_v53  ;;  %v5028_v37 = vadd.f32 %v1673_v60, %v1513_v41  ;;  %v1944_v38 = vpack.c.bf16 %v1921_v17, %v1920_v15 }
 0x207   : > { %v3850_v21 = vpop.f32.mrf.mxu0  ;;  %v1890_v16 = vmul.f32 %v4108_v25, %v1762_v28  ;;  %v1732_v18 = vsel %vm1711_vm3, %v4982_v51, 0.0  ;;  %v1733_v20 = vsel %vm1711_vm3, %v4997_v62, 0.0  ;;  %v5080_v25 = vld [vmem:[%s5477_s5] ss:$0 sm:$0xff] }
 0x208   : > { %v1681_v39 = vpop.f32.mrf.mxu1  ;;  %v1518_v42 = vadd.f32 %v3849_v36, %v4695_v5  ;;  %3361 = vrot.lane.b32.xlu1 %v5028_v37, %s4209_s23  ;;  %4115 = vpow2.f32 %v1852_v32  ;;  %v1799_v33 = vmul.f32 0.5, %v5028_v37 }
 0x209   : > { %3690 = vmatmul.mubr.msk.bf16.gmra.mxu0 %vm2034_vm4, %v1944_v38  ;;  %3707 = vmatmul.mubr.msk.bf16.gmra.mxu1 %vm2034_vm4, %v1944_v38  ;;  %v3851_v45 = vpop.f32.mrf.mxu0  ;;  %v4110_v47 = vpop.eup %4109  ;;  %v1922_v9 = vadd.f32 %v1890_v16, %v1730_v56 }
 0x20a   : > { %v1683_v46 = vpop.f32.mrf.mxu1  ;;  %v3852_v43 = vadd.f32 %v3851_v45, %v3850_v21  ;;  %v5040_v48 = vadd.f32 %v1678_v19, %v1518_v42  ;;  %2218 = vmatprep.mubr.bf16.mxu0 %v4208_v2  ;;  %2411 = vmatprep.mubr.bf16.mxu1 %v4208_v2  ;;  %v1891_v1 = vmul.f32 %v4110_v47, %v1763_v40  ;;  %v1854_v50 = vmul.f32 1.442695, %v1799_v33  ;;  %v1766_v21 = vld [vmem:[%s4729_s26 + $0xb0] sm:$0xff] }
 0x20b   : > { %v3853_v52 = vpop.f32.mrf.mxu0  ;;  %v1767_v46 = vld [vmem:[%s4729_s26 + $0xb8] sm:$0xff] }
 0x20c   : > { %v1686_v54 = vpop.f32.mrf.mxu1  ;;  %v1521_v55 = vadd.f32 %v3852_v43, %v4695_v5  ;;  %v1800_v58 = vmul.f32 0.5, %v5040_v48  ;;  %3363 = vrot.lane.b32.xlu0 %v5040_v48, %s4209_s23  ;;  %v1923_v59 = vadd.f32 %v1891_v1, %v1731_v57  ;;  %4117 = vpow2.f32 %v1854_v50 }
 0x20d   : > { %v3854_v8 = vpop.f32.mrf.mxu0  ;;  %v4112_v63 = vpop.eup %4111 }
 0x20e   : > { %v1688_v60 = vpop.f32.mrf.mxu1  ;;  %v1856_v61 = vmul.f32 1.442695, %v1800_v58  ;;  %v3855_v4 = vadd.f32 %v3854_v8, %v3853_v52  ;;  %v5055_v35 = vadd.f32 %v1681_v39, %v1521_v55  ;;  %v1945_v14 = vpack.c.bf16 %v1923_v59, %v1922_v9 }
 0x20f   : > { %v3856_v34 = vpop.f32.mrf.mxu0  ;;  %v1892_v7 = vmul.f32 %v4112_v63, %v1764_v3  ;;  %v1734_v8 = vsel %vm1711_vm3, %v5009_v26, 0.0  ;;  %v1735_v60 = vsel %vm1711_vm3, %v5028_v37, 0.0 }
 0x210   : > { %v1689_v31 = vpop.f32.mrf.mxu1  ;;  %v1526_v6 = vadd.f32 %v3855_v4, %v4695_v5  ;;  %3365 = vrot.lane.b32.xlu1 %v5055_v35, %s4209_s23  ;;  %4119 = vpow2.f32 %v1856_v61  ;;  %v1801_v44 = vmul.f32 0.5, %v5055_v35  ;;  %v4070_v5 = vld [vmem:[%s5480_s8 + $0xc0] sm:$0xff]  }
 0x211   : > { %3691 = vmatmul.mubr.msk.bf16.gmra.mxu0 %vm2034_vm4, %v1945_v14  ;;  %3708 = vmatmul.mubr.msk.bf16.gmra.mxu1 %vm2034_vm4, %v1945_v14  ;;  %v3857_v10 = vpop.f32.mrf.mxu0  ;;  %v4114_v19 = vpop.eup %4113  ;;  %v1924_v36 = vadd.f32 %v1892_v7, %v1732_v18 }
 0x212   : > { %v1691_v53 = vpop.f32.mrf.mxu1  ;;  %v3858_v12 = vadd.f32 %v3857_v10, %v3856_v34  ;;  %v5064_v11 = vadd.f32 %v1686_v54, %v1526_v6  ;;  %2228 = vmatprep.mubr.bf16.mxu0 %v4208_v2  ;;  %2421 = vmatprep.mubr.bf16.mxu1 %v4208_v2  ;;  %v1893_v41 = vmul.f32 %v4114_v19, %v1765_v30  ;;  %v1858_v13 = vmul.f32 1.442695, %v1801_v44  ;;  %v1768_v30 = vld [vmem:[%s4729_s26 + $0xc0] sm:$0xff] }
 0x213   : > { %v3859_v15 = vpop.f32.mrf.mxu0  ;;  %3121 = vmatpush2.bf16.msra.mxu1 %v4070_v5  ;;  %v1769_v53 = vld [vmem:[%s4729_s26 + $0xc8] sm:$0xff] }
 0x214   : > { %v1694_v17 = vpop.f32.mrf.mxu1  ;;  %v1529_v28 = vadd.f32 %v5080_v25, %v3858_v12  ;;  %v1802_v32 = vmul.f32 0.5, %v5064_v11  ;;  %3367 = vrot.lane.b32.xlu0 %v5064_v11, %s4209_s23  ;;  %v1925_v51 = vadd.f32 %v1893_v41, %v1733_v20  ;;  %4121 = vpow2.f32 %v1858_v13 }
 0x215   : > { %v3860_v49 = vpop.f32.mrf.mxu0  ;;  %v4116_v62 = vpop.eup %4115 }
 0x216   : > { %v1696_v38 = vpop.f32.mrf.mxu1  ;;  %v1860_v39 = vmul.f32 1.442695, %v1802_v32  ;;  %v3861_v40 = vadd.f32 %v3860_v49, %v3859_v15  ;;  %v5087_v42 = vadd.f32 %v1689_v31, %v1529_v28  ;;  %v1946_v16 = vpack.c.bf16 %v1925_v51, %v1924_v36 }
 0x217   : > { %v3862_v33 = vpop.f32.mrf.mxu0  ;;  %v1894_v43 = vmul.f32 %v4116_v62, %v1766_v21  ;;  %v1736_v32 = vsel %vm1711_vm3, %v5040_v48, 0.0  ;;  %v1737_v36 = vsel %vm1711_vm3, %v5055_v35, 0.0 }
 0x218   : > { %v1697_v45 = vpop.f32.mrf.mxu1  ;;  %v1534_v47 = vadd.f32 %v5080_v25, %v3861_v40  ;;  %3369 = vrot.lane.b32.xlu1 %v5087_v42, %s4209_s23  ;;  %4123 = vpow2.f32 %v1860_v39  ;;  %v1803_v1 = vmul.f32 0.5, %v5087_v42  ;;  %v1770_v39 = vld [vmem:[%s4729_s26 + $0xd0] sm:$0xff] }
 0x219   : > { %3692 = vmatmul.mubr.msk.bf16.gmra.mxu0 %vm2034_vm4, %v1946_v16  ;;  %3709 = vmatmul.mubr.msk.bf16.gmra.mxu1 %vm2034_vm4, %v1946_v16  ;;  %v3863_v50 = vpop.f32.mrf.mxu0  ;;  %v4118_v54 = vpop.eup %4117  ;;  %v1926_v61 = vadd.f32 %v1894_v43, %v1734_v8  ;;  %v1738_v43 = vsel %vm1711_vm3, %v5064_v11, 0.0 }
 0x21a   : > { %v1699_v52 = vpop.f32.mrf.mxu1  ;;  %v3864_v56 = vadd.f32 %v3863_v50, %v3862_v33  ;;  %v5096_v57 = vadd.f32 %v1694_v17, %v1534_v47  ;;  %2238 = vmatprep.mubr.bf16.mxu0 %v4208_v2  ;;  %2431 = vmatprep.mubr.bf16.mxu1 %v4208_v2  ;;  %v1895_v55 = vmul.f32 %v4118_v54, %v1767_v46  ;;  %v1862_v58 = vmul.f32 1.442695, %v1803_v1 }
 0x21b   : > { %v3865_v9 = vpop.f32.mrf.mxu0  ;;  %v1739_v1 = vsel %vm1711_vm3, %v5087_v42, 0.0 }
 0x21c   : > { %v1702_v59 = vpop.f32.mrf.mxu1  ;;  %v1537_v63 = vadd.f32 %v5080_v25, %v3864_v56  ;;  %v1804_v3 = vmul.f32 0.5, %v5096_v57  ;;  %3371 = vrot.lane.b32.xlu0 %v5096_v57, %s4209_s23  ;;  %v1927_v4 = vadd.f32 %v1895_v55, %v1735_v60  ;;  %4125 = vpow2.f32 %v1862_v58  ;;  %v1772_v56 = vld [vmem:[%s4729_s26 + $0xe0] sm:$0xff]  ;;  %v1773_v58 = vld [vmem:[%s4729_s26 + $0xe8] sm:$0xff] }
 0x21d   : > { %v3866_v14 = vpop.f32.mrf.mxu0  ;;  %v4120_v31 = vpop.eup %4119  ;;  %v1740_v42 = vsel %vm1711_vm3, %v5096_v57, 0.0 }
 0x21e   : > { %v1704_v34 = vpop.f32.mrf.mxu1  ;;  %v1864_v26 = vmul.f32 1.442695, %v1804_v3  ;;  %v3867_v6 = vadd.f32 %v3866_v14, %v3865_v9  ;;  %v5111_v7 = vadd.f32 %v1697_v45, %v1537_v63  ;;  %v1947_v37 = vpack.c.bf16 %v1927_v4, %v1926_v61  ;;  %v1771_v45 = vld [vmem:[%s4729_s26 + $0xd8] sm:$0xff]  ;;  %v1774_v61 = vld [vmem:[%s4729_s26 + $0xf0] sm:$0xff] }
 0x21f   : > { %v3868_v44 = vpop.f32.mrf.mxu0  ;;  %v1896_v12 = vmul.f32 %v4120_v31, %v1768_v30  ;;  %v1775_v14 = vld [vmem:[%s4729_s26 + $0xf8] sm:$0xff] }
 0x220   : > { %v1705_v10 = vpop.f32.mrf.mxu1  ;;  %v1542_v19 = vadd.f32 %v5080_v25, %v3867_v6  ;;  %3373 = vrot.lane.b32.xlu1 %v5111_v7, %s4209_s23  ;;  %4127 = vpow2.f32 %v1864_v26  ;;  %v1805_v5 = vmul.f32 0.5, %v5111_v7  ;;  %v1741_v8 = vsel %vm1711_vm3, %v5111_v7, 0.0 }
 0x221   : > { %3693 = vmatmul.mubr.msk.bf16.gmra.mxu0 %vm2034_vm4, %v1947_v37  ;;  %3710 = vmatmul.mubr.msk.bf16.gmra.mxu1 %vm2034_vm4, %v1947_v37  ;;  %v3869_v41 = vpop.f32.mrf.mxu0  ;;  %v4122_v15 = vpop.eup %4121  ;;  %v1928_v38 = vadd.f32 %v1896_v12, %v1736_v32 }
 0x222   : > { %v1707_v13 = vpop.f32.mrf.mxu1  ;;  %v3870_v17 = vadd.f32 %v3869_v41, %v3868_v44  ;;  %v1703_v18 = vadd.f32 %v1702_v59, %v1542_v19  ;;  %2248 = vmatprep.mubr.bf16.mxu0 %v4208_v2  ;;  %2441 = vmatprep.mubr.bf16.mxu1 %v4208_v2  ;;  %v1897_v20 = vmul.f32 %v4122_v15, %v1769_v53  ;;  %v1866_v28 = vmul.f32 1.442695, %v1805_v5  ;;  %v1962_v44 = vld [vmem:[%s5479_s7] sm:$0xf] }
 0x223   : > { %v5176_v0 = vrot.slane %v1962_v44, %v446_v29  ;;  %v5180_v12 = vrot.slane %v1962_v44, %v458_v24  ;;  %v5184_v5 = vrot.slane %v1962_v44, %v454_v23 }
 0x224   : > { %v1545_v51 = vadd.f32 %v5080_v25, %v3870_v17  ;;  %v1806_v49 = vmul.f32 0.5, %v1703_v18  ;;  %3375 = vrot.lane.b32.xlu0 %v1703_v18, %s4209_s23  ;;  %v1929_v62 = vadd.f32 %v1897_v20, %v1737_v36  ;;  %4129 = vpow2.f32 %v1866_v28 }
 0x225   : > { %v4124_v21 = vpop.eup %4123  ;;  %v1742_v57 = vsel %vm1711_vm3, %v1703_v18, 0.0 }
 0x226   : > { %v1868_v40 = vmul.f32 1.442695, %v1806_v49  ;;  %v1706_v16 = vadd.f32 %v1705_v10, %v1545_v51  ;;  %v1948_v33 = vpack.c.bf16 %v1929_v62, %v1928_v38  ;;  %v1898_v35 = vmul.f32 %v4124_v21, %v1770_v39 }
 0x228   : > { %4131 = vpow2.f32 %v1868_v40  ;;  %v1807_v48 = vmul.f32 0.5, %v1706_v16  ;;  %3377 = vrot.lane.b32.xlu1 %v1706_v16, %s4209_s23  ;;  %v1930_v50 = vadd.f32 %v1898_v35, %v1738_v43  ;;  %v1743_v26 = vsel %vm1711_vm3, %v1706_v16, 0.0 }
 0x229   : > { %3694 = vmatmul.mubr.msk.bf16.gmra.mxu0 %vm2034_vm4, %v1948_v33  ;;  %3711 = vmatmul.mubr.msk.bf16.gmra.mxu1 %vm2034_vm4, %v1948_v33  ;;  %v4126_v25 = vpop.eup %4125 }
 0x22a   : > { %v1870_v46 = vmul.f32 1.442695, %v1807_v48  ;;  %2258 = vmatprep.mubr.bf16.mxu0 %v4208_v2  ;;  %2451 = vmatprep.mubr.bf16.mxu1 %v4208_v2  ;;  %v1899_v47 = vmul.f32 %v4126_v25, %v1771_v45 }
 0x22c   : > { %4133 = vpow2.f32 %v1870_v46  ;;  %v1931_v52 = vadd.f32 %v1899_v47, %v1739_v1 }
 0x22d   : > { %v4128_v54 = vpop.eup %4127 }
 0x22e   : > { %v1949_v55 = vpack.c.bf16 %v1931_v52, %v1930_v50  ;;  %v1900_v9 = vmul.f32 %v4128_v54, %v1772_v56 }
 0x230   : > { %v1932_v63 = vadd.f32 %v1900_v9, %v1740_v42 }
 0x231   : > { %3695 = vmatmul.mubr.msk.bf16.gmra.mxu0 %vm2034_vm4, %v1949_v55  ;;  %3712 = vmatmul.mubr.msk.bf16.gmra.mxu1 %vm2034_vm4, %v1949_v55  ;;  %v4130_v59 = vpop.eup %4129 }
 0x232   : > { %2268 = vmatprep.mubr.bf16.mxu0 %v4208_v2  ;;  %2461 = vmatprep.mubr.bf16.mxu1 %v4208_v2  ;;  %v1901_v11 = vmul.f32 %v4130_v59, %v1773_v58 }
 0x234   : > { %v1933_v3 = vadd.f32 %v1901_v11, %v1741_v8 }
 0x235   : > { %v4132_v60 = vpop.eup %4131 }
 0x236   : > { %v1950_v4 = vpack.c.bf16 %v1933_v3, %v1932_v63  ;;  %v1902_v34 = vmul.f32 %v4132_v60, %v1774_v61 }
 0x238   : > { %v1934_v6 = vadd.f32 %v1902_v34, %v1742_v57 }
 0x239   : > { %v4134_v31 = vpop.eup %4133  ;;  %3696 = vmatmul.mubr.msk.bf16.gmra.mxu0 %vm2034_vm4, %v1950_v4  ;;  %3713 = vmatmul.mubr.msk.bf16.gmra.mxu1 %vm2034_vm4, %v1950_v4 }
 0x23a   : > { %v1903_v30 = vmul.f32 %v4134_v31, %v1775_v14  ;;  %2278 = vmatprep.mubr.bf16.mxu0 %v4208_v2  ;;  %2471 = vmatprep.mubr.bf16.mxu1 %v4208_v2  ;;  %v5172_v2 = vrot.slane %v1962_v44, %v450_v27 }
 0x23c   : > { %v1935_v7 = vadd.f32 %v1903_v30, %v1743_v26 }
 0x23e   : > { %v1951_v37 = vpack.c.bf16 %v1935_v7, %v1934_v6 }
 0x241   : > { %3697 = vmatmul.mubr.msk.bf16.gmra.mxu0 %vm2034_vm4, %v1951_v37  ;;  %3714 = vmatmul.mubr.msk.bf16.gmra.mxu1 %vm2034_vm4, %v1951_v37 }
 0x288   : > { %v2130_v10 = vpop.f32.mrf.mxu0  ;;  %v2323_v53 = vpop.f32.mrf.mxu1 }
 0x289   : > { %v2131_v18 = vadd.f32 %v2130_v10, %v5176_v0  ;;  %v2324_v24 = vadd.f32 %v2323_v53, %v5184_v5 }
 0x28a   : > { %v2132_v19 = vpop.f32.mrf.mxu0  ;;  %v2325_v41 = vpop.f32.mrf.mxu1 }
 0x28b   : > { %v2133_v15 = vadd.f32 %v2132_v19, %v5172_v2  ;;  %v2326_v29 = vadd.f32 %v2325_v41, %v5180_v12  ;;  %v2482_v39 = vmax.f32 %v2131_v18, 0.0  ;;  %v2484_v45 = vmax.f32 %v2324_v24, 0.0 }
 0x28c   : > { %v2134_v13 = vpop.f32.mrf.mxu0  ;;  %v2327_v17 = vpop.f32.mrf.mxu1 }
 0x28d   : > { %v2135_v27 = vadd.f32 %v2134_v13, %v5176_v0  ;;  %v2328_v20 = vadd.f32 %v2327_v17, %v5184_v5  ;;  %v2483_v49 = vmax.f32 %v2133_v15, 0.0  ;;  %v2485_v40 = vmax.f32 %v2326_v29, 0.0 }
 0x28e   : > { %v2136_v28 = vpop.f32.mrf.mxu0  ;;  %v2329_v23 = vpop.f32.mrf.mxu1 }
 0x28f   : > { %v2137_v22 = vadd.f32 %v2136_v28, %v5172_v2  ;;  %v2486_v32 = vmax.f32 %v2135_v27, 0.0  ;;  %v2330_v36 = vadd.f32 %v2329_v23, %v5180_v12  ;;  %v2488_v38 = vmax.f32 %v2328_v20, 0.0 }
 0x290   : > { %v2140_v51 = vpop.f32.mrf.mxu0  ;;  %v2333_v21 = vpop.f32.mrf.mxu1 }
 0x291   : > { %v2487_v62 = vmax.f32 %v2137_v22, 0.0  ;;  %v2489_v16 = vmax.f32 %v2330_v36, 0.0  ;;  %v2610_v25 = vpack.c.bf16 %v2486_v32, %v2482_v39  ;;  %v2612_v43 = vpack.c.bf16 %v2488_v38, %v2484_v45 }
 0x292   : > { %v2142_v33 = vpop.f32.mrf.mxu0  ;;  %v2335_v48 = vpop.f32.mrf.mxu1  ;;  %v2141_v54 = vadd.f32 %v2140_v51, %v5176_v0  ;;  %v2334_v9 = vadd.f32 %v2333_v21, %v5184_v5 }
 0x293   : > { %v2611_v35 = vpack.c.bf16 %v2487_v62, %v2483_v49  ;;  %v2613_v46 = vpack.c.bf16 %v2489_v16, %v2485_v40  ;;  %v2143_v1 = vadd.f32 %v2142_v33, %v5172_v2  ;;  %v2336_v56 = vadd.f32 %v2335_v48, %v5180_v12 }
 0x294   : > { %v2144_v47 = vpop.f32.mrf.mxu0  ;;  %v2337_v52 = vpop.f32.mrf.mxu1  ;;  %v2490_v14 = vmax.f32 %v2141_v54, 0.0  ;;  %v2492_v30 = vmax.f32 %v2334_v9, 0.0 }
 0x295   : > { %v2145_v50 = vadd.f32 %v2144_v47, %v5176_v0  ;;  %2961 = vmatprep.mubr.bf16.mxu0 %v2611_v35  ;;  %v2338_v55 = vadd.f32 %v2337_v52, %v5184_v5  ;;  %3741 = vmatprep.mubr.msk.bf16.mxu1 %vm1338_vm2, %v2613_v46  ;;  %v2491_v60 = vmax.f32 %v2143_v1, 0.0  ;;  %v2493_v34 = vmax.f32 %v2336_v56, 0.0 }
 0x296   : > { %v2146_v58 = vpop.f32.mrf.mxu0  ;;  %2962 = vmatmul.mubr.bf16.vlgmr.msra.gmra.mxu0 %v2610_v25  ;;  %v2339_v11 = vpop.f32.mrf.mxu1  ;;  %3123 = vmatmul.mubr.bf16.vlgmr.msra.gmra.mxu1 %v2612_v43 }
 0x297   : > { %v2147_v59 = vadd.f32 %v2146_v58, %v5172_v2  ;;  %v2494_v42 = vmax.f32 %v2145_v50, 0.0  ;;  %v2340_v8 = vadd.f32 %v2339_v11, %v5180_v12  ;;  %v2496_v63 = vmax.f32 %v2338_v55, 0.0 }
 0x299   : > { %v2495_v3 = vmax.f32 %v2147_v59, 0.0  ;;  %v2150_v61 = vpop.f32.mrf.mxu0  ;;  %v2343_v4 = vpop.f32.mrf.mxu1  ;;  %v2497_v31 = vmax.f32 %v2340_v8, 0.0  ;;  %v2614_v7 = vpack.c.bf16 %v2494_v42, %v2490_v14  ;;  %v2616_v44 = vpack.c.bf16 %v2496_v63, %v2492_v30 }
 0x29a   : > { %v2151_v27 = vadd.f32 %v2150_v61, %v5176_v0  ;;  %v2344_v17 = vadd.f32 %v2343_v4, %v5184_v5 }
 0x29b   : > { %v2152_v57 = vpop.f32.mrf.mxu0  ;;  %v2345_v26 = vpop.f32.mrf.mxu1  ;;  %v2615_v6 = vpack.c.bf16 %v2495_v3, %v2491_v60  ;;  %v2617_v37 = vpack.c.bf16 %v2497_v31, %v2493_v34 }
 0x29c   : > { %v2153_v10 = vadd.f32 %v2152_v57, %v5172_v2  ;;  %v2346_v41 = vadd.f32 %v2345_v26, %v5180_v12  ;;  %v2498_v62 = vmax.f32 %v2151_v27, 0.0  ;;  %v2500_v21 = vmax.f32 %v2344_v17, 0.0 }
 0x29d   : > { %v2154_v53 = vpop.f32.mrf.mxu0  ;;  %v2347_v19 = vpop.f32.mrf.mxu1  ;;  %2969 = vmatprep.mubr.bf16.mxu0 %v2615_v6  ;;  %3742 = vmatprep.mubr.msk.bf16.mxu1 %vm1338_vm2, %v2617_v37 }
 0x29e   : > { %v2155_v13 = vadd.f32 %v2154_v53, %v5176_v0  ;;  %v2348_v15 = vadd.f32 %v2347_v19, %v5184_v5  ;;  %2970 = vmatmul.mubr.bf16.gmra.mxu0 %v2614_v7  ;;  %3131 = vmatmul.mubr.bf16.gmra.mxu1 %v2616_v44  ;;  %v2499_v36 = vmax.f32 %v2153_v10, 0.0  ;;  %v2501_v51 = vmax.f32 %v2346_v41, 0.0 }
 0x29f   : > { %v2156_v18 = vpop.f32.mrf.mxu0  ;;  %v2349_v29 = vpop.f32.mrf.mxu1 }
 0x2a0   : > { %v2157_v20 = vadd.f32 %v2156_v18, %v5172_v2  ;;  %v2350_v28 = vadd.f32 %v2349_v29, %v5180_v12  ;;  %v2502_v24 = vmax.f32 %v2155_v13, 0.0  ;;  %v2504_v22 = vmax.f32 %v2348_v15, 0.0 }
 0x2a1   : > { %v2160_v23 = vpop.f32.mrf.mxu0  ;;  %v2353_v32 = vpop.f32.mrf.mxu1 }
 0x2a2   : > { %v2503_v49 = vmax.f32 %v2157_v20, 0.0  ;;  %v2505_v38 = vmax.f32 %v2350_v28, 0.0  ;;  %v2618_v45 = vpack.c.bf16 %v2502_v24, %v2498_v62  ;;  %v2620_v48 = vpack.c.bf16 %v2504_v22, %v2500_v21 }
 0x2a3   : > { %v2162_v39 = vpop.f32.mrf.mxu0  ;;  %v2355_v40 = vpop.f32.mrf.mxu1  ;;  %v2161_v50 = vadd.f32 %v2160_v23, %v5176_v0  ;;  %v2354_v52 = vadd.f32 %v2353_v32, %v5184_v5 }
 0x2a4   : > { %v2621_v16 = vpack.c.bf16 %v2505_v38, %v2501_v51  ;;  %v2619_v33 = vpack.c.bf16 %v2503_v49, %v2499_v36  ;;  %v2163_v35 = vadd.f32 %v2162_v39, %v5172_v2  ;;  %v2356_v47 = vadd.f32 %v2355_v40, %v5180_v12 }
 0x2a5   : > { %v2164_v25 = vpop.f32.mrf.mxu0  ;;  %v2357_v46 = vpop.f32.mrf.mxu1  ;;  %v2506_v61 = vmax.f32 %v2161_v50, 0.0  ;;  %v2508_v4 = vmax.f32 %v2354_v52, 0.0 }
 0x2a6   : > { %v2165_v43 = vadd.f32 %v2164_v25, %v5176_v0  ;;  %v2358_v1 = vadd.f32 %v2357_v46, %v5184_v5  ;;  %2977 = vmatprep.mubr.bf16.mxu0 %v2619_v33  ;;  %3743 = vmatprep.mubr.msk.bf16.mxu1 %vm1338_vm2, %v2621_v16  ;;  %v2507_v8 = vmax.f32 %v2163_v35, 0.0  ;;  %v2509_v60 = vmax.f32 %v2356_v47, 0.0 }
 0x2a7   : > { %v2166_v54 = vpop.f32.mrf.mxu0  ;;  %v2359_v56 = vpop.f32.mrf.mxu1  ;;  %2978 = vmatmul.mubr.bf16.gmra.mxu0 %v2618_v45  ;;  %3139 = vmatmul.mubr.bf16.gmra.mxu1 %v2620_v48 }
 0x2a8   : > { %v2167_v55 = vadd.f32 %v2166_v54, %v5172_v2  ;;  %v2360_v58 = vadd.f32 %v2359_v56, %v5180_v12  ;;  %v2510_v9 = vmax.f32 %v2165_v43, 0.0  ;;  %v2512_v59 = vmax.f32 %v2358_v1, 0.0 }
 0x2a9   : > { %v2170_v11 = vpop.f32.mrf.mxu0  ;;  %v2363_v42 = vpop.f32.mrf.mxu1 }
 0x2aa   : > { %v2511_v63 = vmax.f32 %v2167_v55, 0.0  ;;  %v2513_v3 = vmax.f32 %v2360_v58, 0.0  ;;  %v2622_v57 = vpack.c.bf16 %v2510_v9, %v2506_v61  ;;  %v2624_v26 = vpack.c.bf16 %v2512_v59, %v2508_v4 }
 0x2ab   : > { %v2172_v14 = vpop.f32.mrf.mxu0  ;;  %v2365_v34 = vpop.f32.mrf.mxu1  ;;  %v2171_v19 = vadd.f32 %v2170_v11, %v5176_v0  ;;  %v2364_v41 = vadd.f32 %v2363_v42, %v5184_v5 }
 0x2ac   : > { %v2625_v31 = vpack.c.bf16 %v2513_v3, %v2509_v60  ;;  %v2623_v30 = vpack.c.bf16 %v2511_v63, %v2507_v8  ;;  %v2173_v6 = vadd.f32 %v2172_v14, %v5172_v2  ;;  %v2366_v44 = vadd.f32 %v2365_v34, %v5180_v12 }
 0x2ad   : > { %v2174_v7 = vpop.f32.mrf.mxu0  ;;  %v2367_v37 = vpop.f32.mrf.mxu1  ;;  %v2514_v36 = vmax.f32 %v2171_v19, 0.0  ;;  %v2516_v51 = vmax.f32 %v2364_v41, 0.0 }
 0x2ae   : > { %v2175_v10 = vadd.f32 %v2174_v7, %v5176_v0  ;;  %v2368_v53 = vadd.f32 %v2367_v37, %v5184_v5  ;;  %2985 = vmatprep.mubr.bf16.mxu0 %v2623_v30  ;;  %3744 = vmatprep.mubr.msk.bf16.mxu1 %vm1338_vm2, %v2625_v31  ;;  %v2515_v24 = vmax.f32 %v2173_v6, 0.0  ;;  %v2517_v22 = vmax.f32 %v2366_v44, 0.0 }
 0x2af   : > { %v2176_v13 = vpop.f32.mrf.mxu0  ;;  %v2369_v15 = vpop.f32.mrf.mxu1  ;;  %2986 = vmatmul.mubr.bf16.gmra.mxu0 %v2622_v57  ;;  %3147 = vmatmul.mubr.bf16.gmra.mxu1 %v2624_v26 }
 0x2b0   : > { %v2177_v27 = vadd.f32 %v2176_v13, %v5172_v2  ;;  %v2370_v17 = vadd.f32 %v2369_v15, %v5180_v12  ;;  %v2518_v18 = vmax.f32 %v2175_v10, 0.0  ;;  %v2520_v29 = vmax.f32 %v2368_v53, 0.0 }
 0x2b1   : > { %v2180_v20 = vpop.f32.mrf.mxu0  ;;  %v2373_v28 = vpop.f32.mrf.mxu1 }
 0x2b2   : > { %v2519_v23 = vmax.f32 %v2177_v27, 0.0  ;;  %v2521_v32 = vmax.f32 %v2370_v17, 0.0  ;;  %v2626_v39 = vpack.c.bf16 %v2518_v18, %v2514_v36  ;;  %v2628_v40 = vpack.c.bf16 %v2520_v29, %v2516_v51 }
 0x2b3   : > { %v2182_v49 = vpop.f32.mrf.mxu0  ;;  %v2375_v38 = vpop.f32.mrf.mxu1  ;;  %v2181_v46 = vadd.f32 %v2180_v20, %v5176_v0  ;;  %v2374_v47 = vadd.f32 %v2373_v28, %v5184_v5 }
 0x2b4   : > { %v2627_v62 = vpack.c.bf16 %v2519_v23, %v2515_v24  ;;  %v2629_v21 = vpack.c.bf16 %v2521_v32, %v2517_v22  ;;  %v2183_v16 = vadd.f32 %v2182_v49, %v5172_v2  ;;  %v2376_v48 = vadd.f32 %v2375_v38, %v5180_v12 }
 0x2b5   : > { %v2184_v33 = vpop.f32.mrf.mxu0  ;;  %v2377_v45 = vpop.f32.mrf.mxu1  ;;  %v2522_v8 = vmax.f32 %v2181_v46, 0.0  ;;  %v2524_v60 = vmax.f32 %v2374_v47, 0.0 }
 0x2b6   : > { %v2185_v35 = vadd.f32 %v2184_v33, %v5176_v0  ;;  %v2378_v25 = vadd.f32 %v2377_v45, %v5184_v5  ;;  %2993 = vmatprep.mubr.bf16.mxu0 %v2627_v62  ;;  %3745 = vmatprep.mubr.msk.bf16.mxu1 %vm1338_vm2, %v2629_v21  ;;  %v2523_v9 = vmax.f32 %v2183_v16, 0.0  ;;  %v2525_v59 = vmax.f32 %v2376_v48, 0.0 }
 0x2b7   : > { %v2186_v43 = vpop.f32.mrf.mxu0  ;;  %v2379_v1 = vpop.f32.mrf.mxu1  ;;  %2994 = vmatmul.mubr.bf16.gmra.mxu0 %v2626_v39  ;;  %3155 = vmatmul.mubr.bf16.gmra.mxu1 %v2628_v40 }
 0x2b8   : > { %v2187_v50 = vadd.f32 %v2186_v43, %v5172_v2  ;;  %v2380_v52 = vadd.f32 %v2379_v1, %v5180_v12  ;;  %v2526_v54 = vmax.f32 %v2185_v35, 0.0  ;;  %v2528_v56 = vmax.f32 %v2378_v25, 0.0 }
 0x2b9   : > { %v2190_v55 = vpop.f32.mrf.mxu0  ;;  %v2383_v58 = vpop.f32.mrf.mxu1 }
 0x2ba   : > { %v2527_v11 = vmax.f32 %v2187_v50, 0.0  ;;  %v2529_v42 = vmax.f32 %v2380_v52, 0.0  ;;  %v2630_v14 = vpack.c.bf16 %v2526_v54, %v2522_v8  ;;  %v2632_v34 = vpack.c.bf16 %v2528_v56, %v2524_v60 }
 0x2bb   : > { %v2192_v63 = vpop.f32.mrf.mxu0  ;;  %v2385_v3 = vpop.f32.mrf.mxu1  ;;  %v2191_v37 = vadd.f32 %v2190_v55, %v5176_v0  ;;  %v2384_v44 = vadd.f32 %v2383_v58, %v5184_v5 }
 0x2bc   : > { %v2631_v61 = vpack.c.bf16 %v2527_v11, %v2523_v9  ;;  %v2633_v4 = vpack.c.bf16 %v2529_v42, %v2525_v59  ;;  %v2193_v31 = vadd.f32 %v2192_v63, %v5172_v2  ;;  %v2386_v26 = vadd.f32 %v2385_v3, %v5180_v12 }
 0x2bd   : > { %v2194_v30 = vpop.f32.mrf.mxu0  ;;  %v2387_v57 = vpop.f32.mrf.mxu1  ;;  %v2530_v24 = vmax.f32 %v2191_v37, 0.0  ;;  %v2532_v22 = vmax.f32 %v2384_v44, 0.0 }
 0x2be   : > { %v2195_v6 = vadd.f32 %v2194_v30, %v5176_v0  ;;  %v2388_v7 = vadd.f32 %v2387_v57, %v5184_v5  ;;  %3001 = vmatprep.mubr.bf16.mxu0 %v2631_v61  ;;  %3746 = vmatprep.mubr.msk.bf16.mxu1 %vm1338_vm2, %v2633_v4  ;;  %v2531_v18 = vmax.f32 %v2193_v31, 0.0  ;;  %v2533_v29 = vmax.f32 %v2386_v26, 0.0 }
 0x2bf   : > { %v2196_v10 = vpop.f32.mrf.mxu0  ;;  %v2389_v53 = vpop.f32.mrf.mxu1  ;;  %3002 = vmatmul.mubr.bf16.gmra.mxu0 %v2630_v14  ;;  %3163 = vmatmul.mubr.bf16.gmra.mxu1 %v2632_v34 }
 0x2c0   : > { %v2197_v19 = vadd.f32 %v2196_v10, %v5172_v2  ;;  %v2390_v41 = vadd.f32 %v2389_v53, %v5180_v12  ;;  %v2534_v13 = vmax.f32 %v2195_v6, 0.0  ;;  %v2536_v15 = vmax.f32 %v2388_v7, 0.0 }
 0x2c1   : > { %v2200_v27 = vpop.f32.mrf.mxu0  ;;  %v2393_v17 = vpop.f32.mrf.mxu1 }
 0x2c2   : > { %v2535_v20 = vmax.f32 %v2197_v19, 0.0  ;;  %v2537_v28 = vmax.f32 %v2390_v41, 0.0  ;;  %v2634_v49 = vpack.c.bf16 %v2534_v13, %v2530_v24  ;;  %v2636_v38 = vpack.c.bf16 %v2536_v15, %v2532_v22 }
 0x2c3   : > { %v2202_v23 = vpop.f32.mrf.mxu0  ;;  %v2395_v32 = vpop.f32.mrf.mxu1  ;;  %v2201_v45 = vadd.f32 %v2200_v27, %v5176_v0  ;;  %v2394_v48 = vadd.f32 %v2393_v17, %v5184_v5 }
 0x2c4   : > { %v2635_v36 = vpack.c.bf16 %v2535_v20, %v2531_v18  ;;  %v2637_v51 = vpack.c.bf16 %v2537_v28, %v2533_v29  ;;  %v2203_v62 = vadd.f32 %v2202_v23, %v5172_v2  ;;  %v2396_v40 = vadd.f32 %v2395_v32, %v5180_v12 }
 0x2c5   : > { %v2204_v21 = vpop.f32.mrf.mxu0  ;;  %v2397_v39 = vpop.f32.mrf.mxu1  ;;  %v2538_v9 = vmax.f32 %v2201_v45, 0.0  ;;  %v2540_v59 = vmax.f32 %v2394_v48, 0.0 }
 0x2c6   : > { %v2205_v16 = vadd.f32 %v2204_v21, %v5176_v0  ;;  %v2398_v33 = vadd.f32 %v2397_v39, %v5184_v5  ;;  %3009 = vmatprep.mubr.bf16.mxu0 %v2635_v36  ;;  %3747 = vmatprep.mubr.msk.bf16.mxu1 %vm1338_vm2, %v2637_v51  ;;  %v2539_v54 = vmax.f32 %v2203_v62, 0.0  ;;  %v2541_v56 = vmax.f32 %v2396_v40, 0.0 }
 0x2c7   : > { %v2206_v35 = vpop.f32.mrf.mxu0  ;;  %v2399_v25 = vpop.f32.mrf.mxu1  ;;  %3010 = vmatmul.mubr.bf16.gmra.mxu0 %v2634_v49  ;;  %3171 = vmatmul.mubr.bf16.gmra.mxu1 %v2636_v38 }
 0x2c8   : > { %v2207_v46 = vadd.f32 %v2206_v35, %v5172_v2  ;;  %v2400_v47 = vadd.f32 %v2399_v25, %v5180_v12  ;;  %v2542_v43 = vmax.f32 %v2205_v16, 0.0  ;;  %v2544_v1 = vmax.f32 %v2398_v33, 0.0 }
 0x2c9   : > { %v2210_v50 = vpop.f32.mrf.mxu0  ;;  %v2403_v52 = vpop.f32.mrf.mxu1 }
 0x2ca   : > { %v2543_v55 = vmax.f32 %v2207_v46, 0.0  ;;  %v2545_v58 = vmax.f32 %v2400_v47, 0.0  ;;  %v2638_v63 = vpack.c.bf16 %v2542_v43, %v2538_v9  ;;  %v2640_v3 = vpack.c.bf16 %v2544_v1, %v2540_v59 }
 0x2cb   : > { %v2212_v11 = vpop.f32.mrf.mxu0  ;;  %v2405_v42 = vpop.f32.mrf.mxu1  ;;  %v2211_v57 = vadd.f32 %v2210_v50, %v5176_v0  ;;  %v2404_v26 = vadd.f32 %v2403_v52, %v5184_v5 }
 0x2cc   : > { %v2639_v8 = vpack.c.bf16 %v2543_v55, %v2539_v54  ;;  %v2641_v60 = vpack.c.bf16 %v2545_v58, %v2541_v56  ;;  %v2213_v61 = vadd.f32 %v2212_v11, %v5172_v2  ;;  %v2406_v34 = vadd.f32 %v2405_v42, %v5180_v12 }
 0x2cd   : > { %v2214_v4 = vpop.f32.mrf.mxu0  ;;  %v2407_v14 = vpop.f32.mrf.mxu1  ;;  %v2546_v18 = vmax.f32 %v2211_v57, 0.0  ;;  %v2548_v29 = vmax.f32 %v2404_v26, 0.0 }
 0x2ce   : > { %v2215_v31 = vadd.f32 %v2214_v4, %v5176_v0  ;;  %v2408_v30 = vadd.f32 %v2407_v14, %v5184_v5  ;;  %3017 = vmatprep.mubr.bf16.mxu0 %v2639_v8  ;;  %3748 = vmatprep.mubr.msk.bf16.mxu1 %vm1338_vm2, %v2641_v60  ;;  %v2547_v13 = vmax.f32 %v2213_v61, 0.0  ;;  %v2549_v15 = vmax.f32 %v2406_v34, 0.0 }
 0x2cf   : > { %v2216_v6 = vpop.f32.mrf.mxu0  ;;  %v2409_v7 = vpop.f32.mrf.mxu1  ;;  %3018 = vmatmul.mubr.bf16.gmra.mxu0 %v2638_v63  ;;  %3179 = vmatmul.mubr.bf16.gmra.mxu1 %v2640_v3 }
 0x2d0   : > { %v2217_v37 = vadd.f32 %v2216_v6, %v5172_v2  ;;  %v2410_v44 = vadd.f32 %v2409_v7, %v5180_v12  ;;  %v2550_v10 = vmax.f32 %v2215_v31, 0.0  ;;  %v2552_v53 = vmax.f32 %v2408_v30, 0.0 }
 0x2d1   : > { %v2220_v19 = vpop.f32.mrf.mxu0  ;;  %v2413_v41 = vpop.f32.mrf.mxu1 }
 0x2d2   : > { %v2551_v27 = vmax.f32 %v2217_v37, 0.0  ;;  %v2553_v17 = vmax.f32 %v2410_v44, 0.0  ;;  %v2642_v23 = vpack.c.bf16 %v2550_v10, %v2546_v18  ;;  %v2644_v32 = vpack.c.bf16 %v2552_v53, %v2548_v29 }
 0x2d3   : > { %v2222_v20 = vpop.f32.mrf.mxu0  ;;  %v2415_v28 = vpop.f32.mrf.mxu1  ;;  %v2221_v39 = vadd.f32 %v2220_v19, %v5176_v0  ;;  %v2414_v40 = vadd.f32 %v2413_v41, %v5184_v5 }
 0x2d4   : > { %v2643_v24 = vpack.c.bf16 %v2551_v27, %v2547_v13  ;;  %v2645_v22 = vpack.c.bf16 %v2553_v17, %v2549_v15  ;;  %v2223_v36 = vadd.f32 %v2222_v20, %v5172_v2  ;;  %v2416_v38 = vadd.f32 %v2415_v28, %v5180_v12 }
 0x2d5   : > { %v2224_v51 = vpop.f32.mrf.mxu0  ;;  %v2417_v49 = vpop.f32.mrf.mxu1  ;;  %v2554_v54 = vmax.f32 %v2221_v39, 0.0  ;;  %v2556_v56 = vmax.f32 %v2414_v40, 0.0 }
 0x2d6   : > { %v2225_v62 = vadd.f32 %v2224_v51, %v5176_v0  ;;  %v2418_v21 = vadd.f32 %v2417_v49, %v5184_v5  ;;  %3025 = vmatprep.mubr.bf16.mxu0 %v2643_v24  ;;  %3749 = vmatprep.mubr.msk.bf16.mxu1 %vm1338_vm2, %v2645_v22  ;;  %v2555_v43 = vmax.f32 %v2223_v36, 0.0  ;;  %v2557_v1 = vmax.f32 %v2416_v38, 0.0 }
 0x2d7   : > { %v2226_v16 = vpop.f32.mrf.mxu0  ;;  %v2419_v33 = vpop.f32.mrf.mxu1  ;;  %3026 = vmatmul.mubr.bf16.gmra.mxu0 %v2642_v23  ;;  %3187 = vmatmul.mubr.bf16.gmra.mxu1 %v2644_v32 }
 0x2d8   : > { %v2227_v45 = vadd.f32 %v2226_v16, %v5172_v2  ;;  %v2420_v48 = vadd.f32 %v2419_v33, %v5180_v12  ;;  %v2558_v35 = vmax.f32 %v2225_v62, 0.0  ;;  %v2560_v25 = vmax.f32 %v2418_v21, 0.0 }
 0x2d9   : > { %v2230_v46 = vpop.f32.mrf.mxu0  ;;  %v2423_v47 = vpop.f32.mrf.mxu1 }
 0x2da   : > { %v2559_v50 = vmax.f32 %v2227_v45, 0.0  ;;  %v2561_v52 = vmax.f32 %v2420_v48, 0.0  ;;  %v2646_v11 = vpack.c.bf16 %v2558_v35, %v2554_v54  ;;  %v2648_v42 = vpack.c.bf16 %v2560_v25, %v2556_v56 }
 0x2db   : > { %v2232_v55 = vpop.f32.mrf.mxu0  ;;  %v2425_v58 = vpop.f32.mrf.mxu1  ;;  %v2231_v14 = vadd.f32 %v2230_v46, %v5176_v0  ;;  %v2424_v34 = vadd.f32 %v2423_v47, %v5184_v5 }
 0x2dc   : > { %v2647_v9 = vpack.c.bf16 %v2559_v50, %v2555_v43  ;;  %v2649_v59 = vpack.c.bf16 %v2561_v52, %v2557_v1  ;;  %v2233_v8 = vadd.f32 %v2232_v55, %v5172_v2  ;;  %v2426_v3 = vadd.f32 %v2425_v58, %v5180_v12 }
 0x2dd   : > { %v2234_v60 = vpop.f32.mrf.mxu0  ;;  %v2427_v63 = vpop.f32.mrf.mxu1  ;;  %v2562_v13 = vmax.f32 %v2231_v14, 0.0  ;;  %v2564_v15 = vmax.f32 %v2424_v34, 0.0 }
 0x2de   : > { %v2235_v61 = vadd.f32 %v2234_v60, %v5176_v0  ;;  %v2428_v4 = vadd.f32 %v2427_v63, %v5184_v5  ;;  %3033 = vmatprep.mubr.bf16.mxu0 %v2647_v9  ;;  %3750 = vmatprep.mubr.msk.bf16.mxu1 %vm1338_vm2, %v2649_v59  ;;  %v2563_v10 = vmax.f32 %v2233_v8, 0.0  ;;  %v2565_v53 = vmax.f32 %v2426_v3, 0.0 }
 0x2df   : > { %v2236_v31 = vpop.f32.mrf.mxu0  ;;  %v2429_v30 = vpop.f32.mrf.mxu1  ;;  %3034 = vmatmul.mubr.bf16.gmra.mxu0 %v2646_v11  ;;  %3195 = vmatmul.mubr.bf16.gmra.mxu1 %v2648_v42 }
 0x2e0   : > { %v2237_v57 = vadd.f32 %v2236_v31, %v5172_v2  ;;  %v2430_v26 = vadd.f32 %v2429_v30, %v5180_v12  ;;  %v2566_v6 = vmax.f32 %v2235_v61, 0.0  ;;  %v2568_v7 = vmax.f32 %v2428_v4, 0.0 }
 0x2e1   : > { %v2240_v37 = vpop.f32.mrf.mxu0  ;;  %v2433_v44 = vpop.f32.mrf.mxu1 }
 0x2e2   : > { %v2567_v19 = vmax.f32 %v2237_v57, 0.0  ;;  %v2569_v41 = vmax.f32 %v2430_v26, 0.0  ;;  %v2650_v20 = vpack.c.bf16 %v2566_v6, %v2562_v13  ;;  %v2652_v28 = vpack.c.bf16 %v2568_v7, %v2564_v15 }
 0x2e3   : > { %v2242_v27 = vpop.f32.mrf.mxu0  ;;  %v2435_v17 = vpop.f32.mrf.mxu1  ;;  %v2241_v49 = vadd.f32 %v2240_v37, %v5176_v0  ;;  %v2434_v38 = vadd.f32 %v2433_v44, %v5184_v5 }
 0x2e4   : > { %v2651_v18 = vpack.c.bf16 %v2567_v19, %v2563_v10  ;;  %v2653_v29 = vpack.c.bf16 %v2569_v41, %v2565_v53  ;;  %v2243_v24 = vadd.f32 %v2242_v27, %v5172_v2  ;;  %v2436_v32 = vadd.f32 %v2435_v17, %v5180_v12 }
 0x2e5   : > { %v2244_v22 = vpop.f32.mrf.mxu0  ;;  %v2437_v23 = vpop.f32.mrf.mxu1  ;;  %v2570_v43 = vmax.f32 %v2241_v49, 0.0  ;;  %v2572_v1 = vmax.f32 %v2434_v38, 0.0 }
 0x2e6   : > { %v2245_v36 = vadd.f32 %v2244_v22, %v5176_v0  ;;  %v2438_v51 = vadd.f32 %v2437_v23, %v5184_v5  ;;  %3041 = vmatprep.mubr.bf16.mxu0 %v2651_v18  ;;  %3751 = vmatprep.mubr.msk.bf16.mxu1 %vm1338_vm2, %v2653_v29  ;;  %v2571_v35 = vmax.f32 %v2243_v24, 0.0  ;;  %v2573_v25 = vmax.f32 %v2436_v32, 0.0 }
 0x2e7   : > { %v2246_v62 = vpop.f32.mrf.mxu0  ;;  %v2439_v21 = vpop.f32.mrf.mxu1  ;;  %3042 = vmatmul.mubr.bf16.gmra.mxu0 %v2650_v20  ;;  %3203 = vmatmul.mubr.bf16.gmra.mxu1 %v2652_v28 }
 0x2e8   : > { %v2247_v39 = vadd.f32 %v2246_v62, %v5172_v2  ;;  %v2440_v40 = vadd.f32 %v2439_v21, %v5180_v12  ;;  %v2574_v16 = vmax.f32 %v2245_v36, 0.0  ;;  %v2576_v33 = vmax.f32 %v2438_v51, 0.0 }
 0x2e9   : > { %v2250_v45 = vpop.f32.mrf.mxu0  ;;  %v2443_v48 = vpop.f32.mrf.mxu1 }
 0x2ea   : > { %v2575_v46 = vmax.f32 %v2247_v39, 0.0  ;;  %v2577_v47 = vmax.f32 %v2440_v40, 0.0  ;;  %v2654_v55 = vpack.c.bf16 %v2574_v16, %v2570_v43  ;;  %v2656_v58 = vpack.c.bf16 %v2576_v33, %v2572_v1 }
 0x2eb   : > { %v2252_v50 = vpop.f32.mrf.mxu0  ;;  %v2445_v52 = vpop.f32.mrf.mxu1  ;;  %v2251_v63 = vadd.f32 %v2250_v45, %v5176_v0  ;;  %v2444_v3 = vadd.f32 %v2443_v48, %v5184_v5 }
 0x2ec   : > { %v2655_v54 = vpack.c.bf16 %v2575_v46, %v2571_v35  ;;  %v2657_v56 = vpack.c.bf16 %v2577_v47, %v2573_v25  ;;  %v2253_v9 = vadd.f32 %v2252_v50, %v5172_v2  ;;  %v2446_v42 = vadd.f32 %v2445_v52, %v5180_v12 }
 0x2ed   : > { %v2254_v59 = vpop.f32.mrf.mxu0  ;;  %v2447_v11 = vpop.f32.mrf.mxu1  ;;  %v2578_v10 = vmax.f32 %v2251_v63, 0.0  ;;  %v2580_v53 = vmax.f32 %v2444_v3, 0.0 }
 0x2ee   : > { %v2255_v8 = vadd.f32 %v2254_v59, %v5176_v0  ;;  %v2448_v60 = vadd.f32 %v2447_v11, %v5184_v5  ;;  %3049 = vmatprep.mubr.bf16.mxu0 %v2655_v54  ;;  %3752 = vmatprep.mubr.msk.bf16.mxu1 %vm1338_vm2, %v2657_v56  ;;  %v2579_v6 = vmax.f32 %v2253_v9, 0.0  ;;  %v2581_v7 = vmax.f32 %v2446_v42, 0.0 }
 0x2ef   : > { %v2256_v61 = vpop.f32.mrf.mxu0  ;;  %v2449_v4 = vpop.f32.mrf.mxu1  ;;  %3050 = vmatmul.mubr.bf16.gmra.mxu0 %v2654_v55  ;;  %3211 = vmatmul.mubr.bf16.gmra.mxu1 %v2656_v58 }
 0x2f0   : > { %v2257_v14 = vadd.f32 %v2256_v61, %v5172_v2  ;;  %v2450_v34 = vadd.f32 %v2449_v4, %v5180_v12  ;;  %v2582_v31 = vmax.f32 %v2255_v8, 0.0  ;;  %v2584_v30 = vmax.f32 %v2448_v60, 0.0 }
 0x2f1   : > { %v2260_v57 = vpop.f32.mrf.mxu0  ;;  %v2453_v26 = vpop.f32.mrf.mxu1 }
 0x2f2   : > { %v2583_v37 = vmax.f32 %v2257_v14, 0.0  ;;  %v2585_v44 = vmax.f32 %v2450_v34, 0.0  ;;  %v2658_v27 = vpack.c.bf16 %v2582_v31, %v2578_v10  ;;  %v2660_v17 = vpack.c.bf16 %v2584_v30, %v2580_v53 }
 0x2f3   : > { %v2262_v19 = vpop.f32.mrf.mxu0  ;;  %v2455_v41 = vpop.f32.mrf.mxu1  ;;  %v2261_v23 = vadd.f32 %v2260_v57, %v5176_v0  ;;  %v2454_v32 = vadd.f32 %v2453_v26, %v5184_v5 }
 0x2f4   : > { %v2659_v13 = vpack.c.bf16 %v2583_v37, %v2579_v6  ;;  %v2661_v15 = vpack.c.bf16 %v2585_v44, %v2581_v7  ;;  %v2263_v18 = vadd.f32 %v2262_v19, %v5172_v2  ;;  %v2456_v28 = vadd.f32 %v2455_v41, %v5180_v12 }
 0x2f5   : > { %v2264_v29 = vpop.f32.mrf.mxu0  ;;  %v2457_v20 = vpop.f32.mrf.mxu1  ;;  %v2586_v35 = vmax.f32 %v2261_v23, 0.0  ;;  %v2588_v25 = vmax.f32 %v2454_v32, 0.0 }
 0x2f6   : > { %v2265_v24 = vadd.f32 %v2264_v29, %v5176_v0  ;;  %v2458_v22 = vadd.f32 %v2457_v20, %v5184_v5  ;;  %3057 = vmatprep.mubr.bf16.mxu0 %v2659_v13  ;;  %3753 = vmatprep.mubr.msk.bf16.mxu1 %vm1338_vm2, %v2661_v15  ;;  %v2587_v16 = vmax.f32 %v2263_v18, 0.0  ;;  %v2589_v33 = vmax.f32 %v2456_v28, 0.0 }
 0x2f7   : > { %v2266_v36 = vpop.f32.mrf.mxu0  ;;  %v2459_v51 = vpop.f32.mrf.mxu1  ;;  %3058 = vmatmul.mubr.bf16.gmra.mxu0 %v2658_v27  ;;  %3219 = vmatmul.mubr.bf16.gmra.mxu1 %v2660_v17 }
 0x2f8   : > { %v2267_v49 = vadd.f32 %v2266_v36, %v5172_v2  ;;  %v2460_v38 = vadd.f32 %v2459_v51, %v5180_v12  ;;  %v2590_v62 = vmax.f32 %v2265_v24, 0.0  ;;  %v2592_v21 = vmax.f32 %v2458_v22, 0.0 }
 0x2f9   : > { %v2270_v39 = vpop.f32.mrf.mxu0  ;;  %v2463_v40 = vpop.f32.mrf.mxu1 }
 0x2fa   : > { %v2591_v45 = vmax.f32 %v2267_v49, 0.0  ;;  %v2593_v48 = vmax.f32 %v2460_v38, 0.0  ;;  %v2662_v50 = vpack.c.bf16 %v2590_v62, %v2586_v35  ;;  %v2664_v52 = vpack.c.bf16 %v2592_v21, %v2588_v25 }
 0x2fb   : > { %v2272_v46 = vpop.f32.mrf.mxu0  ;;  %v2465_v47 = vpop.f32.mrf.mxu1  ;;  %v2271_v11 = vadd.f32 %v2270_v39, %v5176_v0  ;;  %v2464_v42 = vadd.f32 %v2463_v40, %v5184_v5 }
 0x2fc   : > { %v2663_v43 = vpack.c.bf16 %v2591_v45, %v2587_v16  ;;  %v2665_v1 = vpack.c.bf16 %v2593_v48, %v2589_v33  ;;  %v2273_v54 = vadd.f32 %v2272_v46, %v5172_v2  ;;  %v2466_v58 = vadd.f32 %v2465_v47, %v5180_v12 }
 0x2fd   : > { %v2274_v56 = vpop.f32.mrf.mxu0  ;;  %v2467_v55 = vpop.f32.mrf.mxu1  ;;  %v2594_v6 = vmax.f32 %v2271_v11, 0.0  ;;  %v2596_v7 = vmax.f32 %v2464_v42, 0.0 }
 0x2fe   : > { %v2275_v9 = vadd.f32 %v2274_v56, %v5176_v0  ;;  %v2468_v59 = vadd.f32 %v2467_v55, %v5184_v5  ;;  %3065 = vmatprep.mubr.bf16.mxu0 %v2663_v43  ;;  %3754 = vmatprep.mubr.msk.bf16.mxu1 %vm1338_vm2, %v2665_v1  ;;  %v2595_v31 = vmax.f32 %v2273_v54, 0.0  ;;  %v2597_v30 = vmax.f32 %v2466_v58, 0.0 }
 0x2ff   : > { %v2276_v8 = vpop.f32.mrf.mxu0  ;;  %v2469_v60 = vpop.f32.mrf.mxu1  ;;  %3066 = vmatmul.mubr.bf16.gmra.mxu0 %v2662_v50  ;;  %3227 = vmatmul.mubr.bf16.gmra.mxu1 %v2664_v52 }
 0x300   : > { %v2277_v63 = vadd.f32 %v2276_v8, %v5172_v2  ;;  %v2470_v3 = vadd.f32 %v2469_v60, %v5180_v12  ;;  %v2598_v61 = vmax.f32 %v2275_v9, 0.0  ;;  %v2600_v4 = vmax.f32 %v2468_v59, 0.0 }
 0x301   : > { %v2280_v14 = vpop.f32.mrf.mxu0  ;;  %v2473_v34 = vpop.f32.mrf.mxu1 }
 0x302   : > { %v2599_v57 = vmax.f32 %v2277_v63, 0.0  ;;  %v2601_v26 = vmax.f32 %v2470_v3, 0.0  ;;  %v2666_v19 = vpack.c.bf16 %v2598_v61, %v2594_v6  ;;  %v2668_v41 = vpack.c.bf16 %v2600_v4, %v2596_v7  ;;  %v3316_v7 = vpop.permute.xlu0 %3315 }
 0x303   : > { %v2282_v37 = vpop.f32.mrf.mxu0  ;;  %v2475_v44 = vpop.f32.mrf.mxu1  ;;  %v2281_v20 = vadd.f32 %v2280_v14, %v5176_v0  ;;  %v2474_v28 = vadd.f32 %v2473_v34, %v5184_v5 }
 0x304   : > { %v2667_v10 = vpack.c.bf16 %v2599_v57, %v2595_v31  ;;  %v2669_v53 = vpack.c.bf16 %v2601_v26, %v2597_v30  ;;  %v2283_v13 = vadd.f32 %v2282_v37, %v5172_v2  ;;  %v2476_v17 = vadd.f32 %v2475_v44, %v5180_v12 }
 0x305   : > { %v2284_v15 = vpop.f32.mrf.mxu0  ;;  %v2477_v27 = vpop.f32.mrf.mxu1  ;;  %v2602_v39 = vmax.f32 %v2281_v20, 0.0  ;;  %v2604_v40 = vmax.f32 %v2474_v28, 0.0 }
 0x306   : > { %v2285_v18 = vadd.f32 %v2284_v15, %v5176_v0  ;;  %v2478_v29 = vadd.f32 %v2477_v27, %v5184_v5  ;;  %3073 = vmatprep.mubr.bf16.mxu0 %v2667_v10  ;;  %3755 = vmatprep.mubr.msk.bf16.mxu1 %vm1338_vm2, %v2669_v53  ;;  %v2603_v49 = vmax.f32 %v2283_v13, 0.0  ;;  %v2605_v38 = vmax.f32 %v2476_v17, 0.0 }
 0x307   : > { %v2286_v24 = vpop.f32.mrf.mxu0  ;;  %v2479_v22 = vpop.f32.mrf.mxu1  ;;  %3074 = vmatmul.mubr.bf16.gmra.mxu0 %v2666_v19  ;;  %3235 = vmatmul.mubr.bf16.gmra.mxu1 %v2668_v41 }
 0x308   : > { %v2287_v23 = vadd.f32 %v2286_v24, %v5172_v2  ;;  %v2480_v32 = vadd.f32 %v2479_v22, %v5180_v12  ;;  %v2606_v36 = vmax.f32 %v2285_v18, 0.0  ;;  %v2608_v51 = vmax.f32 %v2478_v29, 0.0  ;;  %v5333_v12 = vld [vmem:[%s5481_s9] ss:$0 sm:$0xff]  ;;  %v3318_v24 = vpop.permute.xlu0 %3317 }
 0x30a   : > { %v2607_v62 = vmax.f32 %v2287_v23, 0.0  ;;  %v2609_v21 = vmax.f32 %v2480_v32, 0.0  ;;  %v2670_v33 = vpack.c.bf16 %v2606_v36, %v2602_v39  ;;  %v2672_v5 = vpack.c.bf16 %v2608_v51, %v2604_v40  ;;  %v3320_v51 = vpop.permute.xlu1 %3319 }
 0x30c   : > { %v2671_v16 = vpack.c.bf16 %v2607_v62, %v2603_v49  ;;  %v2673_v0 = vpack.c.bf16 %v2609_v21, %v2605_v38 }
 0x30e   : > { %3081 = vmatprep.mubr.bf16.mxu0 %v2671_v16  ;;  %3756 = vmatprep.mubr.msk.bf16.mxu1 %vm1338_vm2, %v2673_v0 }
 0x30f   : > { %3082 = vmatmul.mubr.bf16.gmra.mxu0 %v2670_v33  ;;  %3243 = vmatmul.mubr.bf16.gmra.mxu1 %v2672_v5 }
 0x356   : > { %v3887_v2 = vpop.f32.mrf.mxu0  ;;  %v3124_v45 = vpop.f32.mrf.mxu1 }
 0x358   : > { %v3888_v48 = vpop.f32.mrf.mxu0  ;;  %v3126_v25 = vpop.f32.mrf.mxu1 }
 0x359   : > { %v3889_v35 = vadd.f32 %v3888_v48, %v3887_v2 }
 0x35a   : > { %v3890_v46 = vpop.f32.mrf.mxu0  ;;  %v3127_v43 = vpop.f32.mrf.mxu1 }
 0x35b   : > { %v2964_v47 = vadd.f32 %v3889_v35, %v5333_v12 }
 0x35c   : > { %v3891_v1 = vpop.f32.mrf.mxu0  ;;  %v3129_v54 = vpop.f32.mrf.mxu1 }
 0x35d   : > { %v3125_v50 = vadd.f32 %v3124_v45, %v2964_v47  ;;  %v3892_v52 = vadd.f32 %v3891_v1, %v3890_v46  ;;  %v3322_v47 = vpop.permute.xlu1 %3321 }
 0x35e   : > { %v3893_v56 = vpop.f32.mrf.mxu0  ;;  %v3132_v58 = vpop.f32.mrf.mxu1 }
 0x35f   : > { %4135 = vtanh.f32 %v3125_v50  ;;  %v2967_v55 = vadd.f32 %v3892_v52, %v5333_v12 }
 0x360   : > { %v3894_v9 = vpop.f32.mrf.mxu0  ;;  %v3134_v42 = vpop.f32.mrf.mxu1 }
 0x361   : > { %v3128_v59 = vadd.f32 %v3127_v43, %v2967_v55  ;;  %v3895_v11 = vadd.f32 %v3894_v9, %v3893_v56 }
 0x362   : > { %v3896_v8 = vpop.f32.mrf.mxu0  ;;  %v3135_v63 = vpop.f32.mrf.mxu1 }
 0x363   : > { %4137 = vtanh.f32 %v3128_v59  ;;  %v2972_v60 = vadd.f32 %v3895_v11, %v5333_v12  ;;  %v3324_v59 = vpop.permute.xlu0 %3323 }
 0x364   : > { %v3897_v3 = vpop.f32.mrf.mxu0  ;;  %v3137_v14 = vpop.f32.mrf.mxu1 }
 0x365   : > { %v3133_v61 = vadd.f32 %v3132_v58, %v2972_v60  ;;  %v3898_v4 = vadd.f32 %v3897_v3, %v3896_v8 }
 0x367   : > { %4139 = vtanh.f32 %v3133_v61  ;;  %v2975_v34 = vadd.f32 %v3898_v4, %v5333_v12  ;;  %v3899_v31 = vpop.f32.mrf.mxu0  ;;  %v3140_v30 = vpop.f32.mrf.mxu1 }
 0x369   : > { %v3136_v57 = vadd.f32 %v3135_v63, %v2975_v34  ;;  %v3900_v26 = vpop.f32.mrf.mxu0  ;;  %v3142_v6 = vpop.f32.mrf.mxu1 }
 0x36a   : > { %v3901_v37 = vadd.f32 %v3900_v26, %v3899_v31  ;;  %v3326_v31 = vpop.permute.xlu1 %3325 }
 0x36b   : > { %4141 = vtanh.f32 %v3136_v57  ;;  %v3902_v44 = vpop.f32.mrf.mxu0  ;;  %v3143_v10 = vpop.f32.mrf.mxu1 }
 0x36c   : > { %v4136_v53 = vpop.eup %4135  ;;  %v2980_v19 = vadd.f32 %v3901_v37, %v5333_v12 }
 0x36d   : > { %v3411_v41 = vsel %vm504_vm0, %v4136_v53, %v3316_v7  ;;  %v3903_v13 = vpop.f32.mrf.mxu0  ;;  %v3145_v15 = vpop.f32.mrf.mxu1 }
 0x36e   : > { %v3444_v27 = vsel %vm3443_vm5, %v3411_v41, 0.0  ;;  %v3141_v17 = vadd.f32 %v3140_v30, %v2980_v19  ;;  %v3904_v18 = vadd.f32 %v3903_v13, %v3902_v44  ;;  %v3328_v41 = vpop.permute.xlu0 %3327 }
 0x36f   : > { %3476 = vst [vmem:[%s5343_s15] sm:$0xff] %v3444_v27  ;;  %v3905_v29 = vpop.f32.mrf.mxu0  ;;  %v3148_v20 = vpop.f32.mrf.mxu1 }
 0x370   : > { %v4138_v28 = vpop.eup %4137  ;;  %4143 = vtanh.f32 %v3141_v17  ;;  %v2983_v22 = vadd.f32 %v3904_v18, %v5333_v12 }
 0x371   : > { %v3412_v23 = vsel %vm504_vm0, %v4138_v28, %v3318_v24  ;;  %v3906_v32 = vpop.f32.mrf.mxu0  ;;  %v3150_v36 = vpop.f32.mrf.mxu1 }
 0x372   : > { %v3445_v49 = vsel %vm3443_vm5, %v3412_v23, 0.0  ;;  %v3144_v38 = vadd.f32 %v3143_v10, %v2983_v22  ;;  %v3907_v62 = vadd.f32 %v3906_v32, %v3905_v29  ;;  %v3330_v23 = vpop.permute.xlu1 %3329 }
 0x373   : > { %3477 = vst [vmem:[%s5343_s15 + $0x8] sm:$0xff] %v3445_v49  ;;  %v3908_v21 = vpop.f32.mrf.mxu0  ;;  %v3151_v39 = vpop.f32.mrf.mxu1 }
 0x374   : > { %v4140_v40 = vpop.eup %4139  ;;  %4145 = vtanh.f32 %v3144_v38  ;;  %v2988_v16 = vadd.f32 %v3907_v62, %v5333_v12 }
 0x375   : > { %v3413_v0 = vsel %vm504_vm0, %v4140_v40, %v3320_v51  ;;  %v3909_v33 = vpop.f32.mrf.mxu0  ;;  %v3153_v5 = vpop.f32.mrf.mxu1 }
 0x376   : > { %v3446_v2 = vsel %vm3443_vm5, %v3413_v0, 0.0  ;;  %v3149_v45 = vadd.f32 %v3148_v20, %v2988_v16  ;;  %v3910_v48 = vadd.f32 %v3909_v33, %v3908_v21  ;;  %v3332_v0 = vpop.permute.xlu0 %3331 }
 0x377   : > { %3478 = vst [vmem:[%s5343_s15 + $0x10] sm:$0xff] %v3446_v2  ;;  %v3911_v35 = vpop.f32.mrf.mxu0  ;;  %v3156_v25 = vpop.f32.mrf.mxu1 }
 0x378   : > { %v4142_v46 = vpop.eup %4141  ;;  %4147 = vtanh.f32 %v3149_v45  ;;  %v2991_v43 = vadd.f32 %v3910_v48, %v5333_v12 }
 0x379   : > { %v3414_v1 = vsel %vm504_vm0, %v4142_v46, %v3322_v47  ;;  %v3912_v50 = vpop.f32.mrf.mxu0  ;;  %v3158_v52 = vpop.f32.mrf.mxu1 }
 0x37a   : > { %v3447_v54 = vsel %vm3443_vm5, %v3414_v1, 0.0  ;;  %v3152_v56 = vadd.f32 %v3151_v39, %v2991_v43  ;;  %v3913_v55 = vadd.f32 %v3912_v50, %v3911_v35  ;;  %v3334_v1 = vpop.permute.xlu1 %3333 }
 0x37b   : > { %3479 = vst [vmem:[%s5343_s15 + $0x18] sm:$0xff] %v3447_v54  ;;  %v3914_v58 = vpop.f32.mrf.mxu0  ;;  %v3159_v9 = vpop.f32.mrf.mxu1 }
 0x37c   : > { %4149 = vtanh.f32 %v3152_v56  ;;  %v2996_v11 = vadd.f32 %v3913_v55, %v5333_v12 }
 0x37d   : > { %v4144_v42 = vpop.eup %4143  ;;  %v3915_v8 = vpop.f32.mrf.mxu0 }
 0x37e   : > { %v3161_v60 = vpop.f32.mrf.mxu1  ;;  %v3415_v63 = vsel %vm504_vm0, %v4144_v42, %v3324_v59  ;;  %v3157_v3 = vadd.f32 %v3156_v25, %v2996_v11  ;;  %v3916_v61 = vadd.f32 %v3915_v8, %v3914_v58  ;;  %v3336_v8 = vpop.permute.xlu0 %3335 }
 0x37f   : > { %v3448_v4 = vsel %vm3443_vm5, %v3415_v63, 0.0  ;;  %v3917_v14 = vpop.f32.mrf.mxu0 }
 0x380   : > { %v3164_v34 = vpop.f32.mrf.mxu1  ;;  %3480 = vst [vmem:[%s5343_s15 + $0x20] sm:$0xff] %v3448_v4  ;;  %4151 = vtanh.f32 %v3157_v3  ;;  %v2999_v30 = vadd.f32 %v3916_v61, %v5333_v12 }
 0x381   : > { %v4146_v57 = vpop.eup %4145  ;;  %v3918_v26 = vpop.f32.mrf.mxu0 }
 0x382   : > { %v3166_v6 = vpop.f32.mrf.mxu1  ;;  %v3416_v7 = vsel %vm504_vm0, %v4146_v57, %v3326_v31  ;;  %v3160_v37 = vadd.f32 %v3159_v9, %v2999_v30  ;;  %v3919_v44 = vadd.f32 %v3918_v26, %v3917_v14  ;;  %v3338_v26 = vpop.permute.xlu1 %3337 }
 0x383   : > { %v3449_v10 = vsel %vm3443_vm5, %v3416_v7, 0.0  ;;  %v3920_v53 = vpop.f32.mrf.mxu0 }
 0x384   : > { %v3167_v19 = vpop.f32.mrf.mxu1  ;;  %3481 = vst [vmem:[%s5343_s15 + $0x28] sm:$0xff] %v3449_v10  ;;  %4153 = vtanh.f32 %v3160_v37  ;;  %v3004_v13 = vadd.f32 %v3919_v44, %v5333_v12 }
 0x385   : > { %v4148_v15 = vpop.eup %4147  ;;  %v3921_v27 = vpop.f32.mrf.mxu0 }
 0x386   : > { %v3169_v17 = vpop.f32.mrf.mxu1  ;;  %v3417_v18 = vsel %vm504_vm0, %v4148_v15, %v3328_v41  ;;  %v3165_v29 = vadd.f32 %v3164_v34, %v3004_v13  ;;  %v3922_v20 = vadd.f32 %v3921_v27, %v3920_v53  ;;  %v3340_v27 = vpop.permute.xlu0 %3339 }
 0x387   : > { %v3450_v28 = vsel %vm3443_vm5, %v3417_v18, 0.0  ;;  %v3923_v24 = vpop.f32.mrf.mxu0 }
 0x388   : > { %v3172_v22 = vpop.f32.mrf.mxu1  ;;  %3482 = vst [vmem:[%s5343_s15 + $0x30] sm:$0xff] %v3450_v28  ;;  %4155 = vtanh.f32 %v3165_v29  ;;  %v3007_v32 = vadd.f32 %v3922_v20, %v5333_v12 }
 0x389   : > { %v4150_v36 = vpop.eup %4149  ;;  %v3924_v51 = vpop.f32.mrf.mxu0 }
 0x38a   : > { %v3174_v49 = vpop.f32.mrf.mxu1  ;;  %v3418_v38 = vsel %vm504_vm0, %v4150_v36, %v3330_v23  ;;  %v3168_v62 = vadd.f32 %v3167_v19, %v3007_v32  ;;  %v3925_v21 = vadd.f32 %v3924_v51, %v3923_v24  ;;  %v3342_v51 = vpop.permute.xlu1 %3341 }
 0x38b   : > { %v3451_v39 = vsel %vm3443_vm5, %v3418_v38, 0.0  ;;  %v3926_v40 = vpop.f32.mrf.mxu0 }
 0x38c   : > { %v3175_v16 = vpop.f32.mrf.mxu1  ;;  %3483 = vst [vmem:[%s5343_s15 + $0x38] sm:$0xff] %v3451_v39  ;;  %4157 = vtanh.f32 %v3168_v62  ;;  %v3012_v33 = vadd.f32 %v3925_v21, %v5333_v12 }
 0x38d   : > { %v4152_v5 = vpop.eup %4151  ;;  %v3927_v2 = vpop.f32.mrf.mxu0 }
 0x38e   : > { %v3177_v45 = vpop.f32.mrf.mxu1  ;;  %v3419_v48 = vsel %vm504_vm0, %v4152_v5, %v3332_v0  ;;  %v3173_v35 = vadd.f32 %v3172_v22, %v3012_v33  ;;  %v3928_v25 = vadd.f32 %v3927_v2, %v3926_v40  ;;  %v3344_v2 = vpop.permute.xlu0 %3343 }
 0x38f   : > { %v3452_v46 = vsel %vm3443_vm5, %v3419_v48, 0.0  ;;  %v3929_v47 = vpop.f32.mrf.mxu0 }
 0x390   : > { %v3180_v43 = vpop.f32.mrf.mxu1  ;;  %3484 = vst [vmem:[%s5343_s15 + $0x40] sm:$0xff] %v3452_v46  ;;  %4159 = vtanh.f32 %v3173_v35  ;;  %v3015_v50 = vadd.f32 %v3928_v25, %v5333_v12 }
 0x391   : > { %v4154_v52 = vpop.eup %4153  ;;  %v3930_v54 = vpop.f32.mrf.mxu0 }
 0x392   : > { %v3182_v56 = vpop.f32.mrf.mxu1  ;;  %v3420_v55 = vsel %vm504_vm0, %v4154_v52, %v3334_v1  ;;  %v3176_v58 = vadd.f32 %v3175_v16, %v3015_v50  ;;  %v3931_v9 = vadd.f32 %v3930_v54, %v3929_v47  ;;  %v3346_v54 = vpop.permute.xlu1 %3345 }
 0x393   : > { %v3453_v59 = vsel %vm3443_vm5, %v3420_v55, 0.0  ;;  %v3932_v11 = vpop.f32.mrf.mxu0 }
 0x394   : > { %v3183_v42 = vpop.f32.mrf.mxu1  ;;  %3485 = vst [vmem:[%s5343_s15 + $0x48] sm:$0xff] %v3453_v59  ;;  %4161 = vtanh.f32 %v3176_v58  ;;  %v3020_v60 = vadd.f32 %v3931_v9, %v5333_v12 }
 0x395   : > { %v4156_v63 = vpop.eup %4155  ;;  %v3933_v3 = vpop.f32.mrf.mxu0 }
 0x396   : > { %v3185_v61 = vpop.f32.mrf.mxu1  ;;  %v3421_v4 = vsel %vm504_vm0, %v4156_v63, %v3336_v8  ;;  %v3181_v14 = vadd.f32 %v3180_v43, %v3020_v60  ;;  %v3934_v34 = vadd.f32 %v3933_v3, %v3932_v11  ;;  %v3348_v3 = vpop.permute.xlu0 %3347 }
 0x397   : > { %v3454_v31 = vsel %vm3443_vm5, %v3421_v4, 0.0  ;;  %v3935_v30 = vpop.f32.mrf.mxu0 }
 0x398   : > { %v3188_v57 = vpop.f32.mrf.mxu1  ;;  %3486 = vst [vmem:[%s5343_s15 + $0x50] sm:$0xff] %v3454_v31  ;;  %4163 = vtanh.f32 %v3181_v14  ;;  %v3023_v6 = vadd.f32 %v3934_v34, %v5333_v12 }
 0x399   : > { %v4158_v7 = vpop.eup %4157  ;;  %v3936_v37 = vpop.f32.mrf.mxu0 }
 0x39a   : > { %v3190_v44 = vpop.f32.mrf.mxu1  ;;  %v3422_v10 = vsel %vm504_vm0, %v4158_v7, %v3338_v26  ;;  %v3184_v53 = vadd.f32 %v3183_v42, %v3023_v6  ;;  %v3937_v19 = vadd.f32 %v3936_v37, %v3935_v30  ;;  %v3350_v37 = vpop.permute.xlu1 %3349 }
 0x39b   : > { %v3455_v41 = vsel %vm3443_vm5, %v3422_v10, 0.0  ;;  %v3938_v13 = vpop.f32.mrf.mxu0 }
 0x39c   : > { %v3191_v15 = vpop.f32.mrf.mxu1  ;;  %3487 = vst [vmem:[%s5343_s15 + $0x58] sm:$0xff] %v3455_v41  ;;  %4165 = vtanh.f32 %v3184_v53  ;;  %v3028_v17 = vadd.f32 %v3937_v19, %v5333_v12 }
 0x39d   : > { %v4160_v18 = vpop.eup %4159  ;;  %v3939_v29 = vpop.f32.mrf.mxu0 }
 0x39e   : > { %v3193_v20 = vpop.f32.mrf.mxu1  ;;  %v3423_v28 = vsel %vm504_vm0, %v4160_v18, %v3340_v27  ;;  %v3189_v24 = vadd.f32 %v3188_v57, %v3028_v17  ;;  %v3940_v22 = vadd.f32 %v3939_v29, %v3938_v13  ;;  %v3352_v29 = vpop.permute.xlu0 %3351 }
 0x39f   : > { %v3456_v23 = vsel %vm3443_vm5, %v3423_v28, 0.0  ;;  %v3941_v32 = vpop.f32.mrf.mxu0 }
 0x3a0   : > { %v3196_v36 = vpop.f32.mrf.mxu1  ;;  %3488 = vst [vmem:[%s5343_s15 + $0x60] sm:$0xff] %v3456_v23  ;;  %4167 = vtanh.f32 %v3189_v24  ;;  %v3031_v49 = vadd.f32 %v3940_v22, %v5333_v12 }
 0x3a1   : > { %v4162_v38 = vpop.eup %4161  ;;  %v3942_v62 = vpop.f32.mrf.mxu0 }
 0x3a2   : > { %v3198_v21 = vpop.f32.mrf.mxu1  ;;  %v3424_v39 = vsel %vm504_vm0, %v4162_v38, %v3342_v51  ;;  %v3192_v40 = vadd.f32 %v3191_v15, %v3031_v49  ;;  %v3943_v16 = vadd.f32 %v3942_v62, %v3941_v32  ;;  %v3354_v62 = vpop.permute.xlu1 %3353 }
 0x3a3   : > { %v3457_v0 = vsel %vm3443_vm5, %v3424_v39, 0.0  ;;  %v3944_v33 = vpop.f32.mrf.mxu0 }
 0x3a4   : > { %v3199_v5 = vpop.f32.mrf.mxu1  ;;  %3489 = vst [vmem:[%s5343_s15 + $0x68] sm:$0xff] %v3457_v0  ;;  %4169 = vtanh.f32 %v3192_v40  ;;  %v3036_v45 = vadd.f32 %v3943_v16, %v5333_v12 }
 0x3a5   : > { %v4164_v48 = vpop.eup %4163  ;;  %v3945_v35 = vpop.f32.mrf.mxu0 }
 0x3a6   : > { %v3201_v25 = vpop.f32.mrf.mxu1  ;;  %v3425_v46 = vsel %vm504_vm0, %v4164_v48, %v3344_v2  ;;  %v3197_v47 = vadd.f32 %v3196_v36, %v3036_v45  ;;  %v3946_v43 = vadd.f32 %v3945_v35, %v3944_v33  ;;  %v3356_v35 = vpop.permute.xlu0 %3355 }
 0x3a7   : > { %v3458_v1 = vsel %vm3443_vm5, %v3425_v46, 0.0  ;;  %v3947_v50 = vpop.f32.mrf.mxu0 }
 0x3a8   : > { %v3204_v52 = vpop.f32.mrf.mxu1  ;;  %3490 = vst [vmem:[%s5343_s15 + $0x70] sm:$0xff] %v3458_v1  ;;  %4171 = vtanh.f32 %v3197_v47  ;;  %v3039_v56 = vadd.f32 %v3946_v43, %v5333_v12 }
 0x3a9   : > { %v4166_v55 = vpop.eup %4165  ;;  %v3948_v58 = vpop.f32.mrf.mxu0 }
 0x3aa   : > { %v3206_v9 = vpop.f32.mrf.mxu1  ;;  %v3426_v59 = vsel %vm504_vm0, %v4166_v55, %v3346_v54  ;;  %v3200_v11 = vadd.f32 %v3199_v5, %v3039_v56  ;;  %v3949_v42 = vadd.f32 %v3948_v58, %v3947_v50  ;;  %v3358_v58 = vpop.permute.xlu1 %3357 }
 0x3ab   : > { %v3459_v8 = vsel %vm3443_vm5, %v3426_v59, 0.0  ;;  %v3950_v60 = vpop.f32.mrf.mxu0 }
 0x3ac   : > { %v3207_v63 = vpop.f32.mrf.mxu1  ;;  %3491 = vst [vmem:[%s5343_s15 + $0x78] sm:$0xff] %v3459_v8  ;;  %4173 = vtanh.f32 %v3200_v11  ;;  %v3044_v61 = vadd.f32 %v3949_v42, %v5333_v12 }
 0x3ad   : > { %v4168_v4 = vpop.eup %4167  ;;  %v3951_v14 = vpop.f32.mrf.mxu0 }
 0x3ae   : > { %v3209_v34 = vpop.f32.mrf.mxu1  ;;  %v3427_v31 = vsel %vm504_vm0, %v4168_v4, %v3348_v3  ;;  %v3205_v30 = vadd.f32 %v3204_v52, %v3044_v61  ;;  %v3952_v57 = vadd.f32 %v3951_v14, %v3950_v60  ;;  %v3360_v14 = vpop.permute.xlu0 %3359 }
 0x3af   : > { %v3460_v26 = vsel %vm3443_vm5, %v3427_v31, 0.0  ;;  %v3953_v6 = vpop.f32.mrf.mxu0 }
 0x3b0   : > { %v3212_v7 = vpop.f32.mrf.mxu1  ;;  %3492 = vst [vmem:[%s5343_s15 + $0x80] sm:$0xff] %v3460_v26  ;;  %4175 = vtanh.f32 %v3205_v30  ;;  %v3047_v44 = vadd.f32 %v3952_v57, %v5333_v12 }
 0x3b1   : > { %v4170_v10 = vpop.eup %4169  ;;  %v3954_v53 = vpop.f32.mrf.mxu0 }
 0x3b2   : > { %v3214_v19 = vpop.f32.mrf.mxu1  ;;  %v3428_v41 = vsel %vm504_vm0, %v4170_v10, %v3350_v37  ;;  %v3208_v13 = vadd.f32 %v3207_v63, %v3047_v44  ;;  %v3955_v15 = vadd.f32 %v3954_v53, %v3953_v6  ;;  %v3362_v53 = vpop.permute.xlu1 %3361 }
 0x3b3   : > { %v3461_v27 = vsel %vm3443_vm5, %v3428_v41, 0.0  ;;  %v3956_v17 = vpop.f32.mrf.mxu0 }
 0x3b4   : > { %v3215_v18 = vpop.f32.mrf.mxu1  ;;  %3493 = vst [vmem:[%s5343_s15 + $0x88] sm:$0xff] %v3461_v27  ;;  %4177 = vtanh.f32 %v3208_v13  ;;  %v3052_v20 = vadd.f32 %v3955_v15, %v5333_v12 }
 0x3b5   : > { %v4172_v28 = vpop.eup %4171  ;;  %v3957_v24 = vpop.f32.mrf.mxu0 }
 0x3b6   : > { %v3217_v22 = vpop.f32.mrf.mxu1  ;;  %v3429_v23 = vsel %vm504_vm0, %v4172_v28, %v3352_v29  ;;  %v3213_v32 = vadd.f32 %v3212_v7, %v3052_v20  ;;  %v3958_v36 = vadd.f32 %v3957_v24, %v3956_v17  ;;  %v3364_v24 = vpop.permute.xlu0 %3363 }
 0x3b7   : > { %v3462_v51 = vsel %vm3443_vm5, %v3429_v23, 0.0  ;;  %v3959_v49 = vpop.f32.mrf.mxu0 }
 0x3b8   : > { %v3220_v38 = vpop.f32.mrf.mxu1  ;;  %3494 = vst [vmem:[%s5343_s15 + $0x90] sm:$0xff] %v3462_v51  ;;  %4179 = vtanh.f32 %v3213_v32  ;;  %v3055_v21 = vadd.f32 %v3958_v36, %v5333_v12 }
 0x3b9   : > { %v4174_v39 = vpop.eup %4173  ;;  %v3960_v40 = vpop.f32.mrf.mxu0 }
 0x3ba   : > { %v3222_v16 = vpop.f32.mrf.mxu1  ;;  %v3430_v0 = vsel %vm504_vm0, %v4174_v39, %v3354_v62  ;;  %v3216_v33 = vadd.f32 %v3215_v18, %v3055_v21  ;;  %v3961_v5 = vadd.f32 %v3960_v40, %v3959_v49  ;;  %v3366_v40 = vpop.permute.xlu1 %3365 }
 0x3bb   : > { %v3463_v2 = vsel %vm3443_vm5, %v3430_v0, 0.0  ;;  %v3962_v45 = vpop.f32.mrf.mxu0 }
 0x3bc   : > { %v3223_v48 = vpop.f32.mrf.mxu1  ;;  %3495 = vst [vmem:[%s5343_s15 + $0x98] sm:$0xff] %v3463_v2  ;;  %4181 = vtanh.f32 %v3216_v33  ;;  %v3060_v25 = vadd.f32 %v3961_v5, %v5333_v12 }
 0x3bd   : > { %v4176_v46 = vpop.eup %4175  ;;  %v3963_v47 = vpop.f32.mrf.mxu0 }
 0x3be   : > { %v3225_v43 = vpop.f32.mrf.mxu1  ;;  %v3431_v1 = vsel %vm504_vm0, %v4176_v46, %v3356_v35  ;;  %v3221_v50 = vadd.f32 %v3220_v38, %v3060_v25  ;;  %v3964_v52 = vadd.f32 %v3963_v47, %v3962_v45  ;;  %v3368_v47 = vpop.permute.xlu0 %3367 }
 0x3bf   : > { %v3464_v54 = vsel %vm3443_vm5, %v3431_v1, 0.0  ;;  %v3965_v56 = vpop.f32.mrf.mxu0 }
 0x3c0   : > { %v3228_v55 = vpop.f32.mrf.mxu1  ;;  %3496 = vst [vmem:[%s5343_s15 + $0xa0] sm:$0xff] %v3464_v54  ;;  %4183 = vtanh.f32 %v3221_v50  ;;  %v3063_v9 = vadd.f32 %v3964_v52, %v5333_v12 }
 0x3c1   : > { %v4178_v59 = vpop.eup %4177  ;;  %v3966_v11 = vpop.f32.mrf.mxu0 }
 0x3c2   : > { %v3230_v42 = vpop.f32.mrf.mxu1  ;;  %v3432_v8 = vsel %vm504_vm0, %v4178_v59, %v3358_v58  ;;  %v3224_v60 = vadd.f32 %v3223_v48, %v3063_v9  ;;  %v3967_v63 = vadd.f32 %v3966_v11, %v3965_v56  ;;  %v3370_v11 = vpop.permute.xlu1 %3369 }
 0x3c3   : > { %v3465_v3 = vsel %vm3443_vm5, %v3432_v8, 0.0  ;;  %v3968_v61 = vpop.f32.mrf.mxu0 }
 0x3c4   : > { %v3231_v4 = vpop.f32.mrf.mxu1  ;;  %3497 = vst [vmem:[%s5343_s15 + $0xa8] sm:$0xff] %v3465_v3  ;;  %4185 = vtanh.f32 %v3224_v60  ;;  %v3068_v34 = vadd.f32 %v3967_v63, %v5333_v12  ;;  %v3372_v3 = vpop.permute.xlu0 %3371 }
 0x3c5   : > { %v4180_v31 = vpop.eup %4179  ;;  %v3969_v30 = vpop.f32.mrf.mxu0 }
 0x3c6   : > { %v3233_v57 = vpop.f32.mrf.mxu1  ;;  %v3433_v26 = vsel %vm504_vm0, %v4180_v31, %v3360_v14  ;;  %v3229_v6 = vadd.f32 %v3228_v55, %v3068_v34  ;;  %v3970_v7 = vadd.f32 %v3969_v30, %v3968_v61  ;;  %v3374_v14 = vpop.permute.xlu1 %3373 }
 0x3c7   : > { %v3466_v37 = vsel %vm3443_vm5, %v3433_v26, 0.0  ;;  %v3971_v44 = vpop.f32.mrf.mxu0 }
 0x3c8   : > { %v3236_v10 = vpop.f32.mrf.mxu1  ;;  %3498 = vst [vmem:[%s5343_s15 + $0xb0] sm:$0xff] %v3466_v37  ;;  %4187 = vtanh.f32 %v3229_v6  ;;  %v3071_v19 = vadd.f32 %v3970_v7, %v5333_v12  ;;  %v3376_v57 = vpop.permute.xlu0 %3375 }
 0x3c9   : > { %v4182_v41 = vpop.eup %4181  ;;  %v3972_v13 = vpop.f32.mrf.mxu0 }
 0x3ca   : > { %v3238_v15 = vpop.f32.mrf.mxu1  ;;  %v3434_v27 = vsel %vm504_vm0, %v4182_v41, %v3362_v53  ;;  %v3232_v17 = vadd.f32 %v3231_v4, %v3071_v19  ;;  %v3973_v18 = vadd.f32 %v3972_v13, %v3971_v44  ;;  %v3378_v37 = vpop.permute.xlu1 %3377 }
 0x3cb   : > { %v3467_v29 = vsel %vm3443_vm5, %v3434_v27, 0.0  ;;  %v3974_v20 = vpop.f32.mrf.mxu0 }
 0x3cc   : > { %v3239_v28 = vpop.f32.mrf.mxu1  ;;  %3499 = vst [vmem:[%s5343_s15 + $0xb8] sm:$0xff] %v3467_v29  ;;  %4189 = vtanh.f32 %v3232_v17  ;;  %v3076_v22 = vadd.f32 %v3973_v18, %v5333_v12 }
 0x3cd   : > { %v4184_v23 = vpop.eup %4183  ;;  %v3975_v32 = vpop.f32.mrf.mxu0 }
 0x3ce   : > { %v3241_v36 = vpop.f32.mrf.mxu1  ;;  %v3435_v51 = vsel %vm504_vm0, %v4184_v23, %v3364_v24  ;;  %v3237_v49 = vadd.f32 %v3236_v10, %v3076_v22  ;;  %v3976_v38 = vadd.f32 %v3975_v32, %v3974_v20 }
 0x3cf   : > { %v3468_v62 = vsel %vm3443_vm5, %v3435_v51, 0.0  ;;  %v3977_v21 = vpop.f32.mrf.mxu0 }
 0x3d0   : > { %v3244_v39 = vpop.f32.mrf.mxu1  ;;  %3500 = vst [vmem:[%s5343_s15 + $0xc0] sm:$0xff] %v3468_v62  ;;  %4191 = vtanh.f32 %v3237_v49  ;;  %v3079_v16 = vadd.f32 %v3976_v38, %v5333_v12 }
 0x3d1   : > { %v4186_v0 = vpop.eup %4185  ;;  %v3978_v33 = vpop.f32.mrf.mxu0 }
 0x3d2   : > { %v3246_v5 = vpop.f32.mrf.mxu1  ;;  %v3436_v2 = vsel %vm504_vm0, %v4186_v0, %v3366_v40  ;;  %v3240_v45 = vadd.f32 %v3239_v28, %v3079_v16  ;;  %v3979_v48 = vadd.f32 %v3978_v33, %v3977_v21 }
 0x3d3   : > { %v3469_v35 = vsel %vm3443_vm5, %v3436_v2, 0.0  ;;  %v3980_v25 = vpop.f32.mrf.mxu0 }
 0x3d4   : > { %v3247_v46 = vpop.f32.mrf.mxu1  ;;  %3501 = vst [vmem:[%s5343_s15 + $0xc8] sm:$0xff] %v3469_v35  ;;  %4193 = vtanh.f32 %v3240_v45  ;;  %v3084_v43 = vadd.f32 %v3979_v48, %v5333_v12 }
 0x3d5   : > { %v4188_v1 = vpop.eup %4187  ;;  %v3981_v50 = vpop.f32.mrf.mxu0 }
 0x3d6   : > { %v3249_v52 = vpop.f32.mrf.mxu1  ;;  %v3437_v54 = vsel %vm504_vm0, %v4188_v1, %v3368_v47  ;;  %v3245_v56 = vadd.f32 %v3244_v39, %v3084_v43  ;;  %v3982_v55 = vadd.f32 %v3981_v50, %v3980_v25 }
 0x3d7   : > { %v3470_v58 = vsel %vm3443_vm5, %v3437_v54, 0.0 }
 0x3d8   : > { %3502 = vst [vmem:[%s5343_s15 + $0xd0] sm:$0xff] %v3470_v58  ;;  %4195 = vtanh.f32 %v3245_v56  ;;  %v3087_v9 = vadd.f32 %v3982_v55, %v5333_v12 }
 0x3d9   : > { %v4190_v59 = vpop.eup %4189 }
 0x3da   : > { %v3438_v42 = vsel %vm504_vm0, %v4190_v59, %v3370_v11  ;;  %v3248_v8 = vadd.f32 %v3247_v46, %v3087_v9 }
 0x3db   : > { %v3471_v60 = vsel %vm3443_vm5, %v3438_v42, 0.0 }
 0x3dc   : > { %3503 = vst [vmem:[%s5343_s15 + $0xd8] sm:$0xff] %v3471_v60  ;;  %4197 = vtanh.f32 %v3248_v8 }
 0x3dd   : > { %v4192_v63 = vpop.eup %4191 }
 0x3de   : > { %v3439_v61 = vsel %vm504_vm0, %v4192_v63, %v3372_v3 }
 0x3df   : > { %v3472_v4 = vsel %vm3443_vm5, %v3439_v61, 0.0 }
 0x3e0   : > { %3504 = vst [vmem:[%s5343_s15 + $0xe0] sm:$0xff] %v3472_v4 }
 0x3e1   : > { %v4194_v12 = vpop.eup %4193 }
 0x3e2   : > { %v3440_v34 = vsel %vm504_vm0, %v4194_v12, %v3374_v14 }
 0x3e3   : > { %v3473_v31 = vsel %vm3443_vm5, %v3440_v34, 0.0 }
 0x3e4   : > { %3505 = vst [vmem:[%s5343_s15 + $0xe8] sm:$0xff] %v3473_v31 }
 0x3e5   : > { %v4196_v30 = vpop.eup %4195 }
 0x3e6   : > { %v3441_v26 = vsel %vm504_vm0, %v4196_v30, %v3376_v57 }
 0x3e7   : > { %v3474_v6 = vsel %vm3443_vm5, %v3441_v26, 0.0 }
 0x3e8   : > { %3506 = vst [vmem:[%s5343_s15 + $0xf0] sm:$0xff] %v3474_v6 }
 0x3e9   : > { %v4198_v7 = vpop.eup %4197 }
 0x3ea   : > { %v3442_v44 = vsel %vm504_vm0, %v4198_v7, %v3378_v37 }
 0x3eb   : > { %v3475_v10 = vsel %vm3443_vm5, %v3442_v44, 0.0 }
 0x3ec   : > { %3507 = vst [vmem:[%s5343_s15 + $0xf8] sm:$0xff] %v3475_v10 }
 0x3ed PF: > { %s20_s13 = sadd.s32 1, %s4206_s13  }
 0x3ee   : > { %p17_p4 = scmp.ge.s32.totalorder %s20_s13, 4  }
 0x3f0   :  { %19 = sbr.rel (!%p17_p4) target bundleno = 1 (0x1), region = 93 }

</bundles_post_ra>
